<compile_context>
chip_gen: v5e
topology: v5e:2x2
jax: 0.10.0
libtpu: 0.0.40
codegen_flags: <defaults>
</compile_context>

<pallas_src>
import functools

import jax
import jax.numpy as jnp
from jax.experimental import pallas as pl
from jax.experimental.pallas import tpu as pltpu


# ----------------------------------------------------------------------------
# helpers
# ----------------------------------------------------------------------------
def _round_up(x, m):
    return ((x + m - 1) // m) * m


def _pad_last(a, target):
    pad = target - a.shape[-1]
    if pad == 0:
        return a
    return jnp.pad(a, [(0, 0)] * (a.ndim - 1) + [(0, pad)])


def fold_bn(gamma, beta, mean, var, eps=1e-5):
    scale = gamma / jnp.sqrt(var + eps)
    return scale, beta - mean * scale


def fold_params(params, expand_ratio):
    """Fold BN scale into conv weights (f32); biases kept separate."""
    out = {}
    if expand_ratio != 1:
        s1, b1 = fold_bn(*params["bn1"])
        out["w1"] = params["w_expand"] * s1[None, :]
        out["b1"] = b1
    s2, b2 = fold_bn(*params["bn2"])
    out["wdw"] = params["w_dw"] * s2[None, :]
    out["b2"] = b2
    s3, b3 = fold_bn(*params["bn3"])
    out["w3"] = params["w_proj"] * s3[None, :]
    out["b3"] = b3
    return out


# ----------------------------------------------------------------------------
# The fused kernel
# ----------------------------------------------------------------------------
def _fused_inverted_residual_kernel(stride, TH, W, Wo, use_res, has_expand,
                                    *refs):
    if has_expand:
        (x_hbm, w1_ref, b1_ref, wdw_ref, b2_ref, w3_ref, b3_ref,
         o_ref, xwin_ref, hid_ref, dma_sem) = refs
    else:
        (x_hbm, wdw_ref, b2_ref, w3_ref, b3_ref,
         o_ref, xwin_ref, hid_ref, dma_sem) = refs
        w1_ref = b1_ref = None

    b = pl.program_id(0)
    j = pl.program_id(1)
    R = stride * TH + 2                       # input rows fetched per tile
    hid_p = hid_ref.shape[-1]
    r0 = pl.multiple_of(j * (TH * stride), TH * stride)

    # ---- fetch this tile's (R, W, cin) input window.  The image rows carry a
    #      zero halo row top & bottom in HBM, so the window is always in bounds
    #      and no in-kernel row clamping / zero-select is needed.
    cp = pltpu.make_async_copy(x_hbm.at[b, pl.ds(r0, R)], xwin_ref, dma_sem)
    cp.start()

    # zero the column halo of the hidden scratch while the DMA is in flight
    if stride == 1:
        hid_ref[:, 0:1, :] = jnp.zeros((R, 1, hid_p), hid_ref.dtype)
        hid_ref[:, W + 1:W + 2, :] = jnp.zeros((R, 1, hid_p), hid_ref.dtype)
    else:
        hid_ref[:, :, 0:1, :] = jnp.zeros((R // 2, 2, 1, hid_p), hid_ref.dtype)
        hid_ref[:, :, W + 1:W + 2, :] = jnp.zeros((R // 2, 2, 1, hid_p),
                                                  hid_ref.dtype)

    cp.wait()

    # ---- stage 1: expand 1x1 (BN scale folded) + bias + ReLU6
    #      ONE matmul over all R*W window pixels -> bf16 hidden scratch.
    xw = xwin_ref[...]                         # (R, W, cin_p) bf16
    if has_expand:
        h = jnp.dot(xw.reshape(R * W, xw.shape[-1]), w1_ref[...],
                    preferred_element_type=jnp.float32)
        h = jnp.clip(h + b1_ref[...], 0.0, 6.0)
        h = h.reshape(R, W, hid_p).astype(hid_ref.dtype)
    else:
        h = xw                                 # hidden == input (already bf16)
    if stride == 1:
        hid_ref[:, 1:W + 1, :] = h
    else:                                      # rows pre-grouped in pairs
        hid_ref[:, :, 1:W + 1, :] = h.reshape(R // 2, 2, W, h.shape[-1])

    # ---- stage 2: 3x3 depthwise (BN scale folded) + bias + ReLU6
    #      Taps are plain static slices of the column-padded scratch:
    #      no edge masks, no rolls, no wasted boundary selects.
    acc = jnp.zeros((TH, W, hid_p), jnp.float32)
    for kh in range(3):
        if stride == 1:
            row = hid_ref[kh:kh + TH, :, :]                 # (TH, W+2, hid)
        else:
            g0, par = ((0, 0), (0, 1), (1, 0))[kh]          # hidden row 2t+kh
            row = hid_ref[g0:g0 + TH, par:par + 1, :, :]    # (TH, 1, W+2, hid)
            row = row.reshape(TH, W + 2, hid_p)
        row = row.astype(jnp.float32)
        for kw in range(3):
            acc = acc + row[:, kw:kw + W, :] * wdw_ref[kh * 3 + kw, :]
    if stride == 2:
        # TODO(synk): a column-strided scratch read (pl.ds(..., stride=2)) would
        # avoid computing the discarded odd output columns for stride-2 blocks.
        acc = acc.reshape(TH, Wo, 2, hid_p)[:, :, 0, :]     # keep even out cols
    y = jnp.clip(acc + b2_ref[0, :], 0.0, 6.0).astype(jnp.bfloat16)

    # ---- stage 3: project 1x1 (BN folded) + bias (+ fused residual)
    p = jnp.dot(y.reshape(TH * Wo, hid_p), w3_ref[...],
                preferred_element_type=jnp.float32)
    p = p + b3_ref[...]
    if use_res:                                # stride == 1 and inp == oup
        xres = xwin_ref[1:TH + 1, :, :]        # the tile's own input rows
        p = p + xres.reshape(TH * W, xres.shape[-1]).astype(jnp.float32)
    o_ref[...] = p.reshape(TH, Wo, p.shape[-1]).astype(o_ref.dtype)


# ----------------------------------------------------------------------------
# Wrapper
# ----------------------------------------------------------------------------
def _pick_row_tile(Ho, N, stride, W, Wo, cin_p, hid_p, cout_p, has_expand):
    """Largest divisor of Ho whose per-step VMEM estimate fits the budget."""
    def est(th):
        R = stride * th + 2
        hid = R * (W + 2) * hid_p * 2                       # bf16 scratch
        xwin = R * W * cin_p * 2                            # bf16 window
        outb = 2 * th * Wo * cout_p * 2                     # double-buffered out
        wgt = 2 * ((cin_p * hid_p * 2 if has_expand else 0)
                   + hid_p * cout_p * 2 + 9 * hid_p * 4
                   + 2 * hid_p * 4 + cout_p * 4)            # double-buffered wts
        wacc = W if stride == 2 else Wo
        tmp = (R * W * hid_p * 4        # expand f32 output before bf16 cast
               + th * wacc * hid_p * 4  # depthwise accumulator
               + th * Wo * hid_p * 2    # y (bf16)
               + th * Wo * cout_p * 4)  # projected f32 before cast
        return hid + xwin + outb + wgt + tmp

    budget = 34 * 1024 * 1024
    divisors = [t for t in range(1, Ho + 1) if Ho % t == 0]
    fitting = [t for t in divisors if est(t) <= budget] or [1]
    # prefer >= 2 total grid steps so megacore has something to split
    preferred = [t for t in fitting if N * (Ho // t) >= 2]
    th = max(preferred) if preferred else max(fitting)
    return th, est(th)


def inverted_residual_forward(params, x_nchw, *, inp, oup, stride, expand_ratio,
                              out_dtype=jnp.float32):
    assert stride in (1, 2)
    N, C, H, W = x_nchw.shape
    assert C == inp
    assert H % stride == 0 and W % stride == 0
    hidden = int(round(inp * expand_ratio))
    has_expand = expand_ratio != 1
    use_res = (stride == 1 and inp == oup)
    Ho, Wo = H // stride, W // stride

    cin_p = _round_up(inp, 128)
    hid_p = _round_up(hidden, 128)
    cout_p = _round_up(oup, 128)

    TH, est = _pick_row_tile(Ho, N, stride, W, Wo, cin_p, hid_p, cout_p,
                             has_expand)
    R = stride * TH + 2

    fp = fold_params(params, expand_ratio)

    # NCHW f32 -> NHWC bf16, one zero halo row top & bottom, channels padded to
    # a 128-lane multiple (one fused boundary copy; no other spatial padding).
    # TODO(synk): when chaining blocks, keep activations in this padded-NHWC
    # bf16 layout between calls and skip the NCHW<->NHWC relayouts entirely.
    x_nhwc = jnp.transpose(x_nchw, (0, 2, 3, 1)).astype(jnp.bfloat16)
    x_p = jnp.pad(x_nhwc, ((0, 0), (1, 1), (0, 0), (0, cin_p - inp)))

    wdw = _pad_last(fp["wdw"], hid_p).astype(jnp.float32)               # (9, hid_p)
    b2 = _pad_last(fp["b2"].reshape(1, -1), hid_p).astype(jnp.float32)
    w3 = jnp.pad(fp["w3"], ((0, hid_p - hidden),
                            (0, cout_p - oup))).astype(jnp.bfloat16)    # (hid_p, cout_p)
    b3 = _pad_last(fp["b3"].reshape(1, -1), cout_p).astype(jnp.float32)

    inputs = [x_p]
    in_specs = [pl.BlockSpec(memory_space=pl.ANY)]     # stays in HBM; windowed DMA in-kernel
    if has_expand:
        w1 = jnp.pad(fp["w1"], ((0, cin_p - inp),
                                (0, hid_p - hidden))).astype(jnp.bfloat16)
        b1 = _pad_last(fp["b1"].reshape(1, -1), hid_p).astype(jnp.float32)
        inputs += [w1, b1]
        in_specs += [pl.BlockSpec((cin_p, hid_p), lambda b, j: (0, 0)),
                     pl.BlockSpec((1, hid_p), lambda b, j: (0, 0))]
    inputs += [wdw, b2, w3, b3]
    in_specs += [pl.BlockSpec((9, hid_p), lambda b, j: (0, 0)),
                 pl.BlockSpec((1, hid_p), lambda b, j: (0, 0)),
                 pl.BlockSpec((hid_p, cout_p), lambda b, j: (0, 0)),
                 pl.BlockSpec((1, cout_p), lambda b, j: (0, 0))]

    if stride == 1:
        hid_scratch = pltpu.VMEM((TH + 2, W + 2, hid_p), jnp.bfloat16)
    else:   # rows pre-grouped as (row pair, parity) -> plain-slice row taps
        hid_scratch = pltpu.VMEM((TH + 1, 2, W + 2, hid_p), jnp.bfloat16)

    kernel = functools.partial(_fused_inverted_residual_kernel,
                               stride, TH, W, Wo, use_res, has_expand)

    # explicit VMEM budget: 2x the estimate, capped below v7x's 64 MiB/TC
    vmem_limit = int(min(max(2 * est, 24 * 1024 * 1024), 48 * 1024 * 1024))

    out_p = pl.pallas_call(
        kernel,
        out_shape=jax.ShapeDtypeStruct((N, Ho, Wo, cout_p), jnp.bfloat16),
        grid=(N, Ho // TH),
        in_specs=in_specs,
        out_specs=pl.BlockSpec((None, TH, Wo, cout_p), lambda b, j: (b, j, 0, 0)),
        scratch_shapes=[pltpu.VMEM((R, W, cin_p), jnp.bfloat16),   # input window
                        hid_scratch,                               # hidden activation
                        pltpu.SemaphoreType.DMA],
        compiler_params=pltpu.CompilerParams(
            dimension_semantics=("parallel", "parallel"),
            vmem_limit_bytes=vmem_limit),
    )(*inputs)

    out = out_p[..., :oup].astype(out_dtype)           # drop lane padding
    return jnp.transpose(out, (0, 3, 1, 2))            # NHWC -> NCHW


# ----------------------------------------------------------------------------
# Parameter construction and a pure-JAX reference (mirrors kernel quantization)
# ----------------------------------------------------------------------------
def make_inverted_residual_params(key, inp, oup, expand_ratio):
    hidden = int(round(inp * expand_ratio))
    ks = jax.random.split(key, 16)

    def bn(k0, k1, k2, k3, c):
        return (1.0 + 0.1 * jax.random.normal(k0, (c,), jnp.float32),     # gamma
                0.1 * jax.random.normal(k1, (c,), jnp.float32),           # beta
                0.1 * jax.random.normal(k2, (c,), jnp.float32),           # running_mean
                0.5 + jnp.abs(jax.random.normal(k3, (c,), jnp.float32)))  # running_var

    params = {}
    if expand_ratio != 1:
        params["w_expand"] = 0.1 * jax.random.normal(ks[0], (inp, hidden), jnp.float32)
        params["bn1"] = bn(ks[1], ks[2], ks[3], ks[4], hidden)
    params["w_dw"] = 0.1 * jax.random.normal(ks[5], (9, hidden), jnp.float32)
    params["bn2"] = bn(ks[6], ks[7], ks[8], ks[9], hidden)
    params["w_proj"] = 0.1 * jax.random.normal(ks[10], (hidden, oup), jnp.float32)
    params["bn3"] = bn(ks[11], ks[12], ks[13], ks[14], oup)
    return params


def reference_forward(params, x_nchw, *, inp, oup, stride, expand_ratio,
                      out_dtype=jnp.float32):
    """Pure-JAX reference that mirrors the kernel's bf16 quantization points."""
    hidden = int(round(inp * expand_ratio))
    use_res = (stride == 1 and inp == oup)
    fp = fold_params(params, expand_ratio)
    f32 = jnp.float32
    dn = ("NHWC", "HWIO", "NHWC")
    hi = jax.lax.Precision.HIGHEST

    x = jnp.transpose(x_nchw, (0, 2, 3, 1)).astype(jnp.bfloat16).astype(f32)
    h = x
    if expand_ratio != 1:
        w1 = fp["w1"].astype(jnp.bfloat16).astype(f32)
        h = jax.lax.conv_general_dilated(h, w1[None, None], (1, 1),
                                         [(0, 0), (0, 0)], dimension_numbers=dn,
                                         precision=hi)
        h = jnp.clip(h + fp["b1"], 0.0, 6.0)
    h = h.astype(jnp.bfloat16).astype(f32)            # bf16 hidden scratch
    wdw = fp["wdw"].reshape(3, 3, hidden)[:, :, None, :]
    h = jax.lax.conv_general_dilated(h, wdw, (stride, stride),
                                     [(1, 1), (1, 1)], dimension_numbers=dn,
                                     feature_group_count=hidden, precision=hi)
    h = jnp.clip(h + fp["b2"], 0.0, 6.0)
    h = h.astype(jnp.bfloat16).astype(f32)            # project matmul input
    w3 = fp["w3"].astype(jnp.bfloat16).astype(f32)
    h = jax.lax.conv_general_dilated(h, w3[None, None], (1, 1),
                                     [(0, 0), (0, 0)], dimension_numbers=dn,
                                     precision=hi) + fp["b3"]
    if use_res:
        h = h + x
    h = h.astype(jnp.bfloat16).astype(out_dtype)
    return jnp.transpose(h, (0, 3, 1, 2))


# TODO(synk): BatchNorm is implemented in inference mode only (running stats
# folded into the conv weights); training-mode batch statistics are not computed.

if __name__ == "__main__":
    key = jax.random.PRNGKey(0)
    configs = [
        dict(inp=8, oup=8, stride=1, expand_ratio=4),    # residual path active
        dict(inp=8, oup=16, stride=2, expand_ratio=6),   # in-kernel stride-2, no residual
        dict(inp=16, oup=8, stride=1, expand_ratio=1),   # no expand conv
    ]
    for ci, cfg in enumerate(configs):
        kx, kp, key = jax.random.split(key, 3)
        x = jax.random.normal(kx, (2, cfg["inp"], 16, 16), jnp.float32)  # NCHW
        params = make_inverted_residual_params(kp, cfg["inp"], cfg["oup"],
                                               cfg["expand_ratio"])
        out = inverted_residual_forward(params, x, **cfg)
        jax.block_until_ready(out)
        Ho = 16 // cfg["stride"]
        assert out.shape == (2, cfg["oup"], Ho, Ho), out.shape
        ref = reference_forward(params, x, **cfg)
        if not jnp.allclose(out, ref, atol=2e-2, rtol=2e-2):
            err = float(jnp.max(jnp.abs(out - ref)))
            raise AssertionError(f"config {ci} mismatch, max abs err = {err}")
    print("KERNEL_OK")
</pallas_src>

<mosaic_0001>
module attributes {stable_mosaic.version = 11 : i64} {
  func.func @_fused_inverted_residual_kernel(%arg0: i32, %arg1: i32, %arg2: memref<2x18x16x128xbf16, #tpu.memory_space<any>>, %arg3: memref<128x128xbf16, #tpu.memory_space<vmem>>, %arg4: memref<1x128xf32, #tpu.memory_space<vmem>>, %arg5: memref<9x128xf32, #tpu.memory_space<vmem>>, %arg6: memref<1x128xf32, #tpu.memory_space<vmem>>, %arg7: memref<128x128xbf16, #tpu.memory_space<vmem>>, %arg8: memref<1x128xf32, #tpu.memory_space<vmem>>, %arg9: memref<1x16x16x128xbf16, #tpu.memory_space<vmem>>, %arg10: memref<18x16x128xbf16, #tpu.memory_space<vmem>>, %arg11: memref<18x18x128xbf16, #tpu.memory_space<vmem>>, %arg12: memref<!tpu.dma_semaphore, #tpu.memory_space<semaphore_mem>>) attributes {dimension_semantics = [#tpu.dimension_semantics<parallel>, #tpu.dimension_semantics<parallel>], iteration_bounds = array<i64: 2, 1>, scalar_prefetch = 0 : i64, scratch_operands = 3 : i64, tpu.core_type = #tpu.core_type<tc>, window_params = [{}, {pipeline_mode = #tpu.pipeline_mode<synchronous>, transform_indices = @transform_1, window_bounds = array<i64: 128, 128>}, {pipeline_mode = #tpu.pipeline_mode<synchronous>, transform_indices = @transform_2, window_bounds = array<i64: 1, 128>}, {pipeline_mode = #tpu.pipeline_mode<synchronous>, transform_indices = @transform_3, window_bounds = array<i64: 9, 128>}, {pipeline_mode = #tpu.pipeline_mode<synchronous>, transform_indices = @transform_4, window_bounds = array<i64: 1, 128>}, {pipeline_mode = #tpu.pipeline_mode<synchronous>, transform_indices = @transform_5, window_bounds = array<i64: 128, 128>}, {pipeline_mode = #tpu.pipeline_mode<synchronous>, transform_indices = @transform_6, window_bounds = array<i64: 1, 128>}, {transform_indices = @transform_7, window_bounds = array<i64: 1, 16, 16, 128>}]} {
    %c16_i32 = arith.constant 16 : i32
    %0 = arith.muli %arg1, %c16_i32 : i32
    %1 = tpu.assume_multiple %0, 16 : i32
    %c0_i32 = arith.constant 0 : i32
    %c0_i32_0 = arith.constant 0 : i32
    %2 = tpu.memref_slice %arg2[%arg0, %1, %c0_i32, %c0_i32_0] : memref<2x18x16x128xbf16, #tpu.memory_space<any>> -> memref<1x18x16x128xbf16, #tpu.memory_space<any>>
    %3 = tpu.memref_squeeze %2 : memref<1x18x16x128xbf16, #tpu.memory_space<any>> -> memref<18x16x128xbf16, #tpu.memory_space<any>>
    tpu.enqueue_dma source(%3 : memref<18x16x128xbf16, #tpu.memory_space<any>>) target(%arg10 : memref<18x16x128xbf16, #tpu.memory_space<vmem>>) target_semaphore(%arg12 : memref<!tpu.dma_semaphore, #tpu.memory_space<semaphore_mem>>)
    %cst = arith.constant 0.000000e+00 : bf16
    %4 = vector.broadcast %cst : bf16 to vector<18x1x128xbf16>
    %c0 = arith.constant 0 : index
    %c0_1 = arith.constant 0 : index
    %c0_2 = arith.constant 0 : index
    %5 = vector.load %arg11[%c0, %c0_1, %c0_2] : memref<18x18x128xbf16, #tpu.memory_space<vmem>>, vector<18x1x128xbf16>
    tpu.vector_store %arg11[%c0, %c0_1, %c0_2], %4 {strides = array<i32>} : memref<18x18x128xbf16, #tpu.memory_space<vmem>>, vector<18x1x128xbf16>,
    %cst_3 = arith.constant 0.000000e+00 : bf16
    %6 = vector.broadcast %cst_3 : bf16 to vector<18x1x128xbf16>
    %c0_4 = arith.constant 0 : index
    %c17 = arith.constant 17 : index
    %c0_5 = arith.constant 0 : index
    %7 = vector.load %arg11[%c0_4, %c17, %c0_5] : memref<18x18x128xbf16, #tpu.memory_space<vmem>>, vector<18x1x128xbf16>
    tpu.vector_store %arg11[%c0_4, %c17, %c0_5], %6 {strides = array<i32>} : memref<18x18x128xbf16, #tpu.memory_space<vmem>>, vector<18x1x128xbf16>,
    %c0_i32_6 = arith.constant 0 : i32
    %c0_i32_7 = arith.constant 0 : i32
    %8 = tpu.memref_slice %arg2[%arg0, %1, %c0_i32_6, %c0_i32_7] : memref<2x18x16x128xbf16, #tpu.memory_space<any>> -> memref<1x18x16x128xbf16, #tpu.memory_space<any>>
    %9 = tpu.memref_squeeze %8 : memref<1x18x16x128xbf16, #tpu.memory_space<any>> -> memref<18x16x128xbf16, #tpu.memory_space<any>>
    tpu.wait_dma2 semaphore(%arg12 : memref<!tpu.dma_semaphore, #tpu.memory_space<semaphore_mem>>) src(%9 : memref<18x16x128xbf16, #tpu.memory_space<any>>) dst(%arg10 : memref<18x16x128xbf16, #tpu.memory_space<vmem>>)
    %c0_8 = arith.constant 0 : index
    %c0_9 = arith.constant 0 : index
    %c0_10 = arith.constant 0 : index
    %10 = vector.load %arg10[%c0_8, %c0_9, %c0_10] : memref<18x16x128xbf16, #tpu.memory_space<vmem>>, vector<18x16x128xbf16>
    %11 = vector.shape_cast %10 : vector<18x16x128xbf16> to vector<288x128xbf16>
    %c0_11 = arith.constant 0 : index
    %c0_12 = arith.constant 0 : index
    %12 = vector.load %arg3[%c0_11, %c0_12] : memref<128x128xbf16, #tpu.memory_space<vmem>>, vector<128x128xbf16>
    %cst_13 = arith.constant dense<0.000000e+00> : vector<288x128xf32>
    %13 = tpu.matmul %11, %12, %cst_13 {dimension_numbers = #tpu.dot_dimension_numbers<[1], [0], [0], [1], [0, 0, 1, 1], [], []>} : vector<288x128xbf16>, vector<128x128xbf16>, vector<288x128xf32> -> vector<288x128xf32>
    %c0_14 = arith.constant 0 : index
    %c0_15 = arith.constant 0 : index
    %14 = vector.load %arg4[%c0_14, %c0_15] : memref<1x128xf32, #tpu.memory_space<vmem>>, vector<1x128xf32>
    %15 = vector.broadcast %14 : vector<1x128xf32> to vector<288x128xf32>
    %16 = arith.addf %13, %15 : vector<288x128xf32>
    %cst_16 = arith.constant 0.000000e+00 : f32
    %cst_17 = arith.constant 6.000000e+00 : f32
    %17 = vector.broadcast %cst_16 : f32 to vector<288x128xf32>
    %18 = arith.maximumf %17, %16 : vector<288x128xf32>
    %19 = vector.broadcast %cst_17 : f32 to vector<288x128xf32>
    %20 = arith.minimumf %19, %18 : vector<288x128xf32>
    %21 = vector.shape_cast %20 : vector<288x128xf32> to vector<18x16x128xf32>
    %22 = arith.truncf %21 : vector<18x16x128xf32> to vector<18x16x128xbf16>
    %c0_18 = arith.constant 0 : index
    %c1 = arith.constant 1 : index
    %c0_19 = arith.constant 0 : index
    %23 = vector.load %arg11[%c0_18, %c1, %c0_19] : memref<18x18x128xbf16, #tpu.memory_space<vmem>>, vector<18x16x128xbf16>
    tpu.vector_store %arg11[%c0_18, %c1, %c0_19], %22 {strides = array<i32>} : memref<18x18x128xbf16, #tpu.memory_space<vmem>>, vector<18x16x128xbf16>,
    %cst_20 = arith.constant 0.000000e+00 : f32
    %24 = vector.broadcast %cst_20 : f32 to vector<16x16x128xf32>
    %c0_21 = arith.constant 0 : index
    %c0_22 = arith.constant 0 : index
    %c0_23 = arith.constant 0 : index
    %25 = vector.load %arg11[%c0_21, %c0_22, %c0_23] : memref<18x18x128xbf16, #tpu.memory_space<vmem>>, vector<16x18x128xbf16>
    %26 = arith.extf %25 : vector<16x18x128xbf16> to vector<16x18x128xf32>
    %27 = vector.extract_strided_slice %26 {offsets = [0, 0, 0], sizes = [16, 16, 128], strides = [1, 1, 1]} : vector<16x18x128xf32> to vector<16x16x128xf32>
    %c0_24 = arith.constant 0 : index
    %c0_25 = arith.constant 0 : index
    %28 = vector.load %arg5[%c0_24, %c0_25] : memref<9x128xf32, #tpu.memory_space<vmem>>, vector<1x128xf32>
    %29 = vector.shape_cast %28 : vector<1x128xf32> to vector<128xf32>
    %30 = vector.shape_cast %29 : vector<128xf32> to vector<1x1x128xf32>
    %31 = vector.broadcast %30 : vector<1x1x128xf32> to vector<16x16x128xf32>
    %32 = arith.mulf %27, %31 : vector<16x16x128xf32>
    %33 = arith.addf %24, %32 : vector<16x16x128xf32>
    %34 = vector.extract_strided_slice %26 {offsets = [0, 1, 0], sizes = [16, 16, 128], strides = [1, 1, 1]} : vector<16x18x128xf32> to vector<16x16x128xf32>
    %c1_26 = arith.constant 1 : index
    %c0_27 = arith.constant 0 : index
    %35 = vector.load %arg5[%c1_26, %c0_27] : memref<9x128xf32, #tpu.memory_space<vmem>>, vector<1x128xf32>
    %36 = vector.shape_cast %35 : vector<1x128xf32> to vector<128xf32>
    %37 = vector.shape_cast %36 : vector<128xf32> to vector<1x1x128xf32>
    %38 = vector.broadcast %37 : vector<1x1x128xf32> to vector<16x16x128xf32>
    %39 = arith.mulf %34, %38 : vector<16x16x128xf32>
    %40 = arith.addf %33, %39 : vector<16x16x128xf32>
    %41 = vector.extract_strided_slice %26 {offsets = [0, 2, 0], sizes = [16, 16, 128], strides = [1, 1, 1]} : vector<16x18x128xf32> to vector<16x16x128xf32>
    %c2 = arith.constant 2 : index
    %c0_28 = arith.constant 0 : index
    %42 = vector.load %arg5[%c2, %c0_28] : memref<9x128xf32, #tpu.memory_space<vmem>>, vector<1x128xf32>
    %43 = vector.shape_cast %42 : vector<1x128xf32> to vector<128xf32>
    %44 = vector.shape_cast %43 : vector<128xf32> to vector<1x1x128xf32>
    %45 = vector.broadcast %44 : vector<1x1x128xf32> to vector<16x16x128xf32>
    %46 = arith.mulf %41, %45 : vector<16x16x128xf32>
    %47 = arith.addf %40, %46 : vector<16x16x128xf32>
    %c1_29 = arith.constant 1 : index
    %c0_30 = arith.constant 0 : index
    %c0_31 = arith.constant 0 : index
    %48 = vector.load %arg11[%c1_29, %c0_30, %c0_31] : memref<18x18x128xbf16, #tpu.memory_space<vmem>>, vector<16x18x128xbf16>
    %49 = arith.extf %48 : vector<16x18x128xbf16> to vector<16x18x128xf32>
    %50 = vector.extract_strided_slice %49 {offsets = [0, 0, 0], sizes = [16, 16, 128], strides = [1, 1, 1]} : vector<16x18x128xf32> to vector<16x16x128xf32>
    %c3 = arith.constant 3 : index
    %c0_32 = arith.constant 0 : index
    %51 = vector.load %arg5[%c3, %c0_32] : memref<9x128xf32, #tpu.memory_space<vmem>>, vector<1x128xf32>
    %52 = vector.shape_cast %51 : vector<1x128xf32> to vector<128xf32>
    %53 = vector.shape_cast %52 : vector<128xf32> to vector<1x1x128xf32>
    %54 = vector.broadcast %53 : vector<1x1x128xf32> to vector<16x16x128xf32>
    %55 = arith.mulf %50, %54 : vector<16x16x128xf32>
    %56 = arith.addf %47, %55 : vector<16x16x128xf32>
    %57 = vector.extract_strided_slice %49 {offsets = [0, 1, 0], sizes = [16, 16, 128], strides = [1, 1, 1]} : vector<16x18x128xf32> to vector<16x16x128xf32>
    %c4 = arith.constant 4 : index
    %c0_33 = arith.constant 0 : index
    %58 = vector.load %arg5[%c4, %c0_33] : memref<9x128xf32, #tpu.memory_space<vmem>>, vector<1x128xf32>
    %59 = vector.shape_cast %58 : vector<1x128xf32> to vector<128xf32>
    %60 = vector.shape_cast %59 : vector<128xf32> to vector<1x1x128xf32>
    %61 = vector.broadcast %60 : vector<1x1x128xf32> to vector<16x16x128xf32>
    %62 = arith.mulf %57, %61 : vector<16x16x128xf32>
    %63 = arith.addf %56, %62 : vector<16x16x128xf32>
    %64 = vector.extract_strided_slice %49 {offsets = [0, 2, 0], sizes = [16, 16, 128], strides = [1, 1, 1]} : vector<16x18x128xf32> to vector<16x16x128xf32>
    %c5 = arith.constant 5 : index
    %c0_34 = arith.constant 0 : index
    %65 = vector.load %arg5[%c5, %c0_34] : memref<9x128xf32, #tpu.memory_space<vmem>>, vector<1x128xf32>
    %66 = vector.shape_cast %65 : vector<1x128xf32> to vector<128xf32>
    %67 = vector.shape_cast %66 : vector<128xf32> to vector<1x1x128xf32>
    %68 = vector.broadcast %67 : vector<1x1x128xf32> to vector<16x16x128xf32>
    %69 = arith.mulf %64, %68 : vector<16x16x128xf32>
    %70 = arith.addf %63, %69 : vector<16x16x128xf32>
    %c2_35 = arith.constant 2 : index
    %c0_36 = arith.constant 0 : index
    %c0_37 = arith.constant 0 : index
    %71 = vector.load %arg11[%c2_35, %c0_36, %c0_37] : memref<18x18x128xbf16, #tpu.memory_space<vmem>>, vector<16x18x128xbf16>
    %72 = arith.extf %71 : vector<16x18x128xbf16> to vector<16x18x128xf32>
    %73 = vector.extract_strided_slice %72 {offsets = [0, 0, 0], sizes = [16, 16, 128], strides = [1, 1, 1]} : vector<16x18x128xf32> to vector<16x16x128xf32>
    %c6 = arith.constant 6 : index
    %c0_38 = arith.constant 0 : index
    %74 = vector.load %arg5[%c6, %c0_38] : memref<9x128xf32, #tpu.memory_space<vmem>>, vector<1x128xf32>
    %75 = vector.shape_cast %74 : vector<1x128xf32> to vector<128xf32>
    %76 = vector.shape_cast %75 : vector<128xf32> to vector<1x1x128xf32>
    %77 = vector.broadcast %76 : vector<1x1x128xf32> to vector<16x16x128xf32>
    %78 = arith.mulf %73, %77 : vector<16x16x128xf32>
    %79 = arith.addf %70, %78 : vector<16x16x128xf32>
    %80 = vector.extract_strided_slice %72 {offsets = [0, 1, 0], sizes = [16, 16, 128], strides = [1, 1, 1]} : vector<16x18x128xf32> to vector<16x16x128xf32>
    %c7 = arith.constant 7 : index
    %c0_39 = arith.constant 0 : index
    %81 = vector.load %arg5[%c7, %c0_39] : memref<9x128xf32, #tpu.memory_space<vmem>>, vector<1x128xf32>
    %82 = vector.shape_cast %81 : vector<1x128xf32> to vector<128xf32>
    %83 = vector.shape_cast %82 : vector<128xf32> to vector<1x1x128xf32>
    %84 = vector.broadcast %83 : vector<1x1x128xf32> to vector<16x16x128xf32>
    %85 = arith.mulf %80, %84 : vector<16x16x128xf32>
    %86 = arith.addf %79, %85 : vector<16x16x128xf32>
    %87 = vector.extract_strided_slice %72 {offsets = [0, 2, 0], sizes = [16, 16, 128], strides = [1, 1, 1]} : vector<16x18x128xf32> to vector<16x16x128xf32>
    %c8 = arith.constant 8 : index
    %c0_40 = arith.constant 0 : index
    %88 = vector.load %arg5[%c8, %c0_40] : memref<9x128xf32, #tpu.memory_space<vmem>>, vector<1x128xf32>
    %89 = vector.shape_cast %88 : vector<1x128xf32> to vector<128xf32>
    %90 = vector.shape_cast %89 : vector<128xf32> to vector<1x1x128xf32>
    %91 = vector.broadcast %90 : vector<1x1x128xf32> to vector<16x16x128xf32>
    %92 = arith.mulf %87, %91 : vector<16x16x128xf32>
    %93 = arith.addf %86, %92 : vector<16x16x128xf32>
    %c0_41 = arith.constant 0 : index
    %c0_42 = arith.constant 0 : index
    %94 = vector.load %arg6[%c0_41, %c0_42] : memref<1x128xf32, #tpu.memory_space<vmem>>, vector<1x128xf32>
    %95 = vector.shape_cast %94 : vector<1x128xf32> to vector<128xf32>
    %96 = vector.shape_cast %95 : vector<128xf32> to vector<1x1x128xf32>
    %97 = vector.broadcast %96 : vector<1x1x128xf32> to vector<16x16x128xf32>
    %98 = arith.addf %93, %97 : vector<16x16x128xf32>
    %cst_43 = arith.constant 0.000000e+00 : f32
    %cst_44 = arith.constant 6.000000e+00 : f32
    %99 = vector.broadcast %cst_43 : f32 to vector<16x16x128xf32>
    %100 = arith.maximumf %99, %98 : vector<16x16x128xf32>
    %101 = vector.broadcast %cst_44 : f32 to vector<16x16x128xf32>
    %102 = arith.minimumf %101, %100 : vector<16x16x128xf32>
    %103 = arith.truncf %102 : vector<16x16x128xf32> to vector<16x16x128xbf16>
    %104 = vector.shape_cast %103 : vector<16x16x128xbf16> to vector<256x128xbf16>
    %c0_45 = arith.constant 0 : index
    %c0_46 = arith.constant 0 : index
    %105 = vector.load %arg7[%c0_45, %c0_46] : memref<128x128xbf16, #tpu.memory_space<vmem>>, vector<128x128xbf16>
    %cst_47 = arith.constant dense<0.000000e+00> : vector<256x128xf32>
    %106 = tpu.matmul %104, %105, %cst_47 {dimension_numbers = #tpu.dot_dimension_numbers<[1], [0], [0], [1], [0, 0, 1, 1], [], []>} : vector<256x128xbf16>, vector<128x128xbf16>, vector<256x128xf32> -> vector<256x128xf32>
    %c0_48 = arith.constant 0 : index
    %c0_49 = arith.constant 0 : index
    %107 = vector.load %arg8[%c0_48, %c0_49] : memref<1x128xf32, #tpu.memory_space<vmem>>, vector<1x128xf32>
    %108 = vector.broadcast %107 : vector<1x128xf32> to vector<256x128xf32>
    %109 = arith.addf %106, %108 : vector<256x128xf32>
    %c1_50 = arith.constant 1 : index
    %c0_51 = arith.constant 0 : index
    %c0_52 = arith.constant 0 : index
    %110 = vector.load %arg10[%c1_50, %c0_51, %c0_52] : memref<18x16x128xbf16, #tpu.memory_space<vmem>>, vector<16x16x128xbf16>
    %111 = vector.shape_cast %110 : vector<16x16x128xbf16> to vector<256x128xbf16>
    %112 = arith.extf %111 : vector<256x128xbf16> to vector<256x128xf32>
    %113 = arith.addf %109, %112 : vector<256x128xf32>
    %114 = vector.shape_cast %113 : vector<256x128xf32> to vector<16x16x128xf32>
    %115 = arith.truncf %114 : vector<16x16x128xf32> to vector<16x16x128xbf16>
    %c0_53 = arith.constant 0 : index
    %c0_54 = arith.constant 0 : index
    %c0_55 = arith.constant 0 : index
    %c0_56 = arith.constant 0 : index
    %116 = vector.load %arg9[%c0_53, %c0_54, %c0_55, %c0_56] : memref<1x16x16x128xbf16, #tpu.memory_space<vmem>>, vector<1x16x16x128xbf16>
    %117 = vector.shape_cast %116 : vector<1x16x16x128xbf16> to vector<16x16x128xbf16>
    %118 = vector.shape_cast %115 : vector<16x16x128xbf16> to vector<1x16x16x128xbf16>
    tpu.vector_store %arg9[%c0_53, %c0_54, %c0_55, %c0_56], %118 {strides = array<i32>} : memref<1x16x16x128xbf16, #tpu.memory_space<vmem>>, vector<1x16x16x128xbf16>,
    return
  }
  func.func @transform_1(%arg0: i32, %arg1: i32) -> (i32, i32) {
    %c0_i32 = arith.constant 0 : i32
    %c0_i32_0 = arith.constant 0 : i32
    %c0_i32_1 = arith.constant 0 : i32
    return %c0_i32, %c0_i32_0 : i32, i32
  }
  func.func @transform_2(%arg0: i32, %arg1: i32) -> (i32, i32) {
    %c0_i32 = arith.constant 0 : i32
    %c0_i32_0 = arith.constant 0 : i32
    %c0_i32_1 = arith.constant 0 : i32
    return %c0_i32, %c0_i32_0 : i32, i32
  }
  func.func @transform_3(%arg0: i32, %arg1: i32) -> (i32, i32) {
    %c0_i32 = arith.constant 0 : i32
    %c0_i32_0 = arith.constant 0 : i32
    %c0_i32_1 = arith.constant 0 : i32
    return %c0_i32, %c0_i32_0 : i32, i32
  }
  func.func @transform_4(%arg0: i32, %arg1: i32) -> (i32, i32) {
    %c0_i32 = arith.constant 0 : i32
    %c0_i32_0 = arith.constant 0 : i32
    %c0_i32_1 = arith.constant 0 : i32
    return %c0_i32, %c0_i32_0 : i32, i32
  }
  func.func @transform_5(%arg0: i32, %arg1: i32) -> (i32, i32) {
    %c0_i32 = arith.constant 0 : i32
    %c0_i32_0 = arith.constant 0 : i32
    %c0_i32_1 = arith.constant 0 : i32
    return %c0_i32, %c0_i32_0 : i32, i32
  }
  func.func @transform_6(%arg0: i32, %arg1: i32) -> (i32, i32) {
    %c0_i32 = arith.constant 0 : i32
    %c0_i32_0 = arith.constant 0 : i32
    %c0_i32_1 = arith.constant 0 : i32
    return %c0_i32, %c0_i32_0 : i32, i32
  }
  func.func @transform_7(%arg0: i32, %arg1: i32) -> (i32, i32, i32, i32) {
    %c0_i32 = arith.constant 0 : i32
    %c0_i32_0 = arith.constant 0 : i32
    %c0_i32_1 = arith.constant 0 : i32
    return %arg0, %arg1, %c0_i32, %c0_i32_0 : i32, i32, i32, i32
  }
}

</mosaic_0001>

<bundles_post_ra>
// kernel: tpu_custom_call.1
= control target key start
LH: loop header
LB: loop body
LE: loop exit
PB: predicated region body
PF: predicated region fallthrough
CT: control target
= control target key end

     0   :  { %s6286_s0 = inlined_call_operand.hbm [shape: bf16[2,18,16,128], index: 0, kind: input, shape index: {}]   ;;  %s6287_s1 = inlined_call_operand.hbm [shape: bf16[128,128], index: 1, kind: input, shape index: {}]   ;;  %s6288_s2 = inlined_call_operand.vmem [shape: f32[1,128], index: 2, kind: input, shape index: {}]   ;;  %s6289_s3 = inlined_call_operand.hbm [shape: f32[9,128], index: 3, kind: input, shape index: {}]   ;;  %s6290_s4 = inlined_call_operand.vmem [shape: f32[1,128], index: 4, kind: input, shape index: {}]   ;;  %s6291_s5 = inlined_call_operand.hbm [shape: bf16[128,128], index: 5, kind: input, shape index: {}]   ;;  %s6292_s6 = inlined_call_operand.vmem [shape: f32[1,128], index: 6, kind: input, shape index: {}]   ;;  %s6293_s7 = inlined_call_operand.hbm [shape: bf16[2,16,16,128], index: 7, kind: output, shape index: {}]  }
   0x1   :  { %6298 = sst [smem:[#allocation25_spill]] %s6289_s3 }
   0x2   :  { %12 = vsyncpa [#allocation6], 0 }
   0x3   :  { %13 = vsyncpa [#allocation9], 0 }
   0x4   :  { %14 = vsyncpa [#allocation7], 0 }
   0x5   :  { %16 = vsyncpa [#allocation7 + $0x1], 0  ;;  %s4842_s24 = smov 0   ;;  %s4844_s25 = smov 0  }
   0x6   :  { %s4846_s26 = smov 0   ;;  %s4848_s27 = smov 0  }
   0x7   :  { %s4850_s28 = smov 0   ;;  %s4852_s29 = smov 0  }
   0x8 LB: > { %6299 = sst [smem:[#allocation20_spill]] %s4778_s26  ;;  %s3953_s30 = sadd.s32 4294967295, %s4790_s29   ;;  %s4790_s29 = sphi %s4852_s29, %s22_s29   ;;  %s4786_s28 = sphi %s4850_s28, %s6322_s28   ;;  %s4782_s27 = sphi %s4848_s27, %s6321_s27   ;;  %s4778_s26 = sphi %s4846_s26, %s6320_s26   ;;  %s4774_s25 = sphi %s4844_s25, %s6324_s25   ;;  %s4770_s24 = sphi %s4842_s24, %s6323_s24  }
   0x9   : > { %6300 = sst [smem:[#allocation21_spill]] %s4786_s28  ;;  %s3954_s8 = sadd.s32 4294967294, %s4790_s29  }
   0xa   : > { %s34_s9 = sadd.s32 1, %s4786_s28  ;;  %s169_s10 = sadd.s32 1, %s4778_s26 }
   0xb   : > { %p36_p0 = scmp.ge.s32.totalorder %s34_s9, 2  ;;  %p179_p1 = scmp.ne.s32.totalorder %s4778_s26, %s4774_s25 }
   0xc   : > { %p180_p2 = scmp.eq.s32.totalorder %s3953_s30, 1  ;;  %p185_p3 = scmp.ne.s32.totalorder %s4774_s25, %s4770_s24 }
   0xd   : > { %s6326_s9 = smov (%p36_p0, %s34_s9), 0  ;;  %p186_p5 = scmp.eq.s32.totalorder %s3954_s8, 1 }
   0xe   : > { %6301 = sst [smem:[#allocation22_spill]] %s6326_s9  ;;  %p4882_p4 = por %p180_p2, %p179_p1 }
   0xf   : > { %s164_s12 = ssub.s32 %s4786_s28, %s6326_s9  ;;  %p3955_p6 = scmp.ge.s32.totalorder %s4790_s29, 1 }
  0x10   : > { %p167_p7 = scmp.eq.s32.totalorder %s164_s12, 0  ;;  %p4889_p8 = por %p186_p5, %p185_p3 }
  0x11   : > { %p193_p9 = scmp.lt.s32.totalorder %s4790_s29, 3  ;;  %p4901_p11 = scmp.eq.s32.totalorder %s3953_s30, 0 }
  0x12   : > { %s6303_s13 = scalar_select %p4889_p8, 1, 0 }
  0x13   : > { %s4895_s14 = scalar_select %p167_p7, %s4778_s26, %s169_s10  }
  0x14   : > { %6304 = sst [smem:[#allocation23_spill]] %s6303_s13  ;;  %p4897_p10 = pnand %p3955_p6, %p193_p9 }
  0x15   : > { %6305 = sst [smem:[#allocation24_spill]] %s4895_s14  ;;  %s4792_s20 = smov [#allocation8]  }
  0x16   : > { %s6308_s3 = sld [smem:[#allocation25_spill]]  ;;  %p4465_p12 = pneg %p4897_p10 }
  0x17   : > { %s223_s21 = sshll.u32 %s4792_s20, 4  ;;  %s4793_s23 = smov 128   ;;  %s224_s21 = int_to_ptr.vmem [resolvable:$true] %s223_s21 }
  0x18   : > { %p4912_p13 = pnand %p4901_p11, %p4465_p12  ;;  %s4794_s30 = smov 8  }
  0x19   : > { %s204_s12 = sshll.u32 %s6287_s1, 4  ;;  %s4795_s17 = smov [#allocation5]   ;;  %s205_s12 = int_to_ptr.hbm [resolvable:$true] %s204_s12 }
  0x1a   : > { %s206_s18 = sshll.u32 %s4795_s17, 4  ;;  %s238_s9 = sshll.u32 %s6291_s5, 4  ;;  %s207_s18 = int_to_ptr.vmem [resolvable:$true] %s206_s18  ;;  %s239_s9 = int_to_ptr.hbm [resolvable:$true] %s238_s9 }
  0x1b   : > { %s4796_s28 = smov 64   ;;  %s4797_s14 = smov 4  }
  0x1c   : > { %s221_s19 = sshll.u32 %s6308_s3, 4  ;;  %s4798_s26 = smov [#allocation10]   ;;  %s222_s19 = int_to_ptr.hbm [resolvable:$true] %s221_s19 }
  0x1d   : > { %4471 = dma.hbm_to_vmem [thread:$0]  (!%p4912_p13), %s222_s19, 256, %s224_s21, [#allocation9], %s4793_s23, %s4793_s23, %s4794_s30  }
  0x1e   : > { %4468 = dma.hbm_to_vmem [thread:$0]  (!%p4912_p13), %s205_s12, 1024, %s207_s18, [#allocation6], %s4796_s28, %s4796_s28, %s4797_s14  }
  0x1f   : > { %s240_s13 = sshll.u32 %s4798_s26, 4  ;;  %259 = sbr.rel (%p4897_p10) target bundleno = 870 (0x366), region = 44  ;;  %s241_s13 = int_to_ptr.vmem [resolvable:$true] %s240_s13 }
  0x20   : > { %4474 = dma.hbm_to_vmem [thread:$0]  (!%p4912_p13), %s239_s9, 1024, %s241_s13, [#allocation9], %s4796_s28, %s4796_s28, %s4797_s14  }
  0x24   : > { %4755 = dma.done.wait (%p4901_p11), [#allocation6], 1024  }
  0x25   : > { %4757 = vsyncadd (%p4901_p11), [#allocation6], 4294966272 }
  0x26   : > { %4759 = dma.done.wait (%p4901_p11), [#allocation9], 1280  }
  0x27   : > { %4761 = vsyncadd (%p4901_p11), [#allocation9], 4294966016  ;;  %s292_s3 = sand.u32 1, %s4774_s25   ;;  %s4107_s26 = smul.u32 144, %s4782_s27  ;;  %vm316_vm0 = vcmask 1040384  }
  0x28   : > { %s4942_s28 = sshll.u32 %s292_s3, 7  ;;  %vm317_vm1 = vsmask.f32 256  ;;  %s4799_s19 = smov [#allocation2]  }
  0x29   : > { %s302_s14 = scalar_lea.hbm %s6286_s0, %s4107_s26  ;;  %s312_s21 = sshll.u32 %s4799_s19, 4  ;;  %s313_s21 = int_to_ptr.vmem [resolvable:$true] %s312_s21 }
  0x2a   : > { %s310_s15 = sshll.u32 %s302_s14, 4  ;;  %s4682_s8 = scalar_lea.hbm %s6286_s0, 288  ;;  %s311_s15 = int_to_ptr.hbm [resolvable:$true] %s310_s15 }
  0x2b   : > { %s4678_s16 = sshra.s32 %s311_s15, 4  ;;  %s4679_s16 = int_to_ptr.hbm [resolvable:$true] %s4678_s16 }
  0x2c   : > { %s4680_s22 = scalar_lea.hbm %s4679_s16, 144  ;;  %p4683_p1 = scmp.lt.s32.totalorder %s4679_s16, %s6286_s0 }
  0x2d   : > { %p4681_p0 = scmp.ne.s32.totalorder %s4679_s16, %s4680_s22  ;;  %p4684_p2 = scmp.lt.s32.totalorder %s4682_s8, %s4680_s22 }
  0x2f   : > { %p4685_p3 = por %p4684_p2, %p4683_p1 }
  0x31   : > { %p4686_p5 = pnand %p4685_p3, %p4681_p0 }
  0x33   : > { %4689 = shalt.err (!%p4686_p5)  }
  0x34   : > { %315 = dma.hbm_to_vmem [thread:$0]  %s311_s15, 2304, %s313_s21, [#allocation4]  ;;  %vm4955_vm2 = vmand %vm316_vm0, %vm317_vm1  ;;  %v319_v1 = vld [vmem:[#allocation3] sm:$0x1]  ;;  %v322_v2 = vld [vmem:[#allocation3 + $0xc] sm:$0x1] }
  0x35   : > { %v325_v3 = vld [vmem:[#allocation3 + $0x18] sm:$0x1]  ;;  %v320_v4 = vsel %vm4955_vm2, 0, %v319_v1  ;;  %v323_v5 = vsel %vm4955_vm2, 0, %v322_v2  ;;  %v328_v7 = vld [vmem:[#allocation3 + $0x24] sm:$0x1] }
  0x36   : > { %v326_v6 = vsel %vm4955_vm2, 0, %v325_v3  ;;  %321 = vst [vmem:[#allocation3] sm:$0x1] %v320_v4  ;;  %v329_v8 = vsel %vm4955_vm2, 0, %v328_v7  ;;  %v331_v9 = vld [vmem:[#allocation3 + $0x30] sm:$0x1] }
  0x37   : > { %324 = vst [vmem:[#allocation3 + $0xc] sm:$0x1] %v323_v5  ;;  %v332_v10 = vsel %vm4955_vm2, 0, %v331_v9  ;;  %v334_v11 = vld [vmem:[#allocation3 + $0x3c] sm:$0x1]  ;;  %s5038_s17 = scalar_lea.vmem [#allocation11], %s4942_s28 }
  0x38   : > { %vm373_vm3 = vsmask.f32 7938  ;;  %327 = vst [vmem:[#allocation3 + $0x18] sm:$0x1] %v326_v6  ;;  %v335_v12 = vsel %vm4955_vm2, 0, %v334_v11 }
  0x39   : > { %v337_v13 = vld [vmem:[#allocation3 + $0x48] sm:$0x1]  ;;  %330 = vst [vmem:[#allocation3 + $0x24] sm:$0x1] %v329_v8  ;;  %v340_v15 = vld [vmem:[#allocation3 + $0x54] sm:$0x1]  ;;  %vm4993_vm4 = vmand %vm316_vm0, %vm373_vm3 }
  0x3a   : > { %v338_v14 = vsel %vm4955_vm2, 0, %v337_v13  ;;  %333 = vst [vmem:[#allocation3 + $0x30] sm:$0x1] %v332_v10  ;;  %v341_v16 = vsel %vm4955_vm2, 0, %v340_v15  ;;  %v343_v17 = vld [vmem:[#allocation3 + $0x60] sm:$0x1] }
  0x3b   : > { %336 = vst [vmem:[#allocation3 + $0x3c] sm:$0x1] %v335_v12  ;;  %v344_v18 = vsel %vm4955_vm2, 0, %v343_v17  ;;  %v346_v19 = vld [vmem:[#allocation3 + $0x6c] sm:$0x1] }
  0x3c   : > { %339 = vst [vmem:[#allocation3 + $0x48] sm:$0x1] %v338_v14  ;;  %v347_v20 = vsel %vm4955_vm2, 0, %v346_v19  ;;  %v349_v21 = vld [vmem:[#allocation3 + $0x78] sm:$0x1] }
  0x3d   : > { %342 = vst [vmem:[#allocation3 + $0x54] sm:$0x1] %v341_v16  ;;  %v350_v22 = vsel %vm4955_vm2, 0, %v349_v21  ;;  %v352_v23 = vld [vmem:[#allocation3 + $0x84] sm:$0x1] }
  0x3e   : > { %345 = vst [vmem:[#allocation3 + $0x60] sm:$0x1] %v344_v18  ;;  %v353_v24 = vsel %vm4955_vm2, 0, %v352_v23  ;;  %v355_v25 = vld [vmem:[#allocation3 + $0x90] sm:$0x1] }
  0x3f   : > { %348 = vst [vmem:[#allocation3 + $0x6c] sm:$0x1] %v347_v20  ;;  %v356_v26 = vsel %vm4955_vm2, 0, %v355_v25  ;;  %v358_v27 = vld [vmem:[#allocation3 + $0x9c] sm:$0x1] }
  0x40   : > { %351 = vst [vmem:[#allocation3 + $0x78] sm:$0x1] %v350_v22  ;;  %v359_v28 = vsel %vm4955_vm2, 0, %v358_v27  ;;  %v361_v29 = vld [vmem:[#allocation3 + $0xa8] sm:$0x1] }
  0x41   : > { %354 = vst [vmem:[#allocation3 + $0x84] sm:$0x1] %v353_v24  ;;  %v362_v30 = vsel %vm4955_vm2, 0, %v361_v29  ;;  %v364_v31 = vld [vmem:[#allocation3 + $0xb4] sm:$0x1] }
  0x42   : > { %357 = vst [vmem:[#allocation3 + $0x90] sm:$0x1] %v356_v26  ;;  %v365_v32 = vsel %vm4955_vm2, 0, %v364_v31  ;;  %v367_v33 = vld [vmem:[#allocation3 + $0xc0] sm:$0x1] }
  0x43   : > { %360 = vst [vmem:[#allocation3 + $0x9c] sm:$0x1] %v359_v28  ;;  %v368_v35 = vsel %vm4955_vm2, 0, %v367_v33  ;;  %v370_v36 = vld [vmem:[#allocation3 + $0xcc] sm:$0x1] }
  0x44   : > { %363 = vst [vmem:[#allocation3 + $0xa8] sm:$0x1] %v362_v30  ;;  %v371_v37 = vsel %vm4955_vm2, 0, %v370_v36  ;;  %v375_v38 = vld [vmem:[#allocation3 + $0x8] sm:$0x1] }
  0x45   : > { %366 = vst [vmem:[#allocation3 + $0xb4] sm:$0x1] %v365_v32  ;;  %v376_v39 = vsel %vm4993_vm4, 0, %v375_v38  ;;  %v378_v40 = vld [vmem:[#allocation3 + $0x14] sm:$0x1] }
  0x46   : > { %369 = vst [vmem:[#allocation3 + $0xc0] sm:$0x1] %v368_v35  ;;  %v379_v41 = vsel %vm4993_vm4, 0, %v378_v40  ;;  %v381_v42 = vld [vmem:[#allocation3 + $0x20] sm:$0x1] }
  0x47   : > { %372 = vst [vmem:[#allocation3 + $0xcc] sm:$0x1] %v371_v37  ;;  %v382_v43 = vsel %vm4993_vm4, 0, %v381_v42  ;;  %v384_v44 = vld [vmem:[#allocation3 + $0x2c] sm:$0x1] }
  0x48   : > { %377 = vst [vmem:[#allocation3 + $0x8] sm:$0x1] %v376_v39  ;;  %v385_v45 = vsel %vm4993_vm4, 0, %v384_v44  ;;  %v387_v46 = vld [vmem:[#allocation3 + $0x38] sm:$0x1] }
  0x49   : > { %380 = vst [vmem:[#allocation3 + $0x14] sm:$0x1] %v379_v41  ;;  %v388_v47 = vsel %vm4993_vm4, 0, %v387_v46  ;;  %v390_v48 = vld [vmem:[#allocation3 + $0x44] sm:$0x1] }
  0x4a   : > { %383 = vst [vmem:[#allocation3 + $0x20] sm:$0x1] %v382_v43  ;;  %v391_v49 = vsel %vm4993_vm4, 0, %v390_v48  ;;  %v393_v50 = vld [vmem:[#allocation3 + $0x50] sm:$0x1] }
  0x4b   : > { %386 = vst [vmem:[#allocation3 + $0x2c] sm:$0x1] %v385_v45  ;;  %v394_v51 = vsel %vm4993_vm4, 0, %v393_v50  ;;  %v396_v52 = vld [vmem:[#allocation3 + $0x5c] sm:$0x1] }
  0x4c   : > { %389 = vst [vmem:[#allocation3 + $0x38] sm:$0x1] %v388_v47  ;;  %v397_v53 = vsel %vm4993_vm4, 0, %v396_v52  ;;  %v399_v54 = vld [vmem:[#allocation3 + $0x68] sm:$0x1] }
  0x4d   : > { %392 = vst [vmem:[#allocation3 + $0x44] sm:$0x1] %v391_v49  ;;  %v400_v55 = vsel %vm4993_vm4, 0, %v399_v54  ;;  %v402_v56 = vld [vmem:[#allocation3 + $0x74] sm:$0x1] }
  0x4e   : > { %395 = vst [vmem:[#allocation3 + $0x50] sm:$0x1] %v394_v51  ;;  %v403_v57 = vsel %vm4993_vm4, 0, %v402_v56  ;;  %v405_v58 = vld [vmem:[#allocation3 + $0x80] sm:$0x1] }
  0x4f   : > { %398 = vst [vmem:[#allocation3 + $0x5c] sm:$0x1] %v397_v53  ;;  %v406_v59 = vsel %vm4993_vm4, 0, %v405_v58  ;;  %v408_v60 = vld [vmem:[#allocation3 + $0x8c] sm:$0x1] }
  0x50   : > { %401 = vst [vmem:[#allocation3 + $0x68] sm:$0x1] %v400_v55  ;;  %v409_v61 = vsel %vm4993_vm4, 0, %v408_v60  ;;  %v411_v62 = vld [vmem:[#allocation3 + $0x98] sm:$0x1] }
  0x51   : > { %404 = vst [vmem:[#allocation3 + $0x74] sm:$0x1] %v403_v57  ;;  %v412_v63 = vsel %vm4993_vm4, 0, %v411_v62  ;;  %v414_v1 = vld [vmem:[#allocation3 + $0xa4] sm:$0x1] }
  0x52   : > { %407 = vst [vmem:[#allocation3 + $0x80] sm:$0x1] %v406_v59  ;;  %v415_v2 = vsel %vm4993_vm4, 0, %v414_v1  ;;  %v417_v3 = vld [vmem:[#allocation3 + $0xb0] sm:$0x1] }
  0x53   : > { %410 = vst [vmem:[#allocation3 + $0x8c] sm:$0x1] %v409_v61  ;;  %v418_v4 = vsel %vm4993_vm4, 0, %v417_v3  ;;  %v420_v5 = vld [vmem:[#allocation3 + $0xbc] sm:$0x1] }
  0x54   : > { %413 = vst [vmem:[#allocation3 + $0x98] sm:$0x1] %v412_v63  ;;  %v421_v6 = vsel %vm4993_vm4, 0, %v420_v5  ;;  %v423_v7 = vld [vmem:[#allocation3 + $0xc8] sm:$0x1] }
  0x55   : > { %416 = vst [vmem:[#allocation3 + $0xa4] sm:$0x1] %v415_v2  ;;  %v424_v8 = vsel %vm4993_vm4, 0, %v423_v7  ;;  %v426_v9 = vld [vmem:[#allocation3 + $0xd4] sm:$0x1] }
  0x56   : > { %419 = vst [vmem:[#allocation3 + $0xb0] sm:$0x1] %v418_v4  ;;  %v427_v10 = vsel %vm4993_vm4, 0, %v426_v9 }
  0x57   : > { %422 = vst [vmem:[#allocation3 + $0xbc] sm:$0x1] %v421_v6 }
  0x58   : > { %425 = vst [vmem:[#allocation3 + $0xc8] sm:$0x1] %v424_v8 }
  0x59   : > { %428 = vst [vmem:[#allocation3 + $0xd4] sm:$0x1] %v427_v10 }
  0x5a   : > { %4762 = dma.done.wait [#allocation4], 2304 }
  0x5b   : > { %4763 = vsyncadd [#allocation4], 4294964992  ;;  %v4133_v11 = vld [vmem:[#allocation5 + $0x38] sm:$0xff]  ;;  %v4132_v12 = vld [vmem:[#allocation5 + $0x30] sm:$0xff]  ;;  %vm1215_vm5 = vcmask 1043456   ;;  %vm1603_vm9 = vcmask 1046528  }
  0x5c   : > { %646 = vmatpush.bf16.msra.mxu0 %v4133_v11  ;;  %4435 = vmatpush.bf16.msra.mxu2 %v4133_v11  ;;  %v4131_v13 = vld [vmem:[#allocation5 + $0x28] sm:$0xff]  ;;  %v4130_v14 = vld [vmem:[#allocation5 + $0x20] sm:$0xff]  ;;  %v4129_v15 = vld [vmem:[#allocation5 + $0x18] sm:$0xff]  ;;  %vm853_vm7 = vsmask.f32 4368  ;;  %vm1846_vm10 = vcmask 1045504  }
  0x5d   : > { %v4128_v16 = vld [vmem:[#allocation5 + $0x10] sm:$0xff]  ;;  %v4127_v17 = vld [vmem:[#allocation5 + $0x8] sm:$0xff]  ;;  %v4126_v18 = vld [vmem:[#allocation5] sm:$0xff]  ;;  %s4142_s12 = sshll.u32 %s4782_s27, 7  ;;  %s3847_s28 = sshll.u32 %s5038_s17, 4  ;;  %s3848_s28 = int_to_ptr.vmem [resolvable:$true] %s3847_s28 }
  0x5e   : > { %v4108_v19 = vld [vmem:[#allocation2] sm:$0xff]  ;;  %v4109_v21 = vld [vmem:[#allocation2 + $0x8] sm:$0xff]  ;;  %v4110_v23 = vld [vmem:[#allocation2 + $0x10] sm:$0xff]  ;;  %s3846_s26 = scalar_lea.hbm %s6293_s7, %s4142_s12  ;;  %s3832_s27 = scalar_lea.sflag [#allocation7], %s292_s3 }
  0x5f   : > { %v4116_v20 = vld [vmem:[#allocation2 + $0x40] sm:$0xff]  ;;  %v4117_v22 = vld [vmem:[#allocation2 + $0x48] sm:$0xff]  ;;  %v4118_v24 = vld [vmem:[#allocation2 + $0x50] sm:$0xff]  ;;  %s3849_s9 = sshll.u32 %s3846_s26, 4  ;;  %s4722_s21 = scalar_lea.hbm %s6293_s7, 256  ;;  %s3850_s9 = int_to_ptr.hbm [resolvable:$true] %s3849_s9 }
  0x60   : > { %647 = vmatpush.bf16.msra.mxu0 %v4132_v12  ;;  %4436 = vmatpush.bf16.msra.mxu2 %v4132_v12  ;;  %v4111_v25 = vld [vmem:[#allocation2 + $0x18] sm:$0xff]  ;;  %v4112_v27 = vld [vmem:[#allocation2 + $0x20] sm:$0xff]  ;;  %v4113_v29 = vld [vmem:[#allocation2 + $0x28] sm:$0xff]  ;;  %s4716_s13 = sshra.s32 %s3850_s9, 4  ;;  %s4717_s13 = int_to_ptr.hbm [resolvable:$true] %s4716_s13 }
  0x61   : > { %v4119_v26 = vld [vmem:[#allocation2 + $0x58] sm:$0xff]  ;;  %v4120_v28 = vld [vmem:[#allocation2 + $0x60] sm:$0xff]  ;;  %v4121_v30 = vld [vmem:[#allocation2 + $0x68] sm:$0xff]  ;;  %s4718_s14 = scalar_lea.hbm %s4717_s13, 128  ;;  %p4723_p10 = scmp.lt.s32.totalorder %s4717_s13, %s6293_s7 }
  0x62   : > { %v4114_v31 = vld [vmem:[#allocation2 + $0x30] sm:$0xff]  ;;  %v4115_v33 = vld [vmem:[#allocation2 + $0x38] sm:$0xff]  ;;  %v5043_v35 = vld [vmem:[%s6288_s2] ss:$0 sm:$0xff]  ;;  %p4719_p6 = scmp.ne.s32.totalorder %s4717_s13, %s4718_s14  ;;  %p4724_p11 = scmp.lt.s32.totalorder %s4722_s21, %s4718_s14 }
  0x63   : > { %v4122_v32 = vld [vmem:[#allocation2 + $0x70] sm:$0xff]  ;;  %v4123_v34 = vld [vmem:[#allocation2 + $0x78] sm:$0xff]  ;;  %v4124_v36 = vld [vmem:[#allocation2 + $0x80] sm:$0xff] }
  0x64   : > { %648 = vmatpush.bf16.msra.mxu0 %v4131_v13  ;;  %4437 = vmatpush.bf16.msra.mxu2 %v4131_v13  ;;  %vm5049_vm6 = vmand %vm1215_vm5, %vm373_vm3  ;;  %v1217_v53 = vld [vmem:[#allocation3] sm:$0xf]  ;;  %v4125_v62 = vld [vmem:[#allocation2 + $0x88] sm:$0xff]  ;;  %p4720_p7 = pnand %p4719_p6, %p4882_p4  ;;  %p4725_p12 = por %p4724_p11, %p4723_p10 }
  0x65   : > { %v1273_v5 = vld [vmem:[#allocation3 + $0x60] sm:$0xf]  ;;  %vm5058_vm8 = vmor %vm317_vm1, %vm853_vm7  ;;  %v1221_v13 = vld [vmem:[#allocation3 + $0x8] sm:$0x1] }
  0x66   : > { %p4721_p9 = pneg %p4720_p7 }
  0x68   : > { %649 = vmatpush.bf16.msra.mxu0 %v4130_v14  ;;  %4438 = vmatpush.bf16.msra.mxu2 %v4130_v14  ;;  %p4726_p13 = pnand %p4725_p12, %p4721_p9 }
  0x6c   : > { %650 = vmatpush.bf16.msra.mxu0 %v4129_v15  ;;  %4439 = vmatpush.bf16.msra.mxu2 %v4129_v15 }
  0x70   : > { %651 = vmatpush.bf16.msra.mxu0 %v4128_v16  ;;  %4440 = vmatpush.bf16.msra.mxu2 %v4128_v16 }
  0x74   : > { %652 = vmatpush.bf16.msra.mxu0 %v4127_v17  ;;  %4441 = vmatpush.bf16.msra.mxu2 %v4127_v17 }
  0x78   : > { %653 = vmatpush.bf16.msra.mxu0 %v4126_v18  ;;  %4442 = vmatpush.bf16.msra.mxu2 %v4126_v18 }
  0x7b   : > { %654 = vmatmul.bf16.vlgmr.msra.gmra.mxu0 %v4108_v19  ;;  %694 = vmatmul.bf16.vlgmr.msra.gmra.mxu2 %v4116_v20 }
  0x8b   : > { %659 = vmatmul.bf16.gmra.mxu0 %v4109_v21  ;;  %699 = vmatmul.bf16.gmra.mxu2 %v4117_v22 }
  0x9b   : > { %664 = vmatmul.bf16.gmra.mxu0 %v4110_v23  ;;  %704 = vmatmul.bf16.gmra.mxu2 %v4118_v24 }
  0xab   : > { %669 = vmatmul.bf16.gmra.mxu0 %v4111_v25  ;;  %709 = vmatmul.bf16.gmra.mxu2 %v4119_v26 }
  0xbb   : > { %674 = vmatmul.bf16.gmra.mxu0 %v4112_v27  ;;  %714 = vmatmul.bf16.gmra.mxu2 %v4120_v28 }
  0xcb   : > { %679 = vmatmul.bf16.gmra.mxu0 %v4113_v29  ;;  %719 = vmatmul.bf16.gmra.mxu2 %v4121_v30  ;;  %v4141_v30 = vld [vmem:[#allocation10 + $0x38] sm:$0xff] }
  0xcc   : > { %3581 = vmatpush.bf16.msra.mxu1 %v4141_v30  ;;  %4443 = vmatpush.bf16.msra.mxu3 %v4141_v30 }
  0xdb   : > { %684 = vmatmul.bf16.gmra.mxu0 %v4114_v31  ;;  %724 = vmatmul.bf16.gmra.mxu2 %v4122_v32 }
  0xeb   : > { %689 = vmatmul.bf16.gmra.mxu0 %v4115_v33  ;;  %729 = vmatmul.bf16.gmra.mxu2 %v4123_v34  ;;  %v1277_v33 = vld [vmem:[#allocation3 + $0x68] sm:$0x1] }
  0xf8   : > { %v655_v37 = vpop.f32.mrf.mxu0 }
  0xf9   : > { %v656_v38 = vadd.f32 %v5043_v35, %v655_v37 }
  0xfb   : > { %v745_v39 = vmax.f32 %v656_v38, 0.0  ;;  %734 = vmatmul.bf16.gmra.mxu2 %v4124_v36 }
  0xfd   : > { %v781_v40 = vmin.f32 %v745_v39, 6.0 }
  0xfe   : > { %v695_v41 = vpop.f32.mrf.mxu2 }
  0xff   : > { %v817_v42 = vpack.c.bf16 %v781_v40, %v781_v40  ;;  %v696_v43 = vadd.f32 %v5043_v35, %v695_v41 }
 0x100   : > { %v657_v44 = vpop.f32.mrf.mxu0 }
 0x101   : > { %v856_v45 = vshrl.u32 %v817_v42, 16  ;;  %v761_v46 = vmax.f32 %v696_v43, 0.0  ;;  %v658_v47 = vadd.f32 %v5043_v35, %v657_v44  ;;  %v859_v49 = vshll.u32 %v817_v42, 16  ;;  %v1224_v42 = vld [vmem:[#allocation3 + $0xc] sm:$0xf]  ;;  %v4140_v43 = vld [vmem:[#allocation10 + $0x30] sm:$0xff] }
 0x102   : > { %3582 = vmatpush.bf16.msra.mxu1 %v4140_v43  ;;  %4444 = vmatpush.bf16.msra.mxu3 %v4140_v43 }
 0x103   : > { %v858_v48 = vrot.slane %v856_v45, 7  ;;  %v797_v50 = vmin.f32 %v761_v46, 6.0  ;;  %v746_v51 = vmax.f32 %v658_v47, 0.0 }
 0x105   : > { %v861_v54 = vor.u32 %v859_v49, %v858_v48  ;;  %v833_v55 = vpack.c.bf16 %v797_v50, %v797_v50  ;;  %v782_v56 = vmin.f32 %v746_v51, 6.0  ;;  %v862_v11 = vrot.slane %v858_v48, 4  ;;  %v5077_v50 = vld [vmem:[#allocation8] ss:$0 sm:$0xff]  ;;  %v5079_v51 = vld [vmem:[#allocation8 + $0x1] ss:$0 sm:$0xff] }
 0x106   : > { %v697_v57 = vpop.f32.mrf.mxu2 }
 0x107   : > { %v1218_v58 = vsel %vm5049_vm6, %v861_v54, %v1217_v53  ;;  %v992_v59 = vshrl.u32 %v833_v55, 16  ;;  %v995_v60 = vshll.u32 %v833_v55, 16  ;;  %v818_v61 = vpack.c.bf16 %v782_v56, %v782_v56 }
 0x108   : > { %1219 = vst [vmem:[#allocation3] sm:$0xf] %v1218_v58  ;;  %v698_v63 = vadd.f32 %v5043_v35, %v697_v57  ;;  %v660_v1 = vpop.f32.mrf.mxu0 }
 0x109   : > { %v994_v2 = vrot.slane %v992_v59, 7  ;;  %v864_v3 = vshrl.u32 %v818_v61, 16  ;;  %v661_v4 = vadd.f32 %v5043_v35, %v660_v1  ;;  %v867_v9 = vshll.u32 %v818_v61, 16  ;;  %v1280_v59 = vld [vmem:[#allocation3 + $0x6c] sm:$0xf] }
 0x10a   : > { %v762_v6 = vmax.f32 %v698_v63, 0.0 }
 0x10b   : > { %v997_v7 = vor.u32 %v995_v60, %v994_v2  ;;  %v866_v8 = vrot.slane %v864_v3, 7  ;;  %v747_v10 = vmax.f32 %v661_v4, 0.0  ;;  %739 = vmatmul.bf16.gmra.mxu2 %v4125_v62  ;;  %v998_v39 = vrot.slane %v994_v2, 4  ;;  %v4139_v62 = vld [vmem:[#allocation10 + $0x28] sm:$0xff] }
 0x10c   : > { %v798_v14 = vmin.f32 %v762_v6, 6.0  ;;  %3583 = vmatpush.bf16.msra.mxu1 %v4139_v62  ;;  %4445 = vmatpush.bf16.msra.mxu3 %v4139_v62  ;;  %v4136_v62 = vld [vmem:[#allocation10 + $0x10] sm:$0xff] }
 0x10d   : > { %v1274_v15 = vsel %vm5049_vm6, %v997_v7, %v1273_v5  ;;  %v869_v16 = vor.u32 %v867_v9, %v866_v8  ;;  %v871_v17 = vrot.slane %v866_v8, 4  ;;  %v783_v18 = vmin.f32 %v747_v10, 6.0 }
 0x10e   : > { %1275 = vst [vmem:[#allocation3 + $0x60] sm:$0xf] %v1274_v15  ;;  %v834_v19 = vpack.c.bf16 %v798_v14, %v798_v14  ;;  %v700_v20 = vpop.f32.mrf.mxu2 }
 0x10f   : > { %v870_v21 = vsel %vm5058_vm8, %v862_v11, %v869_v16  ;;  %v1222_v22 = vsel %vm4955_vm2, %v871_v17, %v1221_v13  ;;  %v819_v23 = vpack.c.bf16 %v783_v18, %v783_v18  ;;  %v701_v24 = vadd.f32 %v5043_v35, %v700_v20  ;;  %v5093_v11 = vld [vmem:[#allocation8 + $0x2] ss:$0 sm:$0xff]  ;;  %v1228_v17 = vld [vmem:[#allocation3 + $0x14] sm:$0x1] }
 0x110   : > { %1220 = vst [vmem:[#allocation3 + $0x4] sm:$0xf] %v870_v21  ;;  %v1000_v25 = vshrl.u32 %v834_v19, 16  ;;  %v662_v26 = vpop.f32.mrf.mxu0  ;;  %v1003_v32 = vshll.u32 %v834_v19, 16  ;;  %v4138_v19 = vld [vmem:[#allocation10 + $0x20] sm:$0xff] }
 0x111   : > { %1223 = vst [vmem:[#allocation3 + $0x8] sm:$0x1] %v1222_v22  ;;  %v873_v27 = vshrl.u32 %v819_v23, 16  ;;  %v763_v28 = vmax.f32 %v701_v24, 0.0  ;;  %v663_v29 = vadd.f32 %v5043_v35, %v662_v26  ;;  %v876_v36 = vshll.u32 %v819_v23, 16  ;;  %3584 = vmatpush.bf16.msra.mxu1 %v4138_v19  ;;  %4446 = vmatpush.bf16.msra.mxu3 %v4138_v19 }
 0x112   : > { %v1002_v31 = vrot.slane %v1000_v25, 7 }
 0x113   : > { %v5070_v34 = vrot.slane %v873_v27, 7  ;;  %v799_v37 = vmin.f32 %v763_v28, 6.0  ;;  %v748_v38 = vmax.f32 %v663_v29, 0.0 }
 0x114   : > { %v1005_v40 = vor.u32 %v1003_v32, %v1002_v31  ;;  %v1007_v41 = vrot.slane %v1002_v31, 4 }
 0x115   : > { %v878_v44 = vor.u32 %v876_v36, %v5070_v34  ;;  %v835_v45 = vpack.c.bf16 %v799_v37, %v799_v37  ;;  %v784_v46 = vmin.f32 %v748_v38, 6.0  ;;  %v879_v58 = vrot.slane %v5070_v34, 4 }
 0x116   : > { %v1006_v47 = vsel %vm5058_vm8, %v998_v39, %v1005_v40  ;;  %v1278_v48 = vsel %vm4955_vm2, %v1007_v41, %v1277_v33  ;;  %v702_v49 = vpop.f32.mrf.mxu2 }
 0x117   : > { %1276 = vst [vmem:[#allocation3 + $0x64] sm:$0xf] %v1006_v47  ;;  %v1225_v53 = vsel %vm5049_vm6, %v878_v44, %v1224_v42  ;;  %v1009_v54 = vshrl.u32 %v835_v45, 16  ;;  %v1012_v55 = vshll.u32 %v835_v45, 16  ;;  %v820_v56 = vpack.c.bf16 %v784_v46, %v784_v46  ;;  %v4144_v57 = vld [vmem:[#allocation3] sm:$0xff]  }
 0x118   : > { %1279 = vst [vmem:[#allocation3 + $0x68] sm:$0x1] %v1278_v48  ;;  %v703_v60 = vadd.f32 %v5043_v35, %v702_v49  ;;  %v665_v61 = vpop.f32.mrf.mxu0  ;;  %v4145_v63 = vunpack.c.l.bf16 %v4144_v57  ;;  %v4146_v1 = vunpack.c.h.bf16 %v4144_v57  ;;  %v1345_v7 = vld [vmem:[#allocation3 + $0x8] sm:$0x1]  ;;  %v4137_v46 = vld [vmem:[#allocation10 + $0x18] sm:$0xff] }
 0x119   : > { %1226 = vst [vmem:[#allocation3 + $0xc] sm:$0xf] %v1225_v53  ;;  %v5085_v2 = vrot.slane %v1009_v54, 7  ;;  %v881_v3 = vshrl.u32 %v820_v56, 16  ;;  %v884_v4 = vshll.u32 %v820_v56, 16  ;;  %v666_v5 = vadd.f32 %v5043_v35, %v665_v61  ;;  %3585 = vmatpush.bf16.msra.mxu1 %v4137_v46  ;;  %4447 = vmatpush.bf16.msra.mxu3 %v4137_v46 }
 0x11a   : > { %v764_v6 = vmax.f32 %v703_v60, 0.0  ;;  %v1441_v8 = vmul.f32 %v5077_v50, %v4145_v63  ;;  %v5090_v9 = vmul.f32 %v5077_v50, %v4146_v1  ;;  %v1507_v10 = vmul.f32 %v5079_v51, %v4145_v63  ;;  %v1284_v54 = vld [vmem:[#allocation3 + $0x74] sm:$0x1]  ;;  %v1231_v61 = vld [vmem:[#allocation3 + $0x18] sm:$0xf] }
 0x11b   : > { %v1014_v13 = vor.u32 %v1012_v55, %v5085_v2  ;;  %v1015_v14 = vrot.slane %v5085_v2, 4  ;;  %v883_v15 = vrot.slane %v881_v3, 7  ;;  %v749_v16 = vmax.f32 %v666_v5, 0.0  ;;  %v5144_v46 = vld [vmem:[#allocation8 + $0x4] ss:$0 sm:$0xff] }
 0x11c   : > { %v800_v18 = vmin.f32 %v764_v6, 6.0  ;;  %v1393_v20 = vunpack.c.l.bf16 %v1345_v7  ;;  %v1508_v21 = vmul.f32 %v5079_v51, %v4146_v1  ;;  %v1604_v22 = vrot.slane %v1507_v10, 1 }
 0x11d   : > { %v1281_v23 = vsel %vm5049_vm6, %v1014_v13, %v1280_v59  ;;  %v886_v24 = vor.u32 %v884_v4, %v883_v15  ;;  %v888_v25 = vrot.slane %v883_v15, 4  ;;  %v785_v26 = vmin.f32 %v749_v16, 6.0  ;;  %3586 = vmatpush.bf16.msra.mxu1 %v4136_v62  ;;  %4448 = vmatpush.bf16.msra.mxu3 %v4136_v62 }
 0x11e   : > { %1282 = vst [vmem:[#allocation3 + $0x6c] sm:$0xf] %v1281_v23  ;;  %v836_v27 = vpack.c.bf16 %v800_v18, %v800_v18  ;;  %v705_v28 = vpop.f32.mrf.mxu2  ;;  %v1509_v29 = vmul.f32 %v5079_v51, %v1393_v20  ;;  %v1605_v30 = vrot.slane %v1508_v21, 1  ;;  %v1750_v31 = vmul.f32 %v5093_v11, %v4145_v63  ;;  %v4135_v21 = vld [vmem:[#allocation10 + $0x8] sm:$0xff] }
 0x11f   : > { %v887_v32 = vsel %vm5058_vm8, %v879_v58, %v886_v24  ;;  %v1229_v33 = vsel %vm4955_vm2, %v888_v25, %v1228_v17  ;;  %v821_v34 = vpack.c.bf16 %v785_v26, %v785_v26  ;;  %v706_v36 = vadd.f32 %v5043_v35, %v705_v28 }
 0x120   : > { %1227 = vst [vmem:[#allocation3 + $0x10] sm:$0xf] %v887_v32  ;;  %v1017_v37 = vshrl.u32 %v836_v27, 16  ;;  %v1020_v38 = vshll.u32 %v836_v27, 16  ;;  %v667_v39 = vpop.f32.mrf.mxu0  ;;  %v1606_v40 = vsel %vm1603_vm9, %v1604_v22, %v1605_v30  ;;  %v1751_v41 = vmul.f32 %v5093_v11, %v4146_v1 }
 0x121   : > { %1230 = vst [vmem:[#allocation3 + $0x14] sm:$0x1] %v1229_v33  ;;  %v890_v42 = vshrl.u32 %v821_v34, 16  ;;  %v893_v43 = vshll.u32 %v821_v34, 16  ;;  %v765_v44 = vmax.f32 %v706_v36, 0.0  ;;  %v668_v45 = vadd.f32 %v5043_v35, %v667_v39  ;;  %3587 = vmatpush.bf16.msra.mxu1 %v4135_v21  ;;  %4449 = vmatpush.bf16.msra.mxu3 %v4135_v21 }
 0x122   : > { %v1019_v47 = vrot.slane %v1017_v37, 7  ;;  %v1607_v48 = vrot.slane %v1509_v29, 1  ;;  %v1716_v49 = vadd.f32 %v1606_v40, %v1441_v8  ;;  %v1752_v53 = vmul.f32 %v5093_v11, %v1393_v20  ;;  %v1287_v29 = vld [vmem:[#allocation3 + $0x78] sm:$0xf]  ;;  %v1235_v40 = vld [vmem:[#allocation3 + $0x20] sm:$0x1] }
 0x123   : > { %v5111_v55 = vrot.slane %v890_v42, 7  ;;  %v801_v56 = vmin.f32 %v765_v44, 6.0  ;;  %v750_v57 = vmax.f32 %v668_v45, 0.0  ;;  %v1847_v58 = vrot.slane %v1750_v31, 2  ;;  %v4134_v42 = vld [vmem:[#allocation10] sm:$0xff] }
 0x124   : > { %v1022_v59 = vor.u32 %v1020_v38, %v1019_v47  ;;  %v1024_v60 = vrot.slane %v1019_v47, 4  ;;  %v1608_v63 = vsel %vm1603_vm9, %v1605_v30, %v1607_v48  ;;  %v1848_v1 = vrot.slane %v1751_v41, 2 }
 0x125   : > { %v895_v2 = vor.u32 %v893_v43, %v5111_v55  ;;  %v896_v3 = vrot.slane %v5111_v55, 4  ;;  %v837_v4 = vpack.c.bf16 %v801_v56, %v801_v56  ;;  %v786_v5 = vmin.f32 %v750_v57, 6.0  ;;  %3588 = vmatpush.bf16.msra.mxu1 %v4134_v42  ;;  %4450 = vmatpush.bf16.msra.mxu3 %v4134_v42 }
 0x126   : > { %v1023_v6 = vsel %vm5058_vm8, %v1015_v14, %v1022_v59  ;;  %v1285_v7 = vsel %vm4955_vm2, %v1024_v60, %v1284_v54  ;;  %v707_v8 = vpop.f32.mrf.mxu2  ;;  %v1717_v10 = vadd.f32 %v1608_v63, %v5090_v9  ;;  %v1849_v13 = vsel %vm1846_vm10, %v1847_v58, %v1848_v1  ;;  %v5127_v9 = vld [vmem:[#allocation8 + $0x3] ss:$0 sm:$0xff] }
 0x127   : > { %1283 = vst [vmem:[#allocation3 + $0x70] sm:$0xf] %v1023_v6  ;;  %v1232_v15 = vsel %vm5049_vm6, %v895_v2, %v1231_v61  ;;  %v1026_v16 = vshrl.u32 %v837_v4, 16  ;;  %v1029_v17 = vshll.u32 %v837_v4, 16  ;;  %v822_v18 = vpack.c.bf16 %v786_v5, %v786_v5  ;;  %v1992_v19 = vld [vmem:[#allocation3 + $0xc] sm:$0xff]  }
 0x128   : > { %1286 = vst [vmem:[#allocation3 + $0x74] sm:$0x1] %v1285_v7  ;;  %v708_v14 = vadd.f32 %v5043_v35, %v707_v8  ;;  %v670_v20 = vpop.f32.mrf.mxu0  ;;  %v1850_v22 = vrot.slane %v1752_v53, 2  ;;  %v1959_v23 = vadd.f32 %v1849_v13, %v1716_v49  ;;  %v5125_v24 = vunpack.c.l.bf16 %v1992_v19  ;;  %v5133_v32 = vld [vmem:[#allocation3 + $0x14] sm:$0x1] }
 0x129   : > { %1233 = vst [vmem:[#allocation3 + $0x18] sm:$0xf] %v1232_v15  ;;  %v5129_v25 = vrot.slane %v1026_v16, 7  ;;  %v898_v26 = vshrl.u32 %v822_v18, 16  ;;  %v901_v27 = vshll.u32 %v822_v18, 16  ;;  %v671_v28 = vadd.f32 %v5043_v35, %v670_v20 }
 0x12a   : > { %v766_v30 = vmax.f32 %v708_v14, 0.0  ;;  %v1851_v31 = vsel %vm1846_vm10, %v1848_v1, %v1850_v22  ;;  %v5135_v33 = vunpack.c.h.bf16 %v1992_v19  ;;  %v2090_v34 = vmul.f32 %v5127_v9, %v5125_v24  ;;  %v5160_v6 = vld [vmem:[#allocation8 + $0x5] ss:$0 sm:$0xff]  ;;  %v1291_v18 = vld [vmem:[#allocation3 + $0x80] sm:$0x1] }
 0x12b   : > { %v1031_v36 = vor.u32 %v1029_v17, %v5129_v25  ;;  %v1032_v37 = vrot.slane %v5129_v25, 4  ;;  %v900_v38 = vrot.slane %v898_v26, 7  ;;  %v751_v39 = vmax.f32 %v671_v28, 0.0  ;;  %v1238_v25 = vld [vmem:[#allocation3 + $0x24] sm:$0xf] }
 0x12c   : > { %v802_v41 = vmin.f32 %v766_v30, 6.0  ;;  %v1960_v43 = vadd.f32 %v1851_v31, %v1717_v10  ;;  %v2042_v44 = vunpack.c.l.bf16 %v5133_v32  ;;  %v2091_v45 = vmul.f32 %v5127_v9, %v5135_v33 }
 0x12d   : > { %v1288_v47 = vsel %vm5049_vm6, %v1031_v36, %v1287_v29  ;;  %v903_v48 = vor.u32 %v901_v27, %v900_v38  ;;  %v905_v49 = vrot.slane %v900_v38, 4  ;;  %v787_v53 = vmin.f32 %v751_v39, 6.0 }
 0x12e   : > { %1289 = vst [vmem:[#allocation3 + $0x78] sm:$0xf] %v1288_v47  ;;  %v838_v54 = vpack.c.bf16 %v802_v41, %v802_v41  ;;  %v710_v55 = vpop.f32.mrf.mxu2  ;;  %v2122_v56 = vadd.f32 %v2090_v34, %v1959_v23  ;;  %v2123_v57 = vadd.f32 %v2091_v45, %v1960_v43  ;;  %v2156_v58 = vmul.f32 %v5144_v46, %v5125_v24 }
 0x12f   : > { %v904_v59 = vsel %vm5058_vm8, %v896_v3, %v903_v48  ;;  %v1236_v60 = vsel %vm4955_vm2, %v905_v49, %v1235_v40  ;;  %v823_v61 = vpack.c.bf16 %v787_v53, %v787_v53  ;;  %v711_v62 = vadd.f32 %v5043_v35, %v710_v55 }
 0x130   : > { %1234 = vst [vmem:[#allocation3 + $0x1c] sm:$0xf] %v904_v59  ;;  %v1034_v63 = vshrl.u32 %v838_v54, 16  ;;  %v1037_v1 = vshll.u32 %v838_v54, 16  ;;  %v672_v2 = vpop.f32.mrf.mxu0  ;;  %v2157_v4 = vmul.f32 %v5144_v46, %v5135_v33  ;;  %v2158_v5 = vmul.f32 %v5144_v46, %v2042_v44 }
 0x131   : > { %1237 = vst [vmem:[#allocation3 + $0x20] sm:$0x1] %v1236_v60  ;;  %v907_v3 = vshrl.u32 %v823_v61, 16  ;;  %v910_v7 = vshll.u32 %v823_v61, 16  ;;  %v767_v8 = vmax.f32 %v711_v62, 0.0  ;;  %v673_v10 = vadd.f32 %v5043_v35, %v672_v2 }
 0x132   : > { %v1036_v13 = vrot.slane %v1034_v63, 7  ;;  %v2252_v15 = vrot.slane %v2156_v58, 1  ;;  %v2253_v16 = vrot.slane %v2157_v4, 1  ;;  %v2255_v17 = vrot.slane %v2158_v5, 1  ;;  %v1294_v58 = vld [vmem:[#allocation3 + $0x84] sm:$0xf] }
 0x133   : > { %v5163_v19 = vrot.slane %v907_v3, 7  ;;  %v803_v14 = vmin.f32 %v767_v8, 6.0  ;;  %v752_v20 = vmax.f32 %v673_v10, 0.0  ;;  %v2398_v21 = vmul.f32 %v5160_v6, %v5125_v24  ;;  %v1242_v2 = vld [vmem:[#allocation3 + $0x2c] sm:$0x1] }
 0x134   : > { %v1039_v22 = vor.u32 %v1037_v1, %v1036_v13  ;;  %v1041_v23 = vrot.slane %v1036_v13, 4  ;;  %v2254_v26 = vsel %vm1603_vm9, %v2252_v15, %v2253_v16  ;;  %v2256_v27 = vsel %vm1603_vm9, %v2253_v16, %v2255_v17 }
 0x135   : > { %v912_v28 = vor.u32 %v910_v7, %v5163_v19  ;;  %v913_v29 = vrot.slane %v5163_v19, 4  ;;  %v839_v30 = vpack.c.bf16 %v803_v14, %v803_v14  ;;  %v788_v31 = vmin.f32 %v752_v20, 6.0  ;;  %v5199_v20 = vld [vmem:[#allocation8 + $0x6] ss:$0 sm:$0xff] }
 0x136   : > { %v1040_v34 = vsel %vm5058_vm8, %v1032_v37, %v1039_v22  ;;  %v1292_v36 = vsel %vm4955_vm2, %v1041_v23, %v1291_v18  ;;  %v712_v24 = vpop.f32.mrf.mxu2  ;;  %v2364_v38 = vadd.f32 %v2254_v26, %v2122_v56  ;;  %v2365_v39 = vadd.f32 %v2256_v27, %v2123_v57 }
 0x137   : > { %1290 = vst [vmem:[#allocation3 + $0x7c] sm:$0xf] %v1040_v34  ;;  %v1239_v40 = vsel %vm5049_vm6, %v912_v28, %v1238_v25  ;;  %v1043_v41 = vshrl.u32 %v839_v30, 16  ;;  %v1046_v42 = vshll.u32 %v839_v30, 16  ;;  %v824_v43 = vpack.c.bf16 %v788_v31, %v788_v31  ;;  %v4208_v45 = vld [vmem:[#allocation3 + $0x18] sm:$0xff]  }
 0x138   : > { %1293 = vst [vmem:[#allocation3 + $0x80] sm:$0x1] %v1292_v36  ;;  %v713_v47 = vadd.f32 %v5043_v35, %v712_v24  ;;  %v675_v48 = vpop.f32.mrf.mxu0  ;;  %v2399_v37 = vmul.f32 %v5160_v6, %v5135_v33  ;;  %v2400_v49 = vmul.f32 %v5160_v6, %v2042_v44  ;;  %v2494_v53 = vrot.slane %v2398_v21, 2  ;;  %v5190_v1 = vld [vmem:[#allocation3 + $0x20] sm:$0x1] }
 0x139   : > { %1240 = vst [vmem:[#allocation3 + $0x24] sm:$0xf] %v1239_v40  ;;  %v5183_v54 = vrot.slane %v1043_v41, 7  ;;  %v915_v55 = vshrl.u32 %v824_v43, 16  ;;  %v918_v56 = vshll.u32 %v824_v43, 16  ;;  %v676_v57 = vadd.f32 %v5043_v35, %v675_v48 }
 0x13a   : > { %v768_v59 = vmax.f32 %v713_v47, 0.0  ;;  %v2495_v60 = vrot.slane %v2399_v37, 2  ;;  %v2497_v61 = vrot.slane %v2400_v49, 2  ;;  %v5186_v62 = vunpack.c.l.bf16 %v4208_v45  ;;  %v5210_v34 = vld [vmem:[#allocation8 + $0x7] ss:$0 sm:$0xff] }
 0x13b   : > { %v1048_v33 = vor.u32 %v1046_v42, %v5183_v54  ;;  %v1049_v32 = vrot.slane %v5183_v54, 4  ;;  %v917_v63 = vrot.slane %v915_v55, 7  ;;  %v753_v44 = vmax.f32 %v676_v57, 0.0  ;;  %v1298_v43 = vld [vmem:[#allocation3 + $0x8c] sm:$0x1] }
 0x13c   : > { %v804_v4 = vmin.f32 %v768_v59, 6.0  ;;  %v2496_v5 = vsel %vm1846_vm10, %v2494_v53, %v2495_v60  ;;  %v2498_v3 = vsel %vm1846_vm10, %v2495_v60, %v2497_v61  ;;  %v5194_v7 = vunpack.c.h.bf16 %v4208_v45  ;;  %v1245_v54 = vld [vmem:[#allocation3 + $0x30] sm:$0xf] }
 0x13d   : > { %v1295_v8 = vsel %vm5049_vm6, %v1048_v33, %v1294_v58  ;;  %v920_v10 = vor.u32 %v918_v56, %v917_v63  ;;  %v922_v13 = vrot.slane %v917_v63, 4  ;;  %v789_v15 = vmin.f32 %v753_v44, 6.0 }
 0x13e   : > { %1296 = vst [vmem:[#allocation3 + $0x84] sm:$0xf] %v1295_v8  ;;  %v840_v16 = vpack.c.bf16 %v804_v4, %v804_v4  ;;  %v715_v17 = vpop.f32.mrf.mxu2  ;;  %v2606_v18 = vadd.f32 %v2496_v5, %v2364_v38  ;;  %v2607_v19 = vadd.f32 %v2498_v3, %v2365_v39  ;;  %v2689_v14 = vunpack.c.l.bf16 %v5190_v1  ;;  %v5228_v4 = vld [vmem:[#allocation8 + $0x8] ss:$0 sm:$0xff]  ;;  %v5253_v1 = vld [vmem:[%s6290_s4] ss:$0 sm:$0xff] }
 0x13f   : > { %v921_v21 = vsel %vm5058_vm8, %v913_v29, %v920_v10  ;;  %v1243_v22 = vsel %vm4955_vm2, %v922_v13, %v1242_v2  ;;  %v825_v23 = vpack.c.bf16 %v789_v15, %v789_v15  ;;  %v716_v25 = vadd.f32 %v5043_v35, %v715_v17 }
 0x140   : > { %1241 = vst [vmem:[#allocation3 + $0x28] sm:$0xf] %v921_v21  ;;  %v1051_v26 = vshrl.u32 %v840_v16, 16  ;;  %v1054_v27 = vshll.u32 %v840_v16, 16  ;;  %v677_v28 = vpop.f32.mrf.mxu0  ;;  %v2737_v30 = vmul.f32 %v5199_v20, %v5186_v62  ;;  %v2738_v31 = vmul.f32 %v5199_v20, %v5194_v7 }
 0x141   : > { %1244 = vst [vmem:[#allocation3 + $0x2c] sm:$0x1] %v1243_v22  ;;  %v924_v29 = vshrl.u32 %v825_v23, 16  ;;  %v927_v36 = vshll.u32 %v825_v23, 16  ;;  %v769_v24 = vmax.f32 %v716_v25, 0.0  ;;  %v678_v38 = vadd.f32 %v5043_v35, %v677_v28 }
 0x142   : > { %v1053_v39 = vrot.slane %v1051_v26, 7  ;;  %v2769_v40 = vadd.f32 %v2737_v30, %v2606_v18  ;;  %v2770_v41 = vadd.f32 %v2738_v31, %v2607_v19  ;;  %v2803_v42 = vmul.f32 %v5210_v34, %v5186_v62  ;;  %v1301_v23 = vld [vmem:[#allocation3 + $0x90] sm:$0xf] }
 0x143   : > { %v5215_v45 = vrot.slane %v924_v29, 7  ;;  %v805_v47 = vmin.f32 %v769_v24, 6.0  ;;  %v754_v48 = vmax.f32 %v678_v38, 0.0  ;;  %v2804_v37 = vmul.f32 %v5210_v34, %v5194_v7  ;;  %v1346_v24 = vld [vmem:[#allocation3 + $0xc] sm:$0xff]   ;;  %v1249_v38 = vld [vmem:[#allocation3 + $0x38] sm:$0x1] }
 0x144   : > { %v1056_v49 = vor.u32 %v1054_v27, %v1053_v39  ;;  %v1058_v53 = vrot.slane %v1053_v39, 4  ;;  %v2805_v55 = vmul.f32 %v5210_v34, %v2689_v14  ;;  %v2899_v56 = vrot.slane %v2803_v42, 1 }
 0x145   : > { %v929_v57 = vor.u32 %v927_v36, %v5215_v45  ;;  %v930_v58 = vrot.slane %v5215_v45, 4  ;;  %v841_v59 = vpack.c.bf16 %v805_v47, %v805_v47  ;;  %v790_v60 = vmin.f32 %v754_v48, 6.0 }
 0x146   : > { %v1057_v61 = vsel %vm5058_vm8, %v1049_v32, %v1056_v49  ;;  %v1299_v33 = vsel %vm4955_vm2, %v1058_v53, %v1298_v43  ;;  %v717_v63 = vpop.f32.mrf.mxu2  ;;  %v2900_v44 = vrot.slane %v2804_v37, 1  ;;  %v2902_v2 = vrot.slane %v2805_v55, 1 }
 0x147   : > { %1297 = vst [vmem:[#allocation3 + $0x88] sm:$0xf] %v1057_v61  ;;  %v1246_v5 = vsel %vm5049_vm6, %v929_v57, %v1245_v54  ;;  %v1060_v3 = vshrl.u32 %v841_v59, 16  ;;  %v1063_v8 = vshll.u32 %v841_v59, 16  ;;  %v826_v10 = vpack.c.bf16 %v790_v60, %v790_v60 }
 0x148   : > { %1300 = vst [vmem:[#allocation3 + $0x8c] sm:$0x1] %v1299_v33  ;;  %v718_v13 = vadd.f32 %v5043_v35, %v717_v63  ;;  %v680_v15 = vpop.f32.mrf.mxu0  ;;  %v2901_v32 = vsel %vm1603_vm9, %v2899_v56, %v2900_v44  ;;  %v2903_v16 = vsel %vm1603_vm9, %v2900_v44, %v2902_v2  ;;  %v3045_v17 = vmul.f32 %v5228_v4, %v5186_v62  ;;  %v5263_v2 = vld [vmem:[#allocation3 + $0x14] sm:$0x1] }
 0x149   : > { %1247 = vst [vmem:[#allocation3 + $0x30] sm:$0xf] %v1246_v5  ;;  %v5237_v18 = vrot.slane %v1060_v3, 7  ;;  %v932_v19 = vshrl.u32 %v826_v10, 16  ;;  %v935_v21 = vshll.u32 %v826_v10, 16  ;;  %v681_v22 = vadd.f32 %v5043_v35, %v680_v15 }
 0x14a   : > { %v770_v25 = vmax.f32 %v718_v13, 0.0  ;;  %v3011_v26 = vadd.f32 %v2901_v32, %v2769_v40  ;;  %v3012_v27 = vadd.f32 %v2903_v16, %v2770_v41  ;;  %v3046_v28 = vmul.f32 %v5228_v4, %v5194_v7  ;;  %v1305_v16 = vld [vmem:[#allocation3 + $0x98] sm:$0x1] }
 0x14b   : > { %v1065_v30 = vor.u32 %v1063_v8, %v5237_v18  ;;  %v1066_v31 = vrot.slane %v5237_v18, 4  ;;  %v934_v29 = vrot.slane %v932_v19, 7  ;;  %v755_v36 = vmax.f32 %v681_v22, 0.0 }
 0x14c   : > { %v806_v39 = vmin.f32 %v770_v25, 6.0  ;;  %v3047_v42 = vmul.f32 %v5228_v4, %v2689_v14  ;;  %v3141_v43 = vrot.slane %v3045_v17, 2  ;;  %v3142_v45 = vrot.slane %v3046_v28, 2  ;;  %v1252_v25 = vld [vmem:[#allocation3 + $0x3c] sm:$0xf] }
 0x14d   : > { %v1302_v40 = vsel %vm5049_vm6, %v1065_v30, %v1301_v23  ;;  %v937_v41 = vor.u32 %v935_v21, %v934_v29  ;;  %v939_v47 = vrot.slane %v934_v29, 4  ;;  %v791_v48 = vmin.f32 %v755_v36, 6.0 }
 0x14e   : > { %1303 = vst [vmem:[#allocation3 + $0x90] sm:$0xf] %v1302_v40  ;;  %v842_v37 = vpack.c.bf16 %v806_v39, %v806_v39  ;;  %v720_v49 = vpop.f32.mrf.mxu2  ;;  %v3143_v53 = vsel %vm1846_vm10, %v3141_v43, %v3142_v45  ;;  %v3144_v54 = vrot.slane %v3047_v42, 2  ;;  %v5255_v14 = vunpack.c.l.bf16 %v1346_v24 }
 0x14f   : > { %v938_v55 = vsel %vm5058_vm8, %v930_v58, %v937_v41  ;;  %v1250_v56 = vsel %vm4955_vm2, %v939_v47, %v1249_v38  ;;  %v827_v57 = vpack.c.bf16 %v791_v48, %v791_v48  ;;  %v721_v59 = vadd.f32 %v5043_v35, %v720_v49 }
 0x150   : > { %1248 = vst [vmem:[#allocation3 + $0x34] sm:$0xf] %v938_v55  ;;  %v1068_v60 = vshrl.u32 %v842_v37, 16  ;;  %v1071_v61 = vshll.u32 %v842_v37, 16  ;;  %v3145_v33 = vsel %vm1846_vm10, %v3142_v45, %v3144_v54  ;;  %v3253_v63 = vadd.f32 %v3143_v53, %v3011_v26  ;;  %v682_v44 = vpop.f32.mrf.mxu0 }
 0x151   : > { %1251 = vst [vmem:[#allocation3 + $0x38] sm:$0x1] %v1250_v56  ;;  %v941_v5 = vshrl.u32 %v827_v57, 16  ;;  %v944_v3 = vshll.u32 %v827_v57, 16  ;;  %v771_v8 = vmax.f32 %v721_v59, 0.0  ;;  %v3254_v58 = vadd.f32 %v3145_v33, %v3012_v27 }
 0x152   : > { %v1070_v10 = vrot.slane %v1068_v60, 7  ;;  %v3289_v13 = vadd.f32 %v5253_v1, %v3253_v63  ;;  %v683_v15 = vadd.f32 %v5043_v35, %v682_v44  ;;  %v5267_v32 = vunpack.c.h.bf16 %v1346_v24  ;;  %v1308_v59 = vld [vmem:[#allocation3 + $0x9c] sm:$0xf] }
 0x153   : > { %v5269_v17 = vrot.slane %v941_v5, 7  ;;  %v807_v18 = vmin.f32 %v771_v8, 6.0  ;;  %v3290_v19 = vadd.f32 %v5253_v1, %v3254_v58  ;;  %v1396_v21 = vunpack.c.l.bf16 %v5263_v2 }
 0x154   : > { %v1073_v22 = vor.u32 %v1071_v61, %v1070_v10  ;;  %v1075_v23 = vrot.slane %v1070_v10, 4  ;;  %v3321_v26 = vmax.f32 %v3289_v13, 0.0  ;;  %v756_v27 = vmax.f32 %v683_v15, 0.0 }
 0x155   : > { %v946_v28 = vor.u32 %v944_v3, %v5269_v17  ;;  %v947_v30 = vrot.slane %v5269_v17, 4  ;;  %v843_v29 = vpack.c.bf16 %v807_v18, %v807_v18  ;;  %v3322_v36 = vmax.f32 %v3290_v19, 0.0  ;;  %v1256_v18 = vld [vmem:[#allocation3 + $0x44] sm:$0x1] }
 0x156   : > { %v1074_v24 = vsel %vm5058_vm8, %v1066_v31, %v1073_v22  ;;  %v1306_v38 = vsel %vm4955_vm2, %v1075_v23, %v1305_v16  ;;  %v3353_v39 = vmin.f32 %v3321_v26, 6.0  ;;  %v792_v42 = vmin.f32 %v756_v27, 6.0  ;;  %v722_v43 = vpop.f32.mrf.mxu2 }
 0x157   : > { %1304 = vst [vmem:[#allocation3 + $0x94] sm:$0xf] %v1074_v24  ;;  %v1253_v45 = vsel %vm5049_vm6, %v946_v28, %v1252_v25  ;;  %v1077_v40 = vshrl.u32 %v843_v29, 16  ;;  %v1080_v41 = vshll.u32 %v843_v29, 16  ;;  %v3354_v47 = vmin.f32 %v3322_v36, 6.0 }
 0x158   : > { %1307 = vst [vmem:[#allocation3 + $0x98] sm:$0x1] %v1306_v38  ;;  %v3385_v48 = vpack.c.bf16 %v3353_v39, %v3353_v39  ;;  %v828_v37 = vpack.c.bf16 %v792_v42, %v792_v42  ;;  %v723_v49 = vadd.f32 %v5043_v35, %v722_v43  ;;  %v685_v53 = vpop.f32.mrf.mxu0  ;;  %v1443_v31 = vmul.f32 %v5077_v50, %v5255_v14 }
 0x159   : > { %1254 = vst [vmem:[#allocation3 + $0x3c] sm:$0xf] %v1253_v45  ;;  %v5284_v54 = vrot.slane %v1077_v40, 7  ;;  %v3386_v55 = vpack.c.bf16 %v3354_v47, %v3354_v47  ;;  %v686_v56 = vadd.f32 %v5043_v35, %v685_v53  ;;  %v1444_v57 = vmul.f32 %v5077_v50, %v5267_v32 }
 0x15a   : > { %v3469_v60 = vunpack.c.l.b16 %v3385_v48  ;;  %v949_v61 = vshrl.u32 %v828_v37, 16  ;;  %v952_v33 = vshll.u32 %v828_v37, 16  ;;  %v772_v63 = vmax.f32 %v723_v49, 0.0 }
 0x15b   : > { %v1082_v44 = vor.u32 %v1080_v41, %v5284_v54  ;;  %v1083_v5 = vrot.slane %v5284_v54, 4  ;;  %v3470_v3 = vunpack.c.l.b16 %v3386_v55  ;;  %v757_v8 = vmax.f32 %v686_v56, 0.0 }
 0x15c   : > { %v951_v58 = vrot.slane %v949_v61, 7  ;;  %v808_v10 = vmin.f32 %v772_v63, 6.0  ;;  %v1510_v13 = vmul.f32 %v5079_v51, %v5255_v14  ;;  %v1511_v15 = vmul.f32 %v5079_v51, %v5267_v32  ;;  %v1259_v63 = vld [vmem:[#allocation3 + $0x48] sm:$0xf] }
 0x15d   : > { %v1309_v16 = vsel %vm5049_vm6, %v1082_v44, %v1308_v59  ;;  %v3501_v17 = vpack.c.b16 %v3470_v3, %v3469_v60  ;;  %v793_v19 = vmin.f32 %v757_v8, 6.0  ;;  %v1512_v22 = vmul.f32 %v5079_v51, %v1396_v21  ;;  %v1997_v60 = vld [vmem:[#allocation3 + $0x20] sm:$0x1] }
 0x15e   : > { %1310 = vst [vmem:[#allocation3 + $0x9c] sm:$0xf] %v1309_v16  ;;  %v954_v23 = vor.u32 %v952_v33, %v951_v58  ;;  %v956_v25 = vrot.slane %v951_v58, 4  ;;  %v844_v26 = vpack.c.bf16 %v808_v10, %v808_v10  ;;  %v725_v27 = vpop.f32.mrf.mxu2  ;;  %v1609_v28 = vrot.slane %v1510_v13, 1 }
 0x15f   : > { %3589 = vmatmul.bf16.vlgmr.msra.gmra.mxu1 %v3501_v17  ;;  %v829_v29 = vpack.c.bf16 %v793_v19, %v793_v19  ;;  %v726_v36 = vadd.f32 %v5043_v35, %v725_v27  ;;  %v1610_v24 = vrot.slane %v1511_v15, 1  ;;  %v1612_v38 = vrot.slane %v1512_v22, 1  ;;  %v1315_v27 = vld [vmem:[#allocation3 + $0xa8] sm:$0xf] }
 0x160   : > { %v955_v39 = vsel %vm5058_vm8, %v947_v30, %v954_v23  ;;  %v1257_v42 = vsel %vm4955_vm2, %v956_v25, %v1256_v18  ;;  %v1085_v43 = vshrl.u32 %v844_v26, 16  ;;  %v1088_v45 = vshll.u32 %v844_v26, 16  ;;  %v1312_v30 = vld [vmem:[#allocation3 + $0xa4] sm:$0x1] }
 0x161   : > { %1255 = vst [vmem:[#allocation3 + $0x40] sm:$0xf] %v955_v39  ;;  %v958_v40 = vshrl.u32 %v829_v29, 16  ;;  %v961_v41 = vshll.u32 %v829_v29, 16  ;;  %v773_v47 = vmax.f32 %v726_v36, 0.0  ;;  %v1611_v48 = vsel %vm1603_vm9, %v1609_v28, %v1610_v24 }
 0x162   : > { %1258 = vst [vmem:[#allocation3 + $0x44] sm:$0x1] %v1257_v42  ;;  %v1087_v37 = vrot.slane %v1085_v43, 7  ;;  %v1613_v35 = vsel %vm1603_vm9, %v1610_v24, %v1612_v38  ;;  %v1718_v49 = vadd.f32 %v1611_v48, %v1443_v31  ;;  %v1753_v53 = vmul.f32 %v5093_v11, %v5255_v14  ;;  %v2642_v38 = vld [vmem:[#allocation3 + $0x24] sm:$0xff]  }
 0x163   : > { %v5309_v54 = vrot.slane %v958_v40, 7  ;;  %v809_v55 = vmin.f32 %v773_v47, 6.0  ;;  %v1719_v56 = vadd.f32 %v1613_v35, %v1444_v57  ;;  %v1754_v59 = vmul.f32 %v5093_v11, %v5267_v32  ;;  %v2644_v40 = vld [vmem:[#allocation3 + $0x2c] sm:$0x1] }
 0x164   : > { %v1090_v61 = vor.u32 %v1088_v45, %v1087_v37  ;;  %v1092_v33 = vrot.slane %v1087_v37, 4  ;;  %v1755_v44 = vmul.f32 %v5093_v11, %v1396_v21  ;;  %v1852_v31 = vrot.slane %v1753_v53, 2 }
 0x165   : > { %v963_v3 = vor.u32 %v961_v41, %v5309_v54  ;;  %v964_v14 = vrot.slane %v5309_v54, 4  ;;  %v845_v8 = vpack.c.bf16 %v809_v55, %v809_v55  ;;  %v1853_v58 = vrot.slane %v1754_v59, 2 }
 0x166   : > { %v1091_v57 = vsel %vm5058_vm8, %v1083_v5, %v1090_v61  ;;  %v1313_v32 = vsel %vm4955_vm2, %v1092_v33, %v1312_v30  ;;  %v1855_v10 = vrot.slane %v1755_v44, 2  ;;  %v2045_v13 = vunpack.c.l.bf16 %v1997_v60 }
 0x167   : > { %1311 = vst [vmem:[#allocation3 + $0xa0] sm:$0xf] %v1091_v57  ;;  %v1260_v2 = vsel %vm5049_vm6, %v963_v3, %v1259_v63  ;;  %v1094_v21 = vshrl.u32 %v845_v8, 16  ;;  %v1097_v15 = vshll.u32 %v845_v8, 16  ;;  %v1854_v16 = vsel %vm1846_vm10, %v1852_v31, %v1853_v58 }
 0x168   : > { %1314 = vst [vmem:[#allocation3 + $0xa4] sm:$0x1] %v1313_v32  ;;  %v1856_v17 = vsel %vm1846_vm10, %v1853_v58, %v1855_v10  ;;  %v1961_v18 = vadd.f32 %v1854_v16, %v1718_v49  ;;  %v2092_v5 = vmul.f32 %v5127_v9, %v5186_v62  ;;  %v2093_v19 = vmul.f32 %v5127_v9, %v5194_v7 }
 0x169   : > { %1261 = vst [vmem:[#allocation3 + $0x48] sm:$0xf] %v1260_v2  ;;  %v5330_v22 = vrot.slane %v1094_v21, 7  ;;  %v1962_v23 = vadd.f32 %v1856_v17, %v1719_v56  ;;  %v2159_v25 = vmul.f32 %v5144_v46, %v5186_v62  ;;  %v2160_v26 = vmul.f32 %v5144_v46, %v5194_v7  ;;  %v687_v2 = vpop.f32.mrf.mxu0 }
 0x16a   : > { %v2124_v28 = vadd.f32 %v2092_v5, %v1961_v18  ;;  %v2161_v29 = vmul.f32 %v5144_v46, %v2045_v13  ;;  %v2401_v36 = vmul.f32 %v5160_v6, %v5186_v62  ;;  %v2402_v24 = vmul.f32 %v5160_v6, %v5194_v7  ;;  %v1370_v18 = vld [vmem:[#allocation3 + $0x6c] sm:$0xff]  }
 0x16b   : > { %v1099_v39 = vor.u32 %v1097_v15, %v5330_v22  ;;  %v1100_v42 = vrot.slane %v5330_v22, 4  ;;  %v2125_v43 = vadd.f32 %v2093_v19, %v1962_v23  ;;  %v2257_v45 = vrot.slane %v2159_v25, 1 }
 0x16c   : > { %v2258_v41 = vrot.slane %v2160_v26, 1  ;;  %v2260_v47 = vrot.slane %v2161_v29, 1  ;;  %v2403_v48 = vmul.f32 %v5160_v6, %v2045_v13  ;;  %v2499_v37 = vrot.slane %v2401_v36, 2  ;;  %v5362_v29 = vld [vmem:[%s6288_s2] ss:$0 sm:$0xff] }
 0x16d   : > { %v1316_v35 = vsel %vm5049_vm6, %v1099_v39, %v1315_v27  ;;  %v2500_v49 = vrot.slane %v2402_v24, 2  ;;  %v2690_v53 = vunpack.c.l.bf16 %v2642_v38  ;;  %v2691_v30 = vunpack.c.h.bf16 %v2642_v38  ;;  %v1372_v24 = vld [vmem:[#allocation3 + $0x74] sm:$0x1] }
 0x16e   : > { %1317 = vst [vmem:[#allocation3 + $0xa8] sm:$0xf] %v1316_v35  ;;  %v2259_v55 = vsel %vm1603_vm9, %v2257_v45, %v2258_v41  ;;  %v2261_v56 = vsel %vm1603_vm9, %v2258_v41, %v2260_v47  ;;  %v2502_v59 = vrot.slane %v2403_v48, 2  ;;  %v2692_v60 = vunpack.c.l.bf16 %v2644_v40 }
 0x16f   : > { %v2366_v61 = vadd.f32 %v2259_v55, %v2124_v28  ;;  %v2367_v33 = vadd.f32 %v2261_v56, %v2125_v43  ;;  %v2501_v63 = vsel %vm1846_vm10, %v2499_v37, %v2500_v49  ;;  %v2739_v44 = vmul.f32 %v5199_v20, %v2690_v53 }
 0x170   : > { %v2503_v31 = vsel %vm1846_vm10, %v2500_v49, %v2502_v59  ;;  %v2740_v3 = vmul.f32 %v5199_v20, %v2691_v30  ;;  %v2806_v8 = vmul.f32 %v5210_v34, %v2690_v53  ;;  %v2807_v58 = vmul.f32 %v5210_v34, %v2691_v30 }
 0x171   : > { %v2608_v57 = vadd.f32 %v2501_v63, %v2366_v61  ;;  %v2609_v32 = vadd.f32 %v2503_v31, %v2367_v33  ;;  %v2808_v10 = vmul.f32 %v5210_v34, %v2692_v60  ;;  %v3048_v13 = vmul.f32 %v5228_v4, %v2690_v53  ;;  %v5373_v61 = vld [vmem:[#allocation8 + $0x1] ss:$0 sm:$0xff] }
 0x172   : > { %v2904_v21 = vrot.slane %v2806_v8, 1  ;;  %v2905_v15 = vrot.slane %v2807_v58, 1  ;;  %v3049_v16 = vmul.f32 %v5228_v4, %v2691_v30  ;;  %v3050_v17 = vmul.f32 %v5228_v4, %v2692_v60 }
 0x173   : > { %v2771_v5 = vadd.f32 %v2739_v44, %v2608_v57  ;;  %v2772_v19 = vadd.f32 %v2740_v3, %v2609_v32  ;;  %v2907_v23 = vrot.slane %v2808_v10, 1  ;;  %v3146_v25 = vrot.slane %v3048_v13, 2 }
 0x174   : > { %v2906_v26 = vsel %vm1603_vm9, %v2904_v21, %v2905_v15  ;;  %v3147_v27 = vrot.slane %v3049_v16, 2  ;;  %v3149_v28 = vrot.slane %v3050_v17, 2  ;;  %v688_v36 = vadd.f32 %v5362_v29, %v687_v2 }
 0x175   : > { %v2908_v38 = vsel %vm1603_vm9, %v2905_v15, %v2907_v23  ;;  %v3013_v39 = vadd.f32 %v2906_v26, %v2771_v5  ;;  %v1418_v43 = vunpack.c.l.bf16 %v1370_v18  ;;  %v1419_v45 = vunpack.c.h.bf16 %v1370_v18  ;;  %v4394_v15 = vld [vmem:[#allocation3 + $0x78] sm:$0xff]  }
 0x176   : > { %v3014_v40 = vadd.f32 %v2908_v38, %v2772_v19  ;;  %v3148_v41 = vsel %vm1846_vm10, %v3146_v25, %v3147_v27  ;;  %v3150_v47 = vsel %vm1846_vm10, %v3147_v27, %v3149_v28  ;;  %v758_v48 = vmax.f32 %v688_v36, 0.0  ;;  %v2021_v27 = vld [vmem:[#allocation3 + $0x80] sm:$0x1]  ;;  %v1263_v36 = vld [vmem:[#allocation3 + $0x50] sm:$0x1] }
 0x177   : > { %v3255_v37 = vadd.f32 %v3148_v41, %v3013_v39  ;;  %v1420_v35 = vunpack.c.l.bf16 %v1372_v24  ;;  %v1459_v49 = vmul.f32 %v5077_v50, %v1418_v43  ;;  %v1460_v53 = vmul.f32 %v5077_v50, %v1419_v45 }
 0x178   : > { %v3256_v30 = vadd.f32 %v3150_v47, %v3014_v40  ;;  %v794_v55 = vmin.f32 %v758_v48, 6.0  ;;  %v1534_v56 = vmul.f32 %v5079_v51, %v1418_v43  ;;  %v1535_v59 = vmul.f32 %v5079_v51, %v1419_v45 }
 0x179   : > { %v3291_v60 = vadd.f32 %v5253_v1, %v3255_v37  ;;  %v1536_v33 = vmul.f32 %v5373_v61, %v1420_v35  ;;  %v1777_v63 = vmul.f32 %v5093_v11, %v1418_v43  ;;  %v1778_v44 = vmul.f32 %v5093_v11, %v1419_v45 }
 0x17a   : > { %v3292_v31 = vadd.f32 %v5253_v1, %v3256_v30  ;;  %v830_v3 = vpack.c.bf16 %v794_v55, %v794_v55  ;;  %v1649_v50 = vrot.slane %v1534_v56, 1  ;;  %v1650_v8 = vrot.slane %v1535_v59, 1 }
 0x17b   : > { %v3323_v58 = vmax.f32 %v3291_v60, 0.0  ;;  %v1652_v57 = vrot.slane %v1536_v33, 1  ;;  %v1779_v32 = vmul.f32 %v5093_v11, %v1420_v35  ;;  %v1892_v51 = vrot.slane %v1777_v63, 2  ;;  %v2666_v60 = vld [vmem:[#allocation3 + $0x84] sm:$0xff]  }
 0x17c   : > { %v3324_v10 = vmax.f32 %v3292_v31, 0.0  ;;  %v966_v13 = vshrl.u32 %v830_v3, 16  ;;  %v969_v2 = vshll.u32 %v830_v3, 16  ;;  %v1651_v21 = vsel %vm1603_vm9, %v1649_v50, %v1650_v8  ;;  %v2668_v31 = vld [vmem:[#allocation3 + $0x8c] sm:$0x1] }
 0x17d   : > { %v3355_v16 = vmin.f32 %v3323_v58, 6.0  ;;  %v1653_v17 = vsel %vm1603_vm9, %v1650_v8, %v1652_v57  ;;  %v1734_v18 = vadd.f32 %v1651_v21, %v1459_v49  ;;  %v1893_v5 = vrot.slane %v1778_v44, 2 }
 0x17e   : > { %v3356_v19 = vmin.f32 %v3324_v10, 6.0  ;;  %v968_v23 = vrot.slane %v966_v13, 7  ;;  %v1735_v25 = vadd.f32 %v1653_v17, %v1460_v53  ;;  %v1895_v26 = vrot.slane %v1779_v32, 2 }
 0x17f   : > { %v3387_v28 = vpack.c.bf16 %v3355_v16, %v3355_v16  ;;  %v1894_v11 = vsel %vm1846_vm10, %v1892_v51, %v1893_v5  ;;  %v5383_v24 = vunpack.c.l.bf16 %v4394_v15  ;;  %v5385_v38 = vunpack.c.h.bf16 %v4394_v15 }
 0x180   : > { %v3388_v39 = vpack.c.bf16 %v3356_v19, %v3356_v19  ;;  %v971_v43 = vor.u32 %v969_v2, %v968_v23  ;;  %v973_v45 = vrot.slane %v968_v23, 4  ;;  %v1896_v40 = vsel %vm1846_vm10, %v1893_v5, %v1895_v26 }
 0x181   : > { %v3471_v41 = vunpack.c.l.b16 %v3387_v28  ;;  %v1977_v47 = vadd.f32 %v1894_v11, %v1734_v18  ;;  %v1978_v48 = vadd.f32 %v1896_v40, %v1735_v25  ;;  %v2069_v37 = vunpack.c.l.bf16 %v2021_v27 }
 0x182   : > { %v3472_v35 = vunpack.c.l.b16 %v3388_v39  ;;  %v972_v49 = vsel %vm5058_vm8, %v964_v14, %v971_v43  ;;  %v1264_v53 = vsel %vm4955_vm2, %v973_v45, %v1263_v36  ;;  %v2108_v30 = vmul.f32 %v5127_v9, %v5383_v24  ;;  %v690_v45 = vpop.f32.mrf.mxu0 }
 0x183   : > { %1262 = vst [vmem:[#allocation3 + $0x4c] sm:$0xf] %v972_v49  ;;  %v2109_v55 = vmul.f32 %v5127_v9, %v5385_v38  ;;  %v2183_v56 = vmul.f32 %v5144_v46, %v5383_v24  ;;  %v2184_v59 = vmul.f32 %v5144_v46, %v5385_v38  ;;  %v2185_v54 = vmul.f32 %v5144_v46, %v2069_v37  ;;  %v727_v9 = vpop.f32.mrf.mxu2 }
 0x184   : > { %v3502_v14 = vpack.c.b16 %v3472_v35, %v3471_v41  ;;  %1265 = vst [vmem:[#allocation3 + $0x50] sm:$0x1] %v1264_v53  ;;  %v2140_v33 = vadd.f32 %v2108_v30, %v1977_v47  ;;  %v2425_v63 = vmul.f32 %v5160_v6, %v5383_v24  ;;  %v2426_v44 = vmul.f32 %v5160_v6, %v5385_v38  ;;  %v5422_v30 = vld [vmem:[#allocation3 + $0x20] sm:$0x1] }
 0x185   : > { %v2141_v3 = vadd.f32 %v2109_v55, %v1978_v48  ;;  %v2297_v50 = vrot.slane %v2183_v56, 1  ;;  %v2298_v8 = vrot.slane %v2184_v59, 1  ;;  %v2300_v58 = vrot.slane %v2185_v54, 1 }
 0x186   : > { %3594 = vmatmul.bf16.gmra.mxu1 %v3502_v14  ;;  %v2427_v57 = vmul.f32 %v5160_v6, %v2069_v37  ;;  %v2539_v46 = vrot.slane %v2425_v63, 2  ;;  %v2540_v32 = vrot.slane %v2426_v44, 2  ;;  %v2714_v51 = vunpack.c.l.bf16 %v2666_v60 }
 0x187   : > { %v2299_v10 = vsel %vm1603_vm9, %v2297_v50, %v2298_v8  ;;  %v2301_v13 = vsel %vm1603_vm9, %v2298_v8, %v2300_v58  ;;  %v2715_v2 = vunpack.c.h.bf16 %v2666_v60  ;;  %v2716_v21 = vunpack.c.l.bf16 %v2668_v31 }
 0x188   : > { %v2382_v15 = vadd.f32 %v2299_v10, %v2140_v33  ;;  %v2383_v16 = vadd.f32 %v2301_v13, %v2141_v3  ;;  %v2541_v17 = vsel %vm1846_vm10, %v2539_v46, %v2540_v32  ;;  %v2542_v18 = vrot.slane %v2427_v57, 2  ;;  %v5430_v46 = vld [vmem:[#allocation8] ss:$0 sm:$0xff] }
 0x189   : > { %v2755_v5 = vmul.f32 %v5199_v20, %v2714_v51  ;;  %v2756_v19 = vmul.f32 %v5199_v20, %v2715_v2  ;;  %v2830_v6 = vmul.f32 %v5210_v34, %v2714_v51  ;;  %v2831_v23 = vmul.f32 %v5210_v34, %v2715_v2 }
 0x18a   : > { %v2543_v25 = vsel %vm1846_vm10, %v2540_v32, %v2542_v18  ;;  %v2624_v26 = vadd.f32 %v2541_v17, %v2382_v15  ;;  %v2832_v27 = vmul.f32 %v5210_v34, %v2716_v21  ;;  %v3072_v28 = vmul.f32 %v5228_v4, %v2714_v51 }
 0x18b   : > { %v2625_v36 = vadd.f32 %v2543_v25, %v2383_v16  ;;  %v2944_v11 = vrot.slane %v2830_v6, 1  ;;  %v2945_v39 = vrot.slane %v2831_v23, 1  ;;  %v3073_v43 = vmul.f32 %v5228_v4, %v2715_v2  ;;  %v730_v60 = vpop.f32.mrf.mxu2 }
 0x18c   : > { %v2787_v40 = vadd.f32 %v2755_v5, %v2624_v26  ;;  %v2947_v41 = vrot.slane %v2832_v27, 1  ;;  %v3074_v47 = vmul.f32 %v5228_v4, %v2716_v21  ;;  %v3186_v48 = vrot.slane %v3072_v28, 2 }
 0x18d   : > { %v2788_v37 = vadd.f32 %v2756_v19, %v2625_v36  ;;  %v2946_v35 = vsel %vm1603_vm9, %v2944_v11, %v2945_v39  ;;  %v3187_v49 = vrot.slane %v3073_v43, 2  ;;  %v728_v53 = vadd.f32 %v5362_v29, %v727_v9 }
 0x18e   : > { %v2948_v55 = vsel %vm1603_vm9, %v2945_v39, %v2947_v41  ;;  %v3029_v56 = vadd.f32 %v2946_v35, %v2787_v40  ;;  %v3189_v59 = vrot.slane %v3074_v47, 2  ;;  %v691_v54 = vadd.f32 %v5362_v29, %v690_v45 }
 0x18f   : > { %v3030_v14 = vadd.f32 %v2948_v55, %v2788_v37  ;;  %v3188_v33 = vsel %vm1846_vm10, %v3186_v48, %v3187_v49  ;;  %v774_v63 = vmax.f32 %v728_v53, 0.0  ;;  %v731_v44 = vadd.f32 %v5362_v29, %v730_v60  ;;  %v1319_v48 = vld [vmem:[#allocation3 + $0xb0] sm:$0x1] }
 0x190   : > { %v3190_v31 = vsel %vm1846_vm10, %v3187_v49, %v3189_v59  ;;  %v3271_v3 = vadd.f32 %v3188_v33, %v3029_v56  ;;  %v759_v50 = vmax.f32 %v691_v54, 0.0  ;;  %v1399_v9 = vunpack.c.l.bf16 %v5422_v30  ;;  %v1266_v59 = vld [vmem:[#allocation3 + $0x54] sm:$0xf] }
 0x191   : > { %v3272_v8 = vadd.f32 %v3190_v31, %v3030_v14  ;;  %v810_v58 = vmin.f32 %v774_v63, 6.0  ;;  %v775_v57 = vmax.f32 %v731_v44, 0.0  ;;  %v1445_v32 = vmul.f32 %v5430_v46, %v5186_v62  ;;  %v1322_v63 = vld [vmem:[#allocation3 + $0xb4] sm:$0xf] }
 0x192   : > { %v3307_v51 = vadd.f32 %v5253_v1, %v3271_v3  ;;  %v795_v10 = vmin.f32 %v759_v50, 6.0  ;;  %v1446_v13 = vmul.f32 %v5430_v46, %v5194_v7  ;;  %v1513_v2 = vmul.f32 %v5373_v61, %v5186_v62 }
 0x193   : > { %v3308_v21 = vadd.f32 %v5253_v1, %v3272_v8  ;;  %v846_v15 = vpack.c.bf16 %v810_v58, %v810_v58  ;;  %v811_v16 = vmin.f32 %v775_v57, 6.0  ;;  %v1514_v17 = vmul.f32 %v5373_v61, %v5194_v7  ;;  %v1998_v58 = vld [vmem:[#allocation3 + $0x24] sm:$0xff]   ;;  %v2000_v57 = vld [vmem:[#allocation3 + $0x2c] sm:$0x1] }
 0x194   : > { %v3339_v18 = vmax.f32 %v3307_v51, 0.0  ;;  %v831_v5 = vpack.c.bf16 %v795_v10, %v795_v10  ;;  %v1515_v19 = vmul.f32 %v5373_v61, %v1399_v9  ;;  %v1614_v6 = vrot.slane %v1513_v2, 1 }
 0x195   : > { %v3340_v23 = vmax.f32 %v3308_v21, 0.0  ;;  %v1102_v25 = vshrl.u32 %v846_v15, 16  ;;  %v1105_v26 = vshll.u32 %v846_v15, 16  ;;  %v847_v27 = vpack.c.bf16 %v811_v16, %v811_v16  ;;  %v4398_v15 = vld [vmem:[#allocation3 + $0x30] sm:$0xff]   ;;  %v5465_v16 = vld [vmem:[#allocation8 + $0x2] ss:$0 sm:$0xff] }
 0x196   : > { %v3371_v28 = vmin.f32 %v3339_v18, 6.0  ;;  %v975_v36 = vshrl.u32 %v831_v5, 16  ;;  %v978_v11 = vshll.u32 %v831_v5, 16  ;;  %v1615_v39 = vrot.slane %v1514_v17, 1 }
 0x197   : > { %v3372_v43 = vmin.f32 %v3340_v23, 6.0  ;;  %v1104_v45 = vrot.slane %v1102_v25, 7  ;;  %v1111_v40 = vshrl.u32 %v847_v27, 16  ;;  %v1114_v41 = vshll.u32 %v847_v27, 16  ;;  %v5478_v27 = vld [vmem:[#allocation8 + $0x3] ss:$0 sm:$0xff] }
 0x198   : > { %v3403_v47 = vpack.c.bf16 %v3371_v28, %v3371_v28  ;;  %v5445_v37 = vrot.slane %v975_v36, 7  ;;  %v1616_v35 = vsel %vm1603_vm9, %v1614_v6, %v1615_v39  ;;  %v1617_v49 = vrot.slane %v1515_v19, 1  ;;  %v5482_v28 = vld [vmem:[#allocation8 + $0x4] ss:$0 sm:$0xff] }
 0x199   : > { %v3404_v53 = vpack.c.bf16 %v3372_v43, %v3372_v43  ;;  %v1107_v55 = vor.u32 %v1105_v26, %v1104_v45  ;;  %v1109_v56 = vrot.slane %v1104_v45, 4  ;;  %v5448_v54 = vrot.slane %v1111_v40, 7  ;;  %v5488_v43 = vld [vmem:[#allocation8 + $0x5] ss:$0 sm:$0xff]  ;;  %v2647_v40 = vld [vmem:[#allocation3 + $0x38] sm:$0x1] }
 0x19a   : > { %v3487_v60 = vunpack.c.l.b16 %v3403_v47  ;;  %v980_v14 = vor.u32 %v978_v11, %v5445_v37  ;;  %v981_v33 = vrot.slane %v5445_v37, 4  ;;  %v1618_v44 = vsel %vm1603_vm9, %v1615_v39, %v1617_v49 }
 0x19b   : > { %v3488_v31 = vunpack.c.l.b16 %v3404_v53  ;;  %v1108_v3 = vsel %vm5058_vm8, %v1100_v42, %v1107_v55  ;;  %v1320_v50 = vsel %vm4955_vm2, %v1109_v56, %v1319_v48  ;;  %v1116_v8 = vor.u32 %v1114_v41, %v5448_v54 }
 0x19c   : > { %1318 = vst [vmem:[#allocation3 + $0xac] sm:$0xf] %v1108_v3  ;;  %v1267_v51 = vsel %vm5049_vm6, %v980_v14, %v1266_v59  ;;  %v1117_v10 = vrot.slane %v5448_v54, 4  ;;  %v1720_v2 = vadd.f32 %v1616_v35, %v1445_v32  ;;  %v1721_v21 = vadd.f32 %v1618_v44, %v1446_v13 }
 0x19d   : > { %v3510_v22 = vpack.c.b16 %v3488_v31, %v3487_v60  ;;  %1321 = vst [vmem:[#allocation3 + $0xb0] sm:$0x1] %v1320_v50  ;;  %v1323_v42 = vsel %vm5049_vm6, %v1116_v8, %v1322_v63  ;;  %v1756_v17 = vmul.f32 %v5465_v16, %v5186_v62  ;;  %v1757_v18 = vmul.f32 %v5465_v16, %v5194_v7 }
 0x19e   : > { %1268 = vst [vmem:[#allocation3 + $0x54] sm:$0xf] %v1267_v51  ;;  %v1758_v32 = vmul.f32 %v5465_v16, %v1399_v9  ;;  %v2046_v13 = vunpack.c.l.bf16 %v1998_v58  ;;  %v2047_v5 = vunpack.c.h.bf16 %v1998_v58  ;;  %v2048_v19 = vunpack.c.l.bf16 %v2000_v57 }
 0x19f   : > { %3634 = vmatmul.bf16.vlgmr.msra.gmra.mxu3 %v3510_v22  ;;  %1324 = vst [vmem:[#allocation3 + $0xb4] sm:$0xf] %v1323_v42  ;;  %v1857_v6 = vrot.slane %v1756_v17, 2  ;;  %v1858_v23 = vrot.slane %v1757_v18, 2  ;;  %v5474_v25 = vunpack.c.l.bf16 %v4398_v15  ;;  %v5476_v26 = vunpack.c.h.bf16 %v4398_v15 }
 0x1a0   : > { %v1860_v62 = vrot.slane %v1758_v32, 2  ;;  %v2094_v7 = vmul.f32 %v5478_v27, %v2046_v13  ;;  %v2095_v30 = vmul.f32 %v5478_v27, %v2047_v5  ;;  %v2162_v9 = vmul.f32 %v5482_v28, %v2046_v13 }
 0x1a1   : > { %v1859_v36 = vsel %vm1846_vm10, %v1857_v6, %v1858_v23  ;;  %v2163_v11 = vmul.f32 %v5482_v28, %v2047_v5  ;;  %v2164_v39 = vmul.f32 %v5482_v28, %v2048_v19  ;;  %v2404_v45 = vmul.f32 %v5488_v43, %v2046_v13  ;;  %v692_v13 = vpop.f32.mrf.mxu0 }
 0x1a2   : > { %v1861_v41 = vsel %vm1846_vm10, %v1858_v23, %v1860_v62  ;;  %v1963_v47 = vadd.f32 %v1859_v36, %v1720_v2  ;;  %v2262_v48 = vrot.slane %v2162_v9, 1  ;;  %v2405_v35 = vmul.f32 %v5488_v43, %v2047_v5  ;;  %v1375_v23 = vld [vmem:[#allocation3 + $0x80] sm:$0x1] }
 0x1a3   : > { %v1964_v49 = vadd.f32 %v1861_v41, %v1721_v21  ;;  %v2263_v53 = vrot.slane %v2163_v11, 1  ;;  %v2265_v55 = vrot.slane %v2164_v39, 1  ;;  %v2406_v56 = vmul.f32 %v5488_v43, %v2048_v19 }
 0x1a4   : > { %v2126_v59 = vadd.f32 %v2094_v7, %v1963_v47  ;;  %v2504_v60 = vrot.slane %v2404_v45, 2  ;;  %v2505_v14 = vrot.slane %v2405_v35, 2  ;;  %v2695_v63 = vunpack.c.l.bf16 %v2647_v40 }
 0x1a5   : > { %v2127_v44 = vadd.f32 %v2095_v30, %v1964_v49  ;;  %v2264_v31 = vsel %vm1603_vm9, %v2262_v48, %v2263_v53  ;;  %v2266_v3 = vsel %vm1603_vm9, %v2263_v53, %v2265_v55  ;;  %v2507_v50 = vrot.slane %v2406_v56, 2 }
 0x1a6   : > { %v2368_v8 = vadd.f32 %v2264_v31, %v2126_v59  ;;  %v2506_v58 = vsel %vm1846_vm10, %v2504_v60, %v2505_v14  ;;  %v2741_v57 = vmul.f32 %v5199_v20, %v5474_v25  ;;  %v2742_v51 = vmul.f32 %v5199_v20, %v5476_v26 }
 0x1a7   : > { %v2369_v2 = vadd.f32 %v2266_v3, %v2127_v44  ;;  %v2508_v21 = vsel %vm1846_vm10, %v2505_v14, %v2507_v50  ;;  %v2809_v15 = vmul.f32 %v5210_v34, %v5474_v25  ;;  %v2810_v22 = vmul.f32 %v5210_v34, %v5476_v26 }
 0x1a8   : > { %v2610_v42 = vadd.f32 %v2506_v58, %v2368_v8  ;;  %v2811_v17 = vmul.f32 %v5210_v34, %v2695_v63  ;;  %v3051_v18 = vmul.f32 %v5228_v4, %v5474_v25  ;;  %v3052_v32 = vmul.f32 %v5228_v4, %v5476_v26 }
 0x1a9   : > { %v2611_v20 = vadd.f32 %v2508_v21, %v2369_v2  ;;  %v2909_v5 = vrot.slane %v2809_v15, 1  ;;  %v2910_v19 = vrot.slane %v2810_v22, 1  ;;  %v3053_v6 = vmul.f32 %v5228_v4, %v2695_v63 }
 0x1aa   : > { %v2773_v62 = vadd.f32 %v2741_v57, %v2610_v42  ;;  %v2912_v7 = vrot.slane %v2811_v17, 1  ;;  %v3151_v30 = vrot.slane %v3051_v18, 2  ;;  %v3152_v9 = vrot.slane %v3052_v32, 2  ;;  %v2022_v17 = vld [vmem:[#allocation3 + $0x84] sm:$0xff]  }
 0x1ab   : > { %v2774_v36 = vadd.f32 %v2742_v51, %v2611_v20  ;;  %v2911_v34 = vsel %vm1603_vm9, %v2909_v5, %v2910_v19  ;;  %v3154_v11 = vrot.slane %v3053_v6, 2  ;;  %v693_v39 = vadd.f32 %v5362_v29, %v692_v13  ;;  %v2024_v20 = vld [vmem:[#allocation3 + $0x8c] sm:$0x1] }
 0x1ac   : > { %v2913_v45 = vsel %vm1603_vm9, %v2910_v19, %v2912_v7  ;;  %v3015_v40 = vadd.f32 %v2911_v34, %v2773_v62  ;;  %v3153_v41 = vsel %vm1846_vm10, %v3151_v30, %v3152_v9  ;;  %v1423_v47 = vunpack.c.l.bf16 %v1375_v23 }
 0x1ad   : > { %v3016_v48 = vadd.f32 %v2913_v45, %v2774_v36  ;;  %v3155_v4 = vsel %vm1846_vm10, %v3152_v9, %v3154_v11  ;;  %v760_v35 = vmax.f32 %v693_v39, 0.0  ;;  %v1461_v49 = vmul.f32 %v5430_v46, %v5383_v24  ;;  %v1270_v9 = vld [vmem:[#allocation3 + $0x5c] sm:$0x1] }
 0x1ae   : > { %v3257_v53 = vadd.f32 %v3153_v41, %v3015_v40  ;;  %v1462_v55 = vmul.f32 %v5430_v46, %v5385_v38  ;;  %v1537_v56 = vmul.f32 %v5373_v61, %v5383_v24  ;;  %v1538_v59 = vmul.f32 %v5373_v61, %v5385_v38 }
 0x1af   : > { %v3258_v60 = vadd.f32 %v3155_v4, %v3016_v48  ;;  %v796_v14 = vmin.f32 %v760_v35, 6.0  ;;  %v1539_v63 = vmul.f32 %v5373_v61, %v1423_v47  ;;  %v1780_v44 = vmul.f32 %v5465_v16, %v5383_v24 }
 0x1b0   : > { %v3293_v31 = vadd.f32 %v5253_v1, %v3257_v53  ;;  %v1654_v3 = vrot.slane %v1537_v56, 1  ;;  %v1655_v50 = vrot.slane %v1538_v59, 1  ;;  %v1781_v8 = vmul.f32 %v5465_v16, %v5385_v38  ;;  %v4402_v59 = vld [vmem:[#allocation3 + $0x90] sm:$0xff]  }
 0x1b1   : > { %v3294_v58 = vadd.f32 %v5253_v1, %v3258_v60  ;;  %v832_v57 = vpack.c.bf16 %v796_v14, %v796_v14  ;;  %v1657_v51 = vrot.slane %v1539_v63, 1  ;;  %v1782_v2 = vmul.f32 %v5465_v16, %v1423_v47 }
 0x1b2   : > { %v3325_v21 = vmax.f32 %v3293_v31, 0.0  ;;  %v1656_v15 = vsel %vm1603_vm9, %v1654_v3, %v1655_v50  ;;  %v1897_v22 = vrot.slane %v1780_v44, 2  ;;  %v1898_v42 = vrot.slane %v1781_v8, 2  ;;  %v2671_v31 = vld [vmem:[#allocation3 + $0x98] sm:$0x1]  ;;  %v732_v3 = vpop.f32.mrf.mxu2 }
 0x1b3   : > { %v3326_v24 = vmax.f32 %v3294_v58, 0.0  ;;  %v983_v18 = vshrl.u32 %v832_v57, 16  ;;  %v986_v32 = vshll.u32 %v832_v57, 16  ;;  %v1658_v13 = vsel %vm1603_vm9, %v1655_v50, %v1657_v51 }
 0x1b4   : > { %v3357_v5 = vmin.f32 %v3325_v21, 6.0  ;;  %v1736_v38 = vadd.f32 %v1656_v15, %v1461_v49  ;;  %v1737_v19 = vadd.f32 %v1658_v13, %v1462_v55  ;;  %v1899_v1 = vsel %vm1846_vm10, %v1897_v22, %v1898_v42 }
 0x1b5   : > { %v3358_v6 = vmin.f32 %v3326_v24, 6.0  ;;  %v985_v23 = vrot.slane %v983_v18, 7  ;;  %v1900_v62 = vrot.slane %v1782_v2, 2  ;;  %v2070_v7 = vunpack.c.l.bf16 %v2022_v17 }
 0x1b6   : > { %v3389_v30 = vpack.c.bf16 %v3357_v5, %v3357_v5  ;;  %v1979_v36 = vadd.f32 %v1899_v1, %v1736_v38  ;;  %v2071_v34 = vunpack.c.h.bf16 %v2022_v17  ;;  %v2072_v11 = vunpack.c.l.bf16 %v2024_v20 }
 0x1b7   : > { %v3390_v39 = vpack.c.bf16 %v3358_v6, %v3358_v6  ;;  %v988_v45 = vor.u32 %v986_v32, %v985_v23  ;;  %v990_v40 = vrot.slane %v985_v23, 4  ;;  %v1901_v41 = vsel %vm1846_vm10, %v1898_v42, %v1900_v62  ;;  %v5557_v32 = vld [vmem:[#allocation8 + $0x6] ss:$0 sm:$0xff]  ;;  %v5565_v6 = vld [vmem:[#allocation8 + $0x7] ss:$0 sm:$0xff] }
 0x1b8   : > { %v3473_v47 = vunpack.c.l.b16 %v3389_v30  ;;  %v1980_v48 = vadd.f32 %v1901_v41, %v1737_v19  ;;  %v2110_v4 = vmul.f32 %v5478_v27, %v2070_v7  ;;  %v2111_v35 = vmul.f32 %v5478_v27, %v2071_v34 }
 0x1b9   : > { %v3474_v49 = vunpack.c.l.b16 %v3390_v39  ;;  %v989_v53 = vsel %vm5058_vm8, %v981_v33, %v988_v45  ;;  %v1271_v55 = vsel %vm4955_vm2, %v990_v40, %v1270_v9  ;;  %v2186_v56 = vmul.f32 %v5482_v28, %v2070_v7 }
 0x1ba   : > { %1269 = vst [vmem:[#allocation3 + $0x58] sm:$0xf] %v989_v53  ;;  %v2142_v60 = vadd.f32 %v2110_v4, %v1979_v36  ;;  %v2143_v14 = vadd.f32 %v2111_v35, %v1980_v48  ;;  %v2187_v63 = vmul.f32 %v5482_v28, %v2071_v34  ;;  %v2188_v44 = vmul.f32 %v5482_v28, %v2072_v11  ;;  %v5572_v36 = vld [vmem:[#allocation8 + $0x8] ss:$0 sm:$0xff] }
 0x1bb   : > { %v3503_v50 = vpack.c.b16 %v3474_v49, %v3473_v47  ;;  %1272 = vst [vmem:[#allocation3 + $0x5c] sm:$0x1] %v1271_v55  ;;  %v2302_v37 = vrot.slane %v2186_v56, 1  ;;  %v2428_v33 = vmul.f32 %v5488_v43, %v2070_v7  ;;  %v2429_v8 = vmul.f32 %v5488_v43, %v2071_v34  ;;  %v1352_v49 = vld [vmem:[#allocation3 + $0x24] sm:$0xff]  }
 0x1bc   : > { %v2303_v58 = vrot.slane %v2187_v63, 1  ;;  %v2305_v57 = vrot.slane %v2188_v44, 1  ;;  %v2430_v51 = vmul.f32 %v5488_v43, %v2072_v11  ;;  %v5551_v2 = vunpack.c.l.bf16 %v4402_v59 }
 0x1bd   : > { %3599 = vmatmul.bf16.gmra.mxu1 %v3503_v50  ;;  %v2544_v21 = vrot.slane %v2428_v33, 2  ;;  %v2545_v15 = vrot.slane %v2429_v8, 2  ;;  %v5553_v22 = vunpack.c.h.bf16 %v4402_v59  ;;  %v2719_v42 = vunpack.c.l.bf16 %v2671_v31 }
 0x1be   : > { %v2304_v17 = vsel %vm1603_vm9, %v2302_v37, %v2303_v58  ;;  %v2306_v24 = vsel %vm1603_vm9, %v2303_v58, %v2305_v57  ;;  %v2547_v18 = vrot.slane %v2430_v51, 2  ;;  %v2757_v13 = vmul.f32 %v5557_v32, %v5551_v2 }
 0x1bf   : > { %v2384_v20 = vadd.f32 %v2304_v17, %v2142_v60  ;;  %v2385_v5 = vadd.f32 %v2306_v24, %v2143_v14  ;;  %v2546_v38 = vsel %vm1846_vm10, %v2544_v21, %v2545_v15  ;;  %v2758_v19 = vmul.f32 %v5557_v32, %v5553_v22  ;;  %v735_v60 = vpop.f32.mrf.mxu2  ;;  %v1354_v14 = vld [vmem:[#allocation3 + $0x2c] sm:$0x1] }
 0x1c0   : > { %v2548_v1 = vsel %vm1846_vm10, %v2545_v15, %v2547_v18  ;;  %v2833_v23 = vmul.f32 %v5565_v6, %v5551_v2  ;;  %v2834_v62 = vmul.f32 %v5565_v6, %v5553_v22  ;;  %v2835_v7 = vmul.f32 %v5565_v6, %v2719_v42 }
 0x1c1   : > { %v2626_v30 = vadd.f32 %v2546_v38, %v2384_v20  ;;  %v2627_v9 = vadd.f32 %v2548_v1, %v2385_v5  ;;  %v3075_v34 = vmul.f32 %v5572_v36, %v5551_v2  ;;  %v3076_v11 = vmul.f32 %v5572_v36, %v5553_v22 }
 0x1c2   : > { %v2949_v39 = vrot.slane %v2833_v23, 1  ;;  %v2950_v45 = vrot.slane %v2834_v62, 1  ;;  %v2952_v40 = vrot.slane %v2835_v7, 1  ;;  %v3077_v41 = vmul.f32 %v5572_v36, %v2719_v42 }
 0x1c3   : > { %v2789_v47 = vadd.f32 %v2757_v13, %v2626_v30  ;;  %v2790_v48 = vadd.f32 %v2758_v19, %v2627_v9  ;;  %v3191_v4 = vrot.slane %v3075_v34, 2  ;;  %v3192_v35 = vrot.slane %v3076_v11, 2 }
 0x1c4   : > { %v2951_v53 = vsel %vm1603_vm9, %v2949_v39, %v2950_v45  ;;  %v2953_v55 = vsel %vm1603_vm9, %v2950_v45, %v2952_v40  ;;  %v3194_v56 = vrot.slane %v3077_v41, 2  ;;  %v733_v59 = vadd.f32 %v5362_v29, %v732_v3 }
 0x1c5   : > { %v3031_v63 = vadd.f32 %v2951_v53, %v2789_v47  ;;  %v3032_v44 = vadd.f32 %v2953_v55, %v2790_v48  ;;  %v3193_v31 = vsel %vm1846_vm10, %v3191_v4, %v3192_v35  ;;  %v736_v50 = vadd.f32 %v5362_v29, %v735_v60  ;;  %v5591_v29 = vld [vmem:[%s6290_s4] ss:$0 sm:$0xff] }
 0x1c6   : > { %v3195_v37 = vsel %vm1846_vm10, %v3192_v35, %v3194_v56  ;;  %v776_v33 = vmax.f32 %v733_v59, 0.0  ;;  %v1400_v8 = vunpack.c.l.bf16 %v1352_v49  ;;  %v1401_v58 = vunpack.c.h.bf16 %v1352_v49  ;;  %v1326_v59 = vld [vmem:[#allocation3 + $0xbc] sm:$0x1] }
 0x1c7   : > { %v3273_v57 = vadd.f32 %v3193_v31, %v3031_v63  ;;  %v3274_v51 = vadd.f32 %v3195_v37, %v3032_v44  ;;  %v777_v21 = vmax.f32 %v736_v50, 0.0  ;;  %v1402_v15 = vunpack.c.l.bf16 %v1354_v14  ;;  %v1329_v31 = vld [vmem:[#allocation3 + $0xc0] sm:$0xf] }
 0x1c8   : > { %v812_v42 = vmin.f32 %v776_v33, 6.0  ;;  %v1447_v3 = vmul.f32 %v5430_v46, %v1400_v8  ;;  %v1448_v17 = vmul.f32 %v5430_v46, %v1401_v58  ;;  %v1516_v24 = vmul.f32 %v5373_v61, %v1400_v8  ;;  %v2003_v33 = vld [vmem:[#allocation3 + $0x38] sm:$0x1] }
 0x1c9   : > { %v3309_v18 = vadd.f32 %v5591_v29, %v3273_v57  ;;  %v3310_v13 = vadd.f32 %v5591_v29, %v3274_v51  ;;  %v813_v20 = vmin.f32 %v777_v21, 6.0  ;;  %v1517_v5 = vmul.f32 %v5373_v61, %v1401_v58 }
 0x1ca   : > { %v848_v38 = vpack.c.bf16 %v812_v42, %v812_v42  ;;  %v1518_v19 = vmul.f32 %v5373_v61, %v1402_v15  ;;  %v1619_v1 = vrot.slane %v1516_v24, 1  ;;  %v1759_v23 = vmul.f32 %v5465_v16, %v1400_v8  ;;  %v2648_v24 = vld [vmem:[#allocation3 + $0x3c] sm:$0xff]  }
 0x1cb   : > { %v3341_v62 = vmax.f32 %v3309_v18, 0.0  ;;  %v3342_v7 = vmax.f32 %v3310_v13, 0.0  ;;  %v849_v30 = vpack.c.bf16 %v813_v20, %v813_v20  ;;  %v1620_v9 = vrot.slane %v1517_v5, 1 }
 0x1cc   : > { %v1119_v34 = vshrl.u32 %v848_v38, 16  ;;  %v1122_v11 = vshll.u32 %v848_v38, 16  ;;  %v1622_v39 = vrot.slane %v1518_v19, 1  ;;  %v1760_v45 = vmul.f32 %v5465_v16, %v1401_v58 }
 0x1cd   : > { %v3373_v40 = vmin.f32 %v3341_v62, 6.0  ;;  %v3374_v41 = vmin.f32 %v3342_v7, 6.0  ;;  %v1128_v47 = vshrl.u32 %v849_v30, 16  ;;  %v1131_v48 = vshll.u32 %v849_v30, 16 }
 0x1ce   : > { %v1121_v4 = vrot.slane %v1119_v34, 7  ;;  %v1621_v35 = vsel %vm1603_vm9, %v1619_v1, %v1620_v9  ;;  %v1623_v49 = vsel %vm1603_vm9, %v1620_v9, %v1622_v39  ;;  %v1761_v53 = vmul.f32 %v5465_v16, %v1402_v15 }
 0x1cf   : > { %v3405_v55 = vpack.c.bf16 %v3373_v40, %v3373_v40  ;;  %v3406_v56 = vpack.c.bf16 %v3374_v41, %v3374_v41  ;;  %v5602_v60 = vrot.slane %v1128_v47, 7  ;;  %v1722_v14 = vadd.f32 %v1621_v35, %v1447_v3 }
 0x1d0   : > { %v1124_v63 = vor.u32 %v1122_v11, %v1121_v4  ;;  %v1126_v44 = vrot.slane %v1121_v4, 4  ;;  %v1723_v50 = vadd.f32 %v1623_v49, %v1448_v17  ;;  %v1862_v37 = vrot.slane %v1759_v23, 2  ;;  %v2650_v11 = vld [vmem:[#allocation3 + $0x44] sm:$0x1] }
 0x1d1   : > { %v3489_v8 = vunpack.c.l.b16 %v3405_v55  ;;  %v3490_v58 = vunpack.c.l.b16 %v3406_v56  ;;  %v1133_v57 = vor.u32 %v1131_v48, %v5602_v60  ;;  %v1134_v51 = vrot.slane %v5602_v60, 4 }
 0x1d2   : > { %v1125_v21 = vsel %vm5058_vm8, %v1117_v10, %v1124_v63  ;;  %v1327_v15 = vsel %vm4955_vm2, %v1126_v44, %v1326_v59  ;;  %v1863_v42 = vrot.slane %v1760_v45, 2  ;;  %v1865_v3 = vrot.slane %v1761_v53, 2 }
 0x1d3   : > { %v3511_v17 = vpack.c.b16 %v3490_v58, %v3489_v8  ;;  %1325 = vst [vmem:[#allocation3 + $0xb8] sm:$0xf] %v1125_v21  ;;  %v1330_v18 = vsel %vm5049_vm6, %v1133_v57, %v1329_v31  ;;  %v2051_v13 = vunpack.c.l.bf16 %v2003_v33  ;;  %v2096_v20 = vmul.f32 %v5478_v27, %v5474_v25 }
 0x1d4   : > { %1328 = vst [vmem:[#allocation3 + $0xbc] sm:$0x1] %v1327_v15  ;;  %v1864_v54 = vsel %vm1846_vm10, %v1862_v37, %v1863_v42  ;;  %v1866_v10 = vsel %vm1846_vm10, %v1863_v42, %v1865_v3  ;;  %v2097_v5 = vmul.f32 %v5478_v27, %v5476_v26  ;;  %v2165_v38 = vmul.f32 %v5482_v28, %v5474_v25  ;;  %v1376_v15 = vld [vmem:[#allocation3 + $0x84] sm:$0xff]  }
 0x1d5   : > { %3639 = vmatmul.bf16.gmra.mxu3 %v3511_v17  ;;  %1331 = vst [vmem:[#allocation3 + $0xc0] sm:$0xf] %v1330_v18  ;;  %v1965_v19 = vadd.f32 %v1864_v54, %v1722_v14  ;;  %v1966_v1 = vadd.f32 %v1866_v10, %v1723_v50  ;;  %v2166_v23 = vmul.f32 %v5482_v28, %v5476_v26  ;;  %v2696_v62 = vunpack.c.l.bf16 %v2648_v24  ;;  %v1378_v10 = vld [vmem:[#allocation3 + $0x8c] sm:$0x1] }
 0x1d6   : > { %v2167_v7 = vmul.f32 %v5482_v28, %v2051_v13  ;;  %v2267_v30 = vrot.slane %v2165_v38, 1  ;;  %v2407_v9 = vmul.f32 %v5488_v43, %v5474_v25  ;;  %v2408_v34 = vmul.f32 %v5488_v43, %v5476_v26 }
 0x1d7   : > { %v2128_v39 = vadd.f32 %v2096_v20, %v1965_v19  ;;  %v2129_v45 = vadd.f32 %v2097_v5, %v1966_v1  ;;  %v2268_v40 = vrot.slane %v2166_v23, 1  ;;  %v2409_v41 = vmul.f32 %v5488_v43, %v2051_v13 }
 0x1d8   : > { %v2270_v47 = vrot.slane %v2167_v7, 1  ;;  %v2509_v48 = vrot.slane %v2407_v9, 2  ;;  %v2510_v4 = vrot.slane %v2408_v34, 2  ;;  %v2697_v35 = vunpack.c.h.bf16 %v2648_v24 }
 0x1d9   : > { %v2269_v49 = vsel %vm1603_vm9, %v2267_v30, %v2268_v40  ;;  %v2512_v53 = vrot.slane %v2409_v41, 2  ;;  %v2698_v55 = vunpack.c.l.bf16 %v2650_v11  ;;  %v2743_v56 = vmul.f32 %v5557_v32, %v2696_v62 }
 0x1da   : > { %v2271_v59 = vsel %vm1603_vm9, %v2268_v40, %v2270_v47  ;;  %v2370_v14 = vadd.f32 %v2269_v49, %v2128_v39  ;;  %v2511_v63 = vsel %vm1846_vm10, %v2509_v48, %v2510_v4  ;;  %v2744_v44 = vmul.f32 %v5557_v32, %v2697_v35 }
 0x1db   : > { %v2371_v31 = vadd.f32 %v2271_v59, %v2129_v45  ;;  %v2513_v50 = vsel %vm1846_vm10, %v2510_v4, %v2512_v53  ;;  %v2812_v37 = vmul.f32 %v5565_v6, %v2696_v62  ;;  %v2813_v33 = vmul.f32 %v5565_v6, %v2697_v35  ;;  %v2027_v53 = vld [vmem:[#allocation3 + $0x98] sm:$0x1] }
 0x1dc   : > { %v2612_v8 = vadd.f32 %v2511_v63, %v2370_v14  ;;  %v2814_v58 = vmul.f32 %v5565_v6, %v2698_v55  ;;  %v3054_v57 = vmul.f32 %v5572_v36, %v2696_v62  ;;  %v3055_v21 = vmul.f32 %v5572_v36, %v2697_v35 }
 0x1dd   : > { %v2613_v42 = vadd.f32 %v2513_v50, %v2371_v31  ;;  %v2914_v3 = vrot.slane %v2812_v37, 1  ;;  %v2915_v24 = vrot.slane %v2813_v33, 1  ;;  %v3056_v17 = vmul.f32 %v5572_v36, %v2698_v55 }
 0x1de   : > { %v2775_v18 = vadd.f32 %v2743_v56, %v2612_v8  ;;  %v2917_v13 = vrot.slane %v2814_v58, 1  ;;  %v3156_v20 = vrot.slane %v3054_v57, 2  ;;  %v3157_v54 = vrot.slane %v3055_v21, 2 }
 0x1df   : > { %v2776_v5 = vadd.f32 %v2744_v44, %v2613_v42  ;;  %v2916_v38 = vsel %vm1603_vm9, %v2914_v3, %v2915_v24  ;;  %v3159_v19 = vrot.slane %v3056_v17, 2  ;;  %v1424_v1 = vunpack.c.l.bf16 %v1376_v15 }
 0x1e0   : > { %v2918_v23 = vsel %vm1603_vm9, %v2915_v24, %v2917_v13  ;;  %v3017_v62 = vadd.f32 %v2916_v38, %v2775_v18  ;;  %v3158_v7 = vsel %vm1846_vm10, %v3156_v20, %v3157_v54  ;;  %v1425_v30 = vunpack.c.h.bf16 %v1376_v15 }
 0x1e1   : > { %v3018_v9 = vadd.f32 %v2918_v23, %v2776_v5  ;;  %v3160_v34 = vsel %vm1846_vm10, %v3157_v54, %v3159_v19  ;;  %v1426_v11 = vunpack.c.l.bf16 %v1378_v10  ;;  %v1463_v39 = vmul.f32 %v5430_v46, %v1424_v1 }
 0x1e2   : > { %v3259_v45 = vadd.f32 %v3158_v7, %v3017_v62  ;;  %v1464_v40 = vmul.f32 %v5430_v46, %v1425_v30  ;;  %v1540_v41 = vmul.f32 %v5373_v61, %v1424_v1  ;;  %v1541_v47 = vmul.f32 %v5373_v61, %v1425_v30 }
 0x1e3   : > { %v3260_v48 = vadd.f32 %v3160_v34, %v3018_v9  ;;  %v1542_v4 = vmul.f32 %v5373_v61, %v1426_v11  ;;  %v1783_v35 = vmul.f32 %v5465_v16, %v1424_v1  ;;  %v1784_v49 = vmul.f32 %v5465_v16, %v1425_v30  ;;  %v2672_v30 = vld [vmem:[#allocation3 + $0x9c] sm:$0xff]   ;;  %v737_v9 = vpop.f32.mrf.mxu2 }
 0x1e4   : > { %v3295_v55 = vadd.f32 %v5591_v29, %v3259_v45  ;;  %v1659_v56 = vrot.slane %v1540_v41, 1  ;;  %v1660_v59 = vrot.slane %v1541_v47, 1  ;;  %v1785_v14 = vmul.f32 %v5465_v16, %v1426_v11 }
 0x1e5   : > { %v3296_v63 = vadd.f32 %v5591_v29, %v3260_v48  ;;  %v1662_v44 = vrot.slane %v1542_v4, 1  ;;  %v1902_v31 = vrot.slane %v1783_v35, 2  ;;  %v1903_v50 = vrot.slane %v1784_v49, 2  ;;  %v2674_v4 = vld [vmem:[#allocation3 + $0xa4] sm:$0x1] }
 0x1e6   : > { %v3327_v37 = vmax.f32 %v3295_v55, 0.0  ;;  %v1661_v33 = vsel %vm1603_vm9, %v1659_v56, %v1660_v59  ;;  %v1905_v61 = vrot.slane %v1785_v14, 2  ;;  %v2075_v8 = vunpack.c.l.bf16 %v2027_v53 }
 0x1e7   : > { %v3328_v58 = vmax.f32 %v3296_v63, 0.0  ;;  %v1663_v57 = vsel %vm1603_vm9, %v1660_v59, %v1662_v44  ;;  %v1738_v21 = vadd.f32 %v1661_v33, %v1463_v39  ;;  %v1904_v15 = vsel %vm1846_vm10, %v1902_v31, %v1903_v50 }
 0x1e8   : > { %v3359_v42 = vmin.f32 %v3327_v37, 6.0  ;;  %v1739_v3 = vadd.f32 %v1663_v57, %v1464_v40  ;;  %v1906_v24 = vsel %vm1846_vm10, %v1903_v50, %v1905_v61  ;;  %v2112_v17 = vmul.f32 %v5478_v27, %v5551_v2 }
 0x1e9   : > { %v3360_v18 = vmin.f32 %v3328_v58, 6.0  ;;  %v1981_v13 = vadd.f32 %v1904_v15, %v1738_v21  ;;  %v2113_v20 = vmul.f32 %v5478_v27, %v5553_v22  ;;  %v2189_v54 = vmul.f32 %v5482_v28, %v5551_v2 }
 0x1ea   : > { %v3391_v10 = vpack.c.bf16 %v3359_v42, %v3359_v42  ;;  %v1982_v5 = vadd.f32 %v1906_v24, %v1739_v3  ;;  %v2190_v38 = vmul.f32 %v5482_v28, %v5553_v22  ;;  %v2191_v19 = vmul.f32 %v5482_v28, %v2075_v8 }
 0x1eb   : > { %v3392_v1 = vpack.c.bf16 %v3360_v18, %v3360_v18  ;;  %v2144_v23 = vadd.f32 %v2112_v17, %v1981_v13  ;;  %v2307_v62 = vrot.slane %v2189_v54, 1  ;;  %v2431_v7 = vmul.f32 %v5488_v43, %v5551_v2 }
 0x1ec   : > { %v3475_v34 = vunpack.c.l.b16 %v3391_v10  ;;  %v2145_v11 = vadd.f32 %v2113_v20, %v1982_v5  ;;  %v2308_v39 = vrot.slane %v2190_v38, 1  ;;  %v2310_v45 = vrot.slane %v2191_v19, 1  ;;  %v1357_v5 = vld [vmem:[#allocation3 + $0x38] sm:$0x1] }
 0x1ed   : > { %v3476_v40 = vunpack.c.l.b16 %v3392_v1  ;;  %v2432_v41 = vmul.f32 %v5488_v43, %v5553_v22  ;;  %v2433_v47 = vmul.f32 %v5488_v43, %v2075_v8  ;;  %v2549_v48 = vrot.slane %v2431_v7, 2  ;;  %v740_v7 = vpop.f32.mrf.mxu2 }
 0x1ee   : > { %v2309_v35 = vsel %vm1603_vm9, %v2307_v62, %v2308_v39  ;;  %v2311_v49 = vsel %vm1603_vm9, %v2308_v39, %v2310_v45  ;;  %v2720_v53 = vunpack.c.l.bf16 %v2672_v30  ;;  %v2721_v55 = vunpack.c.h.bf16 %v2672_v30 }
 0x1ef   : > { %v3504_v56 = vpack.c.b16 %v3476_v40, %v3475_v34  ;;  %v2386_v59 = vadd.f32 %v2309_v35, %v2144_v23  ;;  %v2387_v14 = vadd.f32 %v2311_v49, %v2145_v11  ;;  %v2550_v63 = vrot.slane %v2432_v41, 2  ;;  %v5690_v23 = vld [vmem:[%s6288_s2] ss:$0 sm:$0xff] }
 0x1f0   : > { %v2552_v44 = vrot.slane %v2433_v47, 2  ;;  %v2722_v31 = vunpack.c.l.bf16 %v2674_v4  ;;  %v2759_v50 = vmul.f32 %v5557_v32, %v2720_v53  ;;  %v2760_v37 = vmul.f32 %v5557_v32, %v2721_v55 }
 0x1f1   : > { %3604 = vmatmul.bf16.gmra.mxu1 %v3504_v56  ;;  %v2551_v33 = vsel %vm1846_vm10, %v2549_v48, %v2550_v63  ;;  %v2836_v61 = vmul.f32 %v5565_v6, %v2720_v53  ;;  %v2837_v8 = vmul.f32 %v5565_v6, %v2721_v55  ;;  %v3078_v58 = vmul.f32 %v5572_v36, %v2720_v53 }
 0x1f2   : > { %v2553_v57 = vsel %vm1846_vm10, %v2550_v63, %v2552_v44  ;;  %v2628_v21 = vadd.f32 %v2551_v33, %v2386_v59  ;;  %v2838_v15 = vmul.f32 %v5565_v6, %v2722_v31  ;;  %v3079_v42 = vmul.f32 %v5572_v36, %v2721_v55  ;;  %v5701_v55 = vld [vmem:[#allocation8 + $0x1] ss:$0 sm:$0xff] }
 0x1f3   : > { %v2629_v3 = vadd.f32 %v2553_v57, %v2387_v14  ;;  %v2954_v24 = vrot.slane %v2836_v61, 1  ;;  %v2955_v17 = vrot.slane %v2837_v8, 1  ;;  %v3080_v18 = vmul.f32 %v5572_v36, %v2722_v31 }
 0x1f4   : > { %v2791_v13 = vadd.f32 %v2759_v50, %v2628_v21  ;;  %v2957_v20 = vrot.slane %v2838_v15, 1  ;;  %v3196_v54 = vrot.slane %v3078_v58, 2  ;;  %v3197_v10 = vrot.slane %v3079_v42, 2 }
 0x1f5   : > { %v2792_v38 = vadd.f32 %v2760_v37, %v2629_v3  ;;  %v2956_v19 = vsel %vm1603_vm9, %v2954_v24, %v2955_v17  ;;  %v3199_v1 = vrot.slane %v3080_v18, 2  ;;  %v738_v62 = vadd.f32 %v5690_v23, %v737_v9 }
 0x1f6   : > { %v2958_v30 = vsel %vm1603_vm9, %v2955_v17, %v2957_v20  ;;  %v3033_v34 = vadd.f32 %v2956_v19, %v2791_v13  ;;  %v3198_v11 = vsel %vm1846_vm10, %v3196_v54, %v3197_v10  ;;  %v741_v39 = vadd.f32 %v5690_v23, %v740_v7 }
 0x1f7   : > { %v3034_v45 = vadd.f32 %v2958_v30, %v2792_v38  ;;  %v3200_v40 = vsel %vm1846_vm10, %v3197_v10, %v3199_v1  ;;  %v778_v41 = vmax.f32 %v738_v62, 0.0  ;;  %v1405_v47 = vunpack.c.l.bf16 %v1357_v5  ;;  %v1333_v38 = vld [vmem:[#allocation3 + $0xc8] sm:$0x1] }
 0x1f8   : > { %v3275_v48 = vadd.f32 %v3198_v11, %v3033_v34  ;;  %v779_v4 = vmax.f32 %v741_v39, 0.0  ;;  %v1449_v35 = vmul.f32 %v5430_v46, %v5474_v25  ;;  %v1450_v9 = vmul.f32 %v5430_v46, %v5476_v26  ;;  %v1336_v34 = vld [vmem:[#allocation3 + $0xcc] sm:$0xf]  ;;  %v2004_v39 = vld [vmem:[#allocation3 + $0x3c] sm:$0xff]  }
 0x1f9   : > { %v3276_v49 = vadd.f32 %v3200_v40, %v3034_v45  ;;  %v814_v53 = vmin.f32 %v778_v41, 6.0  ;;  %v1519_v56 = vmul.f32 %v5701_v55, %v5474_v25  ;;  %v1520_v59 = vmul.f32 %v5701_v55, %v5476_v26 }
 0x1fa   : > { %v3311_v14 = vadd.f32 %v5591_v29, %v3275_v48  ;;  %v815_v63 = vmin.f32 %v779_v4, 6.0  ;;  %v1521_v44 = vmul.f32 %v5701_v55, %v1405_v47  ;;  %v1762_v31 = vmul.f32 %v5465_v16, %v5474_v25  ;;  %v2006_v4 = vld [vmem:[#allocation3 + $0x44] sm:$0x1] }
 0x1fb   : > { %v3312_v46 = vadd.f32 %v5591_v29, %v3276_v49  ;;  %v850_v50 = vpack.c.bf16 %v814_v53, %v814_v53  ;;  %v1624_v37 = vrot.slane %v1519_v56, 1  ;;  %v1625_v33 = vrot.slane %v1520_v59, 1  ;;  %v4399_v49 = vld [vmem:[#allocation3 + $0x48] sm:$0xff]  }
 0x1fc   : > { %v3343_v61 = vmax.f32 %v3311_v14, 0.0  ;;  %v851_v8 = vpack.c.bf16 %v815_v63, %v815_v63  ;;  %v1627_v58 = vrot.slane %v1521_v44, 1  ;;  %v1763_v57 = vmul.f32 %v5465_v16, %v5476_v26 }
 0x1fd   : > { %v3344_v21 = vmax.f32 %v3312_v46, 0.0  ;;  %v1136_v15 = vshrl.u32 %v850_v50, 16  ;;  %v1139_v42 = vshll.u32 %v850_v50, 16  ;;  %v1626_v3 = vsel %vm1603_vm9, %v1624_v37, %v1625_v33 }
 0x1fe   : > { %v3375_v24 = vmin.f32 %v3343_v61, 6.0  ;;  %v1145_v17 = vshrl.u32 %v851_v8, 16  ;;  %v1148_v18 = vshll.u32 %v851_v8, 16  ;;  %v1628_v25 = vsel %vm1603_vm9, %v1625_v33, %v1627_v58  ;;  %v2653_v58 = vld [vmem:[#allocation3 + $0x50] sm:$0x1] }
 0x1ff   : > { %v3376_v13 = vmin.f32 %v3344_v21, 6.0  ;;  %v1138_v20 = vrot.slane %v1136_v15, 7  ;;  %v1724_v54 = vadd.f32 %v1626_v3, %v1449_v35  ;;  %v1725_v10 = vadd.f32 %v1628_v25, %v1450_v9 }
 0x200   : > { %v3407_v5 = vpack.c.bf16 %v3375_v24, %v3375_v24  ;;  %v5716_v19 = vrot.slane %v1145_v17, 7  ;;  %v1764_v26 = vmul.f32 %v5465_v16, %v1405_v47  ;;  %v1867_v1 = vrot.slane %v1762_v31, 2 }
 0x201   : > { %v3408_v62 = vpack.c.bf16 %v3376_v13, %v3376_v13  ;;  %v1141_v7 = vor.u32 %v1139_v42, %v1138_v20  ;;  %v1143_v30 = vrot.slane %v1138_v20, 4  ;;  %v1868_v11 = vrot.slane %v1763_v57, 2 }
 0x202   : > { %v3491_v45 = vunpack.c.l.b16 %v3407_v5  ;;  %v1150_v40 = vor.u32 %v1148_v18, %v5716_v19  ;;  %v1151_v41 = vrot.slane %v5716_v19, 4  ;;  %v1870_v48 = vrot.slane %v1764_v26, 2 }
 0x203   : > { %v3492_v35 = vunpack.c.l.b16 %v3408_v62  ;;  %v1142_v16 = vsel %vm5058_vm8, %v1134_v51, %v1141_v7  ;;  %v1334_v47 = vsel %vm4955_vm2, %v1143_v30, %v1333_v38  ;;  %v1869_v9 = vsel %vm1846_vm10, %v1867_v1, %v1868_v11  ;;  %v1381_v62 = vld [vmem:[#allocation3 + $0x98] sm:$0x1] }
 0x204   : > { %1332 = vst [vmem:[#allocation3 + $0xc4] sm:$0xf] %v1142_v16  ;;  %v1337_v53 = vsel %vm5049_vm6, %v1150_v40, %v1336_v34  ;;  %v1871_v56 = vsel %vm1846_vm10, %v1868_v11, %v1870_v48  ;;  %v1967_v59 = vadd.f32 %v1869_v9, %v1724_v54  ;;  %v2052_v14 = vunpack.c.l.bf16 %v2004_v39 }
 0x205   : > { %v3512_v63 = vpack.c.b16 %v3492_v35, %v3491_v45  ;;  %1335 = vst [vmem:[#allocation3 + $0xc8] sm:$0x1] %v1334_v47  ;;  %v1968_v60 = vadd.f32 %v1871_v56, %v1725_v10  ;;  %v2053_v44 = vunpack.c.h.bf16 %v2004_v39  ;;  %v2054_v31 = vunpack.c.l.bf16 %v2006_v4 }
 0x206   : > { %1338 = vst [vmem:[#allocation3 + $0xcc] sm:$0xf] %v1337_v53  ;;  %v2098_v51 = vmul.f32 %v5478_v27, %v2052_v14  ;;  %v2168_v46 = vmul.f32 %v5482_v28, %v2052_v14  ;;  %v2410_v50 = vmul.f32 %v5488_v43, %v2052_v14  ;;  %v5734_v37 = vunpack.c.l.bf16 %v4399_v49 }
 0x207   : > { %3644 = vmatmul.bf16.gmra.mxu3 %v3512_v63  ;;  %v2099_v52 = vmul.f32 %v5478_v27, %v2053_v44  ;;  %v2169_v33 = vmul.f32 %v5482_v28, %v2053_v44  ;;  %v2170_v61 = vmul.f32 %v5482_v28, %v2054_v31  ;;  %v2411_v8 = vmul.f32 %v5488_v43, %v2053_v44  ;;  %v5763_v63 = vld [vmem:[#allocation8] ss:$0 sm:$0xff] }
 0x208   : > { %v2130_v57 = vadd.f32 %v2098_v51, %v1967_v59  ;;  %v2272_v21 = vrot.slane %v2168_v46, 1  ;;  %v2412_v15 = vmul.f32 %v5488_v43, %v2054_v31  ;;  %v2514_v42 = vrot.slane %v2410_v50, 2 }
 0x209   : > { %v2131_v3 = vadd.f32 %v2099_v52, %v1968_v60  ;;  %v2273_v24 = vrot.slane %v2169_v33, 1  ;;  %v2275_v17 = vrot.slane %v2170_v61, 1  ;;  %v2515_v18 = vrot.slane %v2411_v8, 2  ;;  %v5776_v8 = vld [vmem:[#allocation8 + $0x2] ss:$0 sm:$0xff] }
 0x20a   : > { %v2517_v25 = vrot.slane %v2412_v15, 2  ;;  %v5741_v13 = vunpack.c.h.bf16 %v4399_v49  ;;  %v2701_v27 = vunpack.c.l.bf16 %v2653_v58  ;;  %v2745_v20 = vmul.f32 %v5557_v32, %v5734_v37 }
 0x20b   : > { %v2274_v28 = vsel %vm1603_vm9, %v2272_v21, %v2273_v24  ;;  %v2276_v54 = vsel %vm1603_vm9, %v2273_v24, %v2275_v17  ;;  %v2516_v10 = vsel %vm1846_vm10, %v2514_v42, %v2515_v18  ;;  %v2815_v43 = vmul.f32 %v5565_v6, %v5734_v37 }
 0x20c   : > { %v2372_v5 = vadd.f32 %v2274_v28, %v2130_v57  ;;  %v2373_v38 = vadd.f32 %v2276_v54, %v2131_v3  ;;  %v2518_v26 = vsel %vm1846_vm10, %v2515_v18, %v2517_v25  ;;  %v2746_v1 = vmul.f32 %v5557_v32, %v5741_v13  ;;  %v2028_v3 = vld [vmem:[#allocation3 + $0x9c] sm:$0xff]  }
 0x20d   : > { %v2816_v7 = vmul.f32 %v5565_v6, %v5741_v13  ;;  %v2817_v30 = vmul.f32 %v5565_v6, %v2701_v27  ;;  %v2919_v34 = vrot.slane %v2815_v43, 1  ;;  %v3057_v11 = vmul.f32 %v5572_v36, %v5734_v37 }
 0x20e   : > { %v2614_v39 = vadd.f32 %v2516_v10, %v2372_v5  ;;  %v2615_v45 = vadd.f32 %v2518_v26, %v2373_v38  ;;  %v3058_v40 = vmul.f32 %v5572_v36, %v5741_v13  ;;  %v3059_v48 = vmul.f32 %v5572_v36, %v2701_v27  ;;  %v2030_v10 = vld [vmem:[#allocation3 + $0xa4] sm:$0x1] }
 0x20f   : > { %v2920_v4 = vrot.slane %v2816_v7, 1  ;;  %v2922_v35 = vrot.slane %v2817_v30, 1  ;;  %v3161_v16 = vrot.slane %v3057_v11, 2  ;;  %v1429_v47 = vunpack.c.l.bf16 %v1381_v62  ;;  %v5789_v11 = vld [vmem:[#allocation8 + $0x3] ss:$0 sm:$0xff] }
 0x210   : > { %v2777_v9 = vadd.f32 %v2745_v20, %v2614_v39  ;;  %v2778_v49 = vadd.f32 %v2746_v1, %v2615_v45  ;;  %v3162_v53 = vrot.slane %v3058_v40, 2  ;;  %v3164_v56 = vrot.slane %v3059_v48, 2 }
 0x211   : > { %v2921_v59 = vsel %vm1603_vm9, %v2919_v34, %v2920_v4  ;;  %v2923_v14 = vsel %vm1603_vm9, %v2920_v4, %v2922_v35  ;;  %v1465_v60 = vmul.f32 %v5763_v63, %v5551_v2  ;;  %v1466_v44 = vmul.f32 %v5763_v63, %v5553_v22 }
 0x212   : > { %v3019_v31 = vadd.f32 %v2921_v59, %v2777_v9  ;;  %v3020_v51 = vadd.f32 %v2923_v14, %v2778_v49  ;;  %v3163_v46 = vsel %vm1846_vm10, %v3161_v16, %v3162_v53  ;;  %v3165_v50 = vsel %vm1846_vm10, %v3162_v53, %v3164_v56  ;;  %v5793_v16 = vld [vmem:[#allocation8 + $0x4] ss:$0 sm:$0xff]  ;;  %v5798_v14 = vld [vmem:[#allocation8 + $0x5] ss:$0 sm:$0xff] }
 0x213   : > { %v1543_v52 = vmul.f32 %v5701_v55, %v5551_v2  ;;  %v1544_v33 = vmul.f32 %v5701_v55, %v5553_v22  ;;  %v1545_v61 = vmul.f32 %v5701_v55, %v1429_v47  ;;  %v1786_v58 = vmul.f32 %v5776_v8, %v5551_v2 }
 0x214   : > { %v3261_v57 = vadd.f32 %v3163_v46, %v3019_v31  ;;  %v3262_v21 = vadd.f32 %v3165_v50, %v3020_v51  ;;  %v1787_v15 = vmul.f32 %v5776_v8, %v5553_v22  ;;  %v1788_v42 = vmul.f32 %v5776_v8, %v1429_v47 }
 0x215   : > { %v1664_v24 = vrot.slane %v1543_v52, 1  ;;  %v1665_v17 = vrot.slane %v1544_v33, 1  ;;  %v1667_v18 = vrot.slane %v1545_v61, 1  ;;  %v1907_v25 = vrot.slane %v1786_v58, 2 }
 0x216   : > { %v3297_v27 = vadd.f32 %v5591_v29, %v3261_v57  ;;  %v3298_v20 = vadd.f32 %v5591_v29, %v3262_v21  ;;  %v1908_v28 = vrot.slane %v1787_v15, 2  ;;  %v1910_v54 = vrot.slane %v1788_v42, 2  ;;  %v2677_v57 = vld [vmem:[#allocation3 + $0xb0] sm:$0x1] }
 0x217   : > { %v1666_v2 = vsel %vm1603_vm9, %v1664_v24, %v1665_v17  ;;  %v1668_v43 = vsel %vm1603_vm9, %v1665_v17, %v1667_v18  ;;  %v2076_v5 = vunpack.c.l.bf16 %v2028_v3  ;;  %v2077_v22 = vunpack.c.h.bf16 %v2028_v3  ;;  %v742_v24 = vpop.f32.mrf.mxu2 }
 0x218   : > { %v3329_v38 = vmax.f32 %v3297_v27, 0.0  ;;  %v3330_v26 = vmax.f32 %v3298_v20, 0.0  ;;  %v1740_v1 = vadd.f32 %v1666_v2, %v1465_v60  ;;  %v1741_v62 = vadd.f32 %v1668_v43, %v1466_v44  ;;  %v4403_v44 = vld [vmem:[#allocation3 + $0xa8] sm:$0xff]  }
 0x219   : > { %v1909_v7 = vsel %vm1846_vm10, %v1907_v25, %v1908_v28  ;;  %v1911_v30 = vsel %vm1846_vm10, %v1908_v28, %v1910_v54  ;;  %v2078_v34 = vunpack.c.l.bf16 %v2030_v10  ;;  %v2114_v39 = vmul.f32 %v5789_v11, %v2076_v5 }
 0x21a   : > { %v3361_v45 = vmin.f32 %v3329_v38, 6.0  ;;  %v3362_v40 = vmin.f32 %v3330_v26, 6.0  ;;  %v1983_v48 = vadd.f32 %v1909_v7, %v1740_v1  ;;  %v1984_v4 = vadd.f32 %v1911_v30, %v1741_v62 }
 0x21b   : > { %v2115_v35 = vmul.f32 %v5789_v11, %v2077_v22  ;;  %v2192_v47 = vmul.f32 %v5793_v16, %v2076_v5  ;;  %v2193_v9 = vmul.f32 %v5793_v16, %v2077_v22  ;;  %v2194_v49 = vmul.f32 %v5793_v16, %v2078_v34 }
 0x21c   : > { %v3393_v53 = vpack.c.bf16 %v3361_v45, %v3361_v45  ;;  %v3394_v56 = vpack.c.bf16 %v3362_v40, %v3362_v40  ;;  %v2146_v59 = vadd.f32 %v2114_v39, %v1983_v48  ;;  %v2434_v60 = vmul.f32 %v5798_v14, %v2076_v5  ;;  %v1358_v45 = vld [vmem:[#allocation3 + $0x3c] sm:$0xff]  }
 0x21d   : > { %v2147_v31 = vadd.f32 %v2115_v35, %v1984_v4  ;;  %v2312_v51 = vrot.slane %v2192_v47, 1  ;;  %v2313_v46 = vrot.slane %v2193_v9, 1  ;;  %v2315_v50 = vrot.slane %v2194_v49, 1  ;;  %v1360_v49 = vld [vmem:[#allocation3 + $0x44] sm:$0x1] }
 0x21e   : > { %v3477_v52 = vunpack.c.l.b16 %v3393_v53  ;;  %v3478_v33 = vunpack.c.l.b16 %v3394_v56  ;;  %v2435_v61 = vmul.f32 %v5798_v14, %v2077_v22  ;;  %v2436_v58 = vmul.f32 %v5798_v14, %v2078_v34 }
 0x21f   : > { %v2314_v21 = vsel %vm1603_vm9, %v2312_v51, %v2313_v46  ;;  %v2316_v15 = vsel %vm1603_vm9, %v2313_v46, %v2315_v50  ;;  %v2554_v42 = vrot.slane %v2434_v60, 2  ;;  %v5805_v3 = vunpack.c.l.bf16 %v4403_v44 }
 0x220   : > { %v3505_v17 = vpack.c.b16 %v3478_v33, %v3477_v52  ;;  %v2388_v18 = vadd.f32 %v2314_v21, %v2146_v59  ;;  %v2389_v25 = vadd.f32 %v2316_v15, %v2147_v31  ;;  %v2555_v27 = vrot.slane %v2435_v61, 2 }
 0x221   : > { %v2557_v20 = vrot.slane %v2436_v58, 2  ;;  %v5807_v28 = vunpack.c.h.bf16 %v4403_v44  ;;  %v2725_v54 = vunpack.c.l.bf16 %v2677_v57  ;;  %v2761_v10 = vmul.f32 %v5557_v32, %v5805_v3 }
 0x222   : > { %3609 = vmatmul.bf16.gmra.mxu1 %v3505_v17  ;;  %v2556_v2 = vsel %vm1846_vm10, %v2554_v42, %v2555_v27  ;;  %v2839_v43 = vmul.f32 %v5565_v6, %v5805_v3  ;;  %v3081_v5 = vmul.f32 %v5572_v36, %v5805_v3  ;;  %v743_v22 = vadd.f32 %v5690_v23, %v742_v24 }
 0x223   : > { %v2558_v38 = vsel %vm1846_vm10, %v2555_v27, %v2557_v20  ;;  %v2630_v26 = vadd.f32 %v2556_v2, %v2388_v18  ;;  %v2762_v1 = vmul.f32 %v5557_v32, %v5807_v28  ;;  %v2840_v62 = vmul.f32 %v5565_v6, %v5807_v28 }
 0x224   : > { %v2631_v7 = vadd.f32 %v2558_v38, %v2389_v25  ;;  %v2841_v30 = vmul.f32 %v5565_v6, %v2725_v54  ;;  %v2959_v34 = vrot.slane %v2839_v43, 1  ;;  %v3082_v39 = vmul.f32 %v5572_v36, %v5807_v28 }
 0x225   : > { %v2793_v40 = vadd.f32 %v2761_v10, %v2630_v26  ;;  %v2960_v48 = vrot.slane %v2840_v62, 1  ;;  %v3083_v23 = vmul.f32 %v5572_v36, %v2725_v54  ;;  %v3201_v4 = vrot.slane %v3081_v5, 2 }
 0x226   : > { %v2794_v35 = vadd.f32 %v2762_v1, %v2631_v7  ;;  %v2962_v47 = vrot.slane %v2841_v30, 1  ;;  %v3202_v9 = vrot.slane %v3082_v39, 2  ;;  %v780_v32 = vmax.f32 %v743_v22, 0.0  ;;  %v1340_v1 = vld [vmem:[#allocation3 + $0xd4] sm:$0x1] }
 0x227   : > { %v2961_v53 = vsel %vm1603_vm9, %v2959_v34, %v2960_v48  ;;  %v3204_v56 = vrot.slane %v3083_v23, 2  ;;  %v1406_v59 = vunpack.c.l.bf16 %v1358_v45  ;;  %v1407_v6 = vunpack.c.h.bf16 %v1358_v45 }
 0x228   : > { %v2963_v60 = vsel %vm1603_vm9, %v2960_v48, %v2962_v47  ;;  %v3035_v44 = vadd.f32 %v2961_v53, %v2793_v40  ;;  %v3203_v31 = vsel %vm1846_vm10, %v3201_v4, %v3202_v9  ;;  %v816_v51 = vmin.f32 %v780_v32, 6.0  ;;  %v2009_v40 = vld [vmem:[#allocation3 + $0x50] sm:$0x1] }
 0x229   : > { %v3036_v46 = vadd.f32 %v2963_v60, %v2794_v35  ;;  %v3205_v36 = vsel %vm1846_vm10, %v3202_v9, %v3204_v56  ;;  %v1408_v50 = vunpack.c.l.bf16 %v1360_v49  ;;  %v1451_v52 = vmul.f32 %v5763_v63, %v1406_v59 }
 0x22a   : > { %v3277_v33 = vadd.f32 %v3203_v31, %v3035_v44  ;;  %v852_v61 = vpack.c.bf16 %v816_v51, %v816_v51  ;;  %v1452_v58 = vmul.f32 %v5763_v63, %v1407_v6  ;;  %v1522_v57 = vmul.f32 %v5701_v55, %v1406_v59 }
 0x22b   : > { %v3278_v21 = vadd.f32 %v3205_v36, %v3036_v46  ;;  %v1523_v15 = vmul.f32 %v5701_v55, %v1407_v6  ;;  %v1524_v42 = vmul.f32 %v5701_v55, %v1408_v50  ;;  %v1765_v24 = vmul.f32 %v5776_v8, %v1406_v59  ;;  %v2654_v46 = vld [vmem:[#allocation3 + $0x54] sm:$0xff]  }
 0x22c   : > { %v3313_v17 = vadd.f32 %v5591_v29, %v3277_v33  ;;  %v1153_v18 = vshrl.u32 %v852_v61, 16  ;;  %v1156_v25 = vshll.u32 %v852_v61, 16  ;;  %v1629_v27 = vrot.slane %v1522_v57, 1  ;;  %v2656_v61 = vld [vmem:[#allocation3 + $0x5c] sm:$0x1] }
 0x22d   : > { %v3314_v20 = vadd.f32 %v5591_v29, %v3278_v21  ;;  %v1630_v54 = vrot.slane %v1523_v15, 1  ;;  %v1632_v10 = vrot.slane %v1524_v42, 1  ;;  %v1766_v2 = vmul.f32 %v5776_v8, %v1407_v6 }
 0x22e   : > { %v3345_v43 = vmax.f32 %v3313_v17, 0.0  ;;  %v1155_v5 = vrot.slane %v1153_v18, 7  ;;  %v1767_v22 = vmul.f32 %v5776_v8, %v1408_v50  ;;  %v1872_v38 = vrot.slane %v1765_v24, 2 }
 0x22f   : > { %v3346_v26 = vmax.f32 %v3314_v20, 0.0  ;;  %v1631_v62 = vsel %vm1603_vm9, %v1629_v27, %v1630_v54  ;;  %v1633_v7 = vsel %vm1603_vm9, %v1630_v54, %v1632_v10  ;;  %v1873_v30 = vrot.slane %v1766_v2, 2 }
 0x230   : > { %v3377_v34 = vmin.f32 %v3345_v43, 6.0  ;;  %v1158_v39 = vor.u32 %v1156_v25, %v1155_v5  ;;  %v1160_v45 = vrot.slane %v1155_v5, 4  ;;  %v1726_v29 = vadd.f32 %v1631_v62, %v1451_v52  ;;  %v5867_v5 = vld [vmem:[#allocation8 + $0x6] ss:$0 sm:$0xff] }
 0x231   : > { %v3378_v48 = vmin.f32 %v3346_v26, 6.0  ;;  %v1727_v23 = vadd.f32 %v1633_v7, %v1452_v58  ;;  %v1874_v4 = vsel %vm1846_vm10, %v1872_v38, %v1873_v30  ;;  %v1875_v35 = vrot.slane %v1767_v22, 2 }
 0x232   : > { %v3409_v47 = vpack.c.bf16 %v3377_v34, %v3377_v34  ;;  %v1159_v9 = vsel %vm5058_vm8, %v1151_v41, %v1158_v39  ;;  %v1341_v32 = vsel %vm4955_vm2, %v1160_v45, %v1340_v1  ;;  %v1969_v49 = vadd.f32 %v1874_v4, %v1726_v29  ;;  %v5872_v1 = vld [vmem:[#allocation8 + $0x7] ss:$0 sm:$0xff]  ;;  %v5877_v45 = vld [vmem:[#allocation8 + $0x8] ss:$0 sm:$0xff] }
 0x233   : > { %v3410_v53 = vpack.c.bf16 %v3378_v48, %v3378_v48  ;;  %1339 = vst [vmem:[#allocation3 + $0xd0] sm:$0xf] %v1159_v9  ;;  %v1876_v56 = vsel %vm1846_vm10, %v1873_v30, %v1875_v35  ;;  %v2057_v59 = vunpack.c.l.bf16 %v2009_v40  ;;  %v2100_v6 = vmul.f32 %v5789_v11, %v5734_v37  ;;  %v1382_v40 = vld [vmem:[#allocation3 + $0x9c] sm:$0xff]  }
 0x234   : > { %v3493_v60 = vunpack.c.l.b16 %v3409_v47  ;;  %1342 = vst [vmem:[#allocation3 + $0xd4] sm:$0x1] %v1341_v32  ;;  %v1970_v44 = vadd.f32 %v1876_v56, %v1727_v23  ;;  %v2101_v19 = vmul.f32 %v5789_v11, %v5741_v13  ;;  %v2171_v12 = vmul.f32 %v5793_v16, %v5734_v37  ;;  %v1384_v47 = vld [vmem:[#allocation3 + $0xa4] sm:$0x1] }
 0x235   : > { %v3494_v0 = vunpack.c.l.b16 %v3410_v53  ;;  %v2132_v41 = vadd.f32 %v2100_v6, %v1969_v49  ;;  %v2172_v31 = vmul.f32 %v5793_v16, %v5741_v13  ;;  %v2173_v51 = vmul.f32 %v5793_v16, %v2057_v59 }
 0x236   : > { %v2133_v36 = vadd.f32 %v2101_v19, %v1970_v44  ;;  %v2277_v50 = vrot.slane %v2171_v12, 1  ;;  %v2413_v52 = vmul.f32 %v5798_v14, %v5734_v37  ;;  %v2414_v33 = vmul.f32 %v5798_v14, %v5741_v13 }
 0x237   : > { %v3513_v58 = vpack.c.b16 %v3494_v0, %v3493_v60  ;;  %v2278_v57 = vrot.slane %v2172_v31, 1  ;;  %v2280_v21 = vrot.slane %v2173_v51, 1  ;;  %v2415_v15 = vmul.f32 %v5798_v14, %v2057_v59 }
 0x238   : > { %v2519_v42 = vrot.slane %v2413_v52, 2  ;;  %v2520_v24 = vrot.slane %v2414_v33, 2  ;;  %v2702_v17 = vunpack.c.l.bf16 %v2654_v46  ;;  %v2703_v18 = vunpack.c.h.bf16 %v2654_v46 }
 0x239   : > { %3649 = vmatmul.bf16.gmra.mxu3 %v3513_v58  ;;  %v2279_v25 = vsel %vm1603_vm9, %v2277_v50, %v2278_v57  ;;  %v2281_v27 = vsel %vm1603_vm9, %v2278_v57, %v2280_v21  ;;  %v2522_v20 = vrot.slane %v2415_v15, 2  ;;  %v2704_v54 = vunpack.c.l.bf16 %v2656_v61  ;;  %v2033_v15 = vld [vmem:[#allocation3 + $0xb0] sm:$0x1] }
 0x23a   : > { %v2374_v10 = vadd.f32 %v2279_v25, %v2132_v41  ;;  %v2375_v2 = vadd.f32 %v2281_v27, %v2133_v36  ;;  %v2521_v43 = vsel %vm1846_vm10, %v2519_v42, %v2520_v24  ;;  %v2747_v22 = vmul.f32 %v5867_v5, %v2702_v17  ;;  %v5896_v42 = vld [vmem:[%s6290_s4] ss:$0 sm:$0xff] }
 0x23b   : > { %v2523_v38 = vsel %vm1846_vm10, %v2520_v24, %v2522_v20  ;;  %v2748_v26 = vmul.f32 %v5867_v5, %v2703_v18  ;;  %v2818_v62 = vmul.f32 %v5872_v1, %v2702_v17  ;;  %v2819_v7 = vmul.f32 %v5872_v1, %v2703_v18 }
 0x23c   : > { %v2616_v30 = vadd.f32 %v2521_v43, %v2374_v10  ;;  %v2617_v34 = vadd.f32 %v2523_v38, %v2375_v2  ;;  %v2820_v39 = vmul.f32 %v5872_v1, %v2704_v54  ;;  %v3060_v29 = vmul.f32 %v5877_v45, %v2702_v17 }
 0x23d   : > { %v2924_v48 = vrot.slane %v2818_v62, 1  ;;  %v2925_v23 = vrot.slane %v2819_v7, 1  ;;  %v3061_v4 = vmul.f32 %v5877_v45, %v2703_v18  ;;  %v3062_v35 = vmul.f32 %v5877_v45, %v2704_v54 }
 0x23e   : > { %v2779_v9 = vadd.f32 %v2747_v22, %v2616_v30  ;;  %v2780_v32 = vadd.f32 %v2748_v26, %v2617_v34  ;;  %v2927_v49 = vrot.slane %v2820_v39, 1  ;;  %v3166_v53 = vrot.slane %v3060_v29, 2 }
 0x23f   : > { %v2926_v56 = vsel %vm1603_vm9, %v2924_v48, %v2925_v23  ;;  %v3167_v59 = vrot.slane %v3061_v4, 2  ;;  %v3169_v6 = vrot.slane %v3062_v35, 2  ;;  %v1430_v60 = vunpack.c.l.bf16 %v1382_v40 }
 0x240   : > { %v2928_v44 = vsel %vm1603_vm9, %v2925_v23, %v2927_v49  ;;  %v3021_v19 = vadd.f32 %v2926_v56, %v2779_v9  ;;  %v1431_v12 = vunpack.c.h.bf16 %v1382_v40  ;;  %v1432_v0 = vunpack.c.l.bf16 %v1384_v47 }
 0x241   : > { %v3022_v41 = vadd.f32 %v2928_v44, %v2780_v32  ;;  %v3168_v31 = vsel %vm1846_vm10, %v3166_v53, %v3167_v59  ;;  %v3170_v51 = vsel %vm1846_vm10, %v3167_v59, %v3169_v6  ;;  %v1467_v46 = vmul.f32 %v5763_v63, %v1430_v60 }
 0x242   : > { %v3263_v36 = vadd.f32 %v3168_v31, %v3021_v19  ;;  %v1468_v50 = vmul.f32 %v5763_v63, %v1431_v12  ;;  %v1546_v52 = vmul.f32 %v5701_v55, %v1430_v60  ;;  %v1547_v33 = vmul.f32 %v5701_v55, %v1431_v12 }
 0x243   : > { %v3264_v61 = vadd.f32 %v3170_v51, %v3022_v41  ;;  %v1548_v58 = vmul.f32 %v5701_v55, %v1432_v0  ;;  %v1789_v57 = vmul.f32 %v5776_v8, %v1430_v60  ;;  %v1790_v21 = vmul.f32 %v5776_v8, %v1431_v12  ;;  %v2678_v60 = vld [vmem:[#allocation3 + $0xb4] sm:$0xff]  }
 0x244   : > { %v3299_v24 = vadd.f32 %v5896_v42, %v3263_v36  ;;  %v1669_v17 = vrot.slane %v1546_v52, 1  ;;  %v1670_v18 = vrot.slane %v1547_v33, 1  ;;  %v1791_v25 = vmul.f32 %v5776_v8, %v1432_v0  ;;  %v2680_v36 = vld [vmem:[#allocation3 + $0xbc] sm:$0x1] }
 0x245   : > { %v3300_v27 = vadd.f32 %v5896_v42, %v3264_v61  ;;  %v1672_v20 = vrot.slane %v1548_v58, 1  ;;  %v1912_v54 = vrot.slane %v1789_v57, 2  ;;  %v1913_v10 = vrot.slane %v1790_v21, 2 }
 0x246   : > { %v3331_v2 = vmax.f32 %v3299_v24, 0.0  ;;  %v1671_v43 = vsel %vm1603_vm9, %v1669_v17, %v1670_v18  ;;  %v1915_v22 = vrot.slane %v1791_v25, 2  ;;  %v2081_v38 = vunpack.c.l.bf16 %v2033_v15 }
 0x247   : > { %v3332_v26 = vmax.f32 %v3300_v27, 0.0  ;;  %v1673_v62 = vsel %vm1603_vm9, %v1670_v18, %v1672_v20  ;;  %v1742_v7 = vadd.f32 %v1671_v43, %v1467_v46  ;;  %v1914_v30 = vsel %vm1846_vm10, %v1912_v54, %v1913_v10 }
 0x248   : > { %v3363_v34 = vmin.f32 %v3331_v2, 6.0  ;;  %v1743_v39 = vadd.f32 %v1673_v62, %v1468_v50  ;;  %v1916_v29 = vsel %vm1846_vm10, %v1913_v10, %v1915_v22  ;;  %v2116_v40 = vmul.f32 %v5789_v11, %v5805_v3 }
 0x249   : > { %v3364_v48 = vmin.f32 %v3332_v26, 6.0  ;;  %v1985_v23 = vadd.f32 %v1914_v30, %v1742_v7  ;;  %v2117_v4 = vmul.f32 %v5789_v11, %v5807_v28  ;;  %v2195_v35 = vmul.f32 %v5793_v16, %v5805_v3  ;;  %v1363_v26 = vld [vmem:[#allocation3 + $0x50] sm:$0x1] }
 0x24a   : > { %v3395_v47 = vpack.c.bf16 %v3363_v34, %v3363_v34  ;;  %v1986_v9 = vadd.f32 %v1916_v29, %v1743_v39  ;;  %v2196_v32 = vmul.f32 %v5793_v16, %v5807_v28  ;;  %v2197_v49 = vmul.f32 %v5793_v16, %v2081_v38 }
 0x24b   : > { %v3396_v53 = vpack.c.bf16 %v3364_v48, %v3364_v48  ;;  %v2148_v56 = vadd.f32 %v2116_v40, %v1985_v23  ;;  %v2317_v59 = vrot.slane %v2195_v35, 1  ;;  %v2437_v6 = vmul.f32 %v5798_v14, %v5805_v3 }
 0x24c   : > { %v3479_v44 = vunpack.c.l.b16 %v3395_v47  ;;  %v2149_v19 = vadd.f32 %v2117_v4, %v1986_v9  ;;  %v2318_v12 = vrot.slane %v2196_v32, 1  ;;  %v2320_v0 = vrot.slane %v2197_v49, 1 }
 0x24d   : > { %v3480_v41 = vunpack.c.l.b16 %v3396_v53  ;;  %v2438_v31 = vmul.f32 %v5798_v14, %v5807_v28  ;;  %v2439_v51 = vmul.f32 %v5798_v14, %v2081_v38  ;;  %v2559_v46 = vrot.slane %v2437_v6, 2 }
 0x24e   : > { %v2319_v50 = vsel %vm1603_vm9, %v2317_v59, %v2318_v12  ;;  %v2321_v52 = vsel %vm1603_vm9, %v2318_v12, %v2320_v0  ;;  %v2726_v33 = vunpack.c.l.bf16 %v2678_v60  ;;  %v2727_v61 = vunpack.c.h.bf16 %v2678_v60 }
 0x24f   : > { %v3506_v58 = vpack.c.b16 %v3480_v41, %v3479_v44  ;;  %v2390_v57 = vadd.f32 %v2319_v50, %v2148_v56  ;;  %v2391_v21 = vadd.f32 %v2321_v52, %v2149_v19  ;;  %v2560_v15 = vrot.slane %v2438_v31, 2  ;;  %v2010_v41 = vld [vmem:[#allocation3 + $0x54] sm:$0xff]  }
 0x250   : > { %v2562_v24 = vrot.slane %v2439_v51, 2  ;;  %v2728_v17 = vunpack.c.l.bf16 %v2680_v36  ;;  %v2763_v18 = vmul.f32 %v5867_v5, %v2726_v33  ;;  %v2764_v25 = vmul.f32 %v5867_v5, %v2727_v61 }
 0x251   : > { %3614 = vmatmul.bf16.gmra.mxu1 %v3506_v58  ;;  %v2561_v27 = vsel %vm1846_vm10, %v2559_v46, %v2560_v15  ;;  %v2842_v20 = vmul.f32 %v5872_v1, %v2726_v33  ;;  %v2843_v54 = vmul.f32 %v5872_v1, %v2727_v61  ;;  %v3084_v10 = vmul.f32 %v5877_v45, %v2726_v33 }
 0x252   : > { %v2563_v2 = vsel %vm1846_vm10, %v2560_v15, %v2562_v24  ;;  %v2632_v43 = vadd.f32 %v2561_v27, %v2390_v57  ;;  %v2844_v22 = vmul.f32 %v5872_v1, %v2728_v17  ;;  %v3085_v38 = vmul.f32 %v5877_v45, %v2727_v61  ;;  %v2012_v15 = vld [vmem:[#allocation3 + $0x5c] sm:$0x1] }
 0x253   : > { %v2633_v62 = vadd.f32 %v2563_v2, %v2391_v21  ;;  %v2964_v7 = vrot.slane %v2842_v20, 1  ;;  %v2965_v30 = vrot.slane %v2843_v54, 1  ;;  %v3086_v34 = vmul.f32 %v5877_v45, %v2728_v17 }
 0x254   : > { %v2795_v39 = vadd.f32 %v2763_v18, %v2632_v43  ;;  %v2967_v29 = vrot.slane %v2844_v22, 1  ;;  %v3206_v40 = vrot.slane %v3084_v10, 2  ;;  %v3207_v48 = vrot.slane %v3085_v38, 2 }
 0x255   : > { %v2796_v23 = vadd.f32 %v2764_v25, %v2633_v62  ;;  %v2966_v4 = vsel %vm1603_vm9, %v2964_v7, %v2965_v30  ;;  %v3209_v35 = vrot.slane %v3086_v34, 2  ;;  %v1411_v47 = vunpack.c.l.bf16 %v1363_v26 }
 0x256   : > { %v2968_v9 = vsel %vm1603_vm9, %v2965_v30, %v2967_v29  ;;  %v3037_v32 = vadd.f32 %v2966_v4, %v2795_v39  ;;  %v3208_v49 = vsel %vm1846_vm10, %v3206_v40, %v3207_v48  ;;  %v1453_v53 = vmul.f32 %v5763_v63, %v5734_v37 }
 0x257   : > { %v3038_v56 = vadd.f32 %v2968_v9, %v2796_v23  ;;  %v3210_v59 = vsel %vm1846_vm10, %v3207_v48, %v3209_v35  ;;  %v1454_v6 = vmul.f32 %v5763_v63, %v5741_v13  ;;  %v1525_v60 = vmul.f32 %v5701_v55, %v5734_v37  ;;  %v4400_v35 = vld [vmem:[#allocation3 + $0x60] sm:$0xff]  }
 0x258   : > { %v3279_v44 = vadd.f32 %v3208_v49, %v3037_v32  ;;  %v1526_v19 = vmul.f32 %v5701_v55, %v5741_v13  ;;  %v1527_v12 = vmul.f32 %v5701_v55, %v1411_v47  ;;  %v1768_v0 = vmul.f32 %v5776_v8, %v5734_v37 }
 0x259   : > { %v3280_v31 = vadd.f32 %v3210_v59, %v3038_v56  ;;  %v1634_v51 = vrot.slane %v1525_v60, 1  ;;  %v1769_v46 = vmul.f32 %v5776_v8, %v5741_v13  ;;  %v1770_v36 = vmul.f32 %v5776_v8, %v1411_v47  ;;  %v2659_v60 = vld [vmem:[#allocation3 + $0x68] sm:$0x1] }
 0x25a   : > { %v3315_v50 = vadd.f32 %v5896_v42, %v3279_v44  ;;  %v1635_v52 = vrot.slane %v1526_v19, 1  ;;  %v1637_v33 = vrot.slane %v1527_v12, 1  ;;  %v1877_v61 = vrot.slane %v1768_v0, 2 }
 0x25b   : > { %v3316_v58 = vadd.f32 %v5896_v42, %v3280_v31  ;;  %v1878_v57 = vrot.slane %v1769_v46, 2  ;;  %v1880_v21 = vrot.slane %v1770_v36, 2  ;;  %v2058_v24 = vunpack.c.l.bf16 %v2010_v41 }
 0x25c   : > { %v3347_v37 = vmax.f32 %v3315_v50, 0.0  ;;  %v1636_v17 = vsel %vm1603_vm9, %v1634_v51, %v1635_v52  ;;  %v1638_v18 = vsel %vm1603_vm9, %v1635_v52, %v1637_v33  ;;  %v2059_v25 = vunpack.c.h.bf16 %v2010_v41 }
 0x25d   : > { %v3348_v13 = vmax.f32 %v3316_v58, 0.0  ;;  %v1728_v27 = vadd.f32 %v1636_v17, %v1453_v53  ;;  %v1729_v20 = vadd.f32 %v1638_v18, %v1454_v6  ;;  %v1879_v54 = vsel %vm1846_vm10, %v1877_v61, %v1878_v57  ;;  %v1387_v18 = vld [vmem:[#allocation3 + $0xb0] sm:$0x1] }
 0x25e   : > { %v3379_v10 = vmin.f32 %v3347_v37, 6.0  ;;  %v1881_v2 = vsel %vm1846_vm10, %v1878_v57, %v1880_v21  ;;  %v2060_v43 = vunpack.c.l.bf16 %v2012_v15  ;;  %v2102_v22 = vmul.f32 %v5789_v11, %v2058_v24 }
 0x25f   : > { %v3380_v38 = vmin.f32 %v3348_v13, 6.0  ;;  %v1971_v26 = vadd.f32 %v1879_v54, %v1728_v27  ;;  %v1972_v62 = vadd.f32 %v1881_v2, %v1729_v20  ;;  %v2103_v7 = vmul.f32 %v5789_v11, %v2059_v25 }
 0x260   : > { %v3411_v30 = vpack.c.bf16 %v3379_v10, %v3379_v10  ;;  %v2174_v34 = vmul.f32 %v5793_v16, %v2058_v24  ;;  %v2175_v39 = vmul.f32 %v5793_v16, %v2059_v25  ;;  %v2176_v29 = vmul.f32 %v5793_v16, %v2060_v43 }
 0x261   : > { %v3412_v40 = vpack.c.bf16 %v3380_v38, %v3380_v38  ;;  %v2134_v48 = vadd.f32 %v2102_v22, %v1971_v26  ;;  %v2135_v23 = vadd.f32 %v2103_v7, %v1972_v62  ;;  %v2416_v4 = vmul.f32 %v5798_v14, %v2058_v24 }
 0x262   : > { %v3495_v47 = vunpack.c.l.b16 %v3411_v30  ;;  %v2282_v9 = vrot.slane %v2174_v34, 1  ;;  %v2283_v32 = vrot.slane %v2175_v39, 1  ;;  %v2285_v49 = vrot.slane %v2176_v29, 1 }
 0x263   : > { %v3496_v53 = vunpack.c.l.b16 %v3412_v40  ;;  %v2417_v56 = vmul.f32 %v5798_v14, %v2059_v25  ;;  %v2418_v59 = vmul.f32 %v5798_v14, %v2060_v43  ;;  %v2524_v6 = vrot.slane %v2416_v4, 2 }
 0x264   : > { %v2284_v44 = vsel %vm1603_vm9, %v2282_v9, %v2283_v32  ;;  %v2286_v19 = vsel %vm1603_vm9, %v2283_v32, %v2285_v49  ;;  %v5965_v12 = vunpack.c.l.bf16 %v4400_v35  ;;  %v5967_v0 = vunpack.c.h.bf16 %v4400_v35  ;;  %v2034_v32 = vld [vmem:[#allocation3 + $0xb4] sm:$0xff]  }
 0x265   : > { %v3514_v41 = vpack.c.b16 %v3496_v53, %v3495_v47  ;;  %v2376_v31 = vadd.f32 %v2284_v44, %v2134_v48  ;;  %v2377_v51 = vadd.f32 %v2286_v19, %v2135_v23  ;;  %v2525_v46 = vrot.slane %v2417_v56, 2 }
 0x266   : > { %v2527_v36 = vrot.slane %v2418_v59, 2  ;;  %v2707_v50 = vunpack.c.l.bf16 %v2659_v60  ;;  %v2749_v52 = vmul.f32 %v5867_v5, %v5965_v12  ;;  %v2750_v33 = vmul.f32 %v5867_v5, %v5967_v0 }
 0x267   : > { %3654 = vmatmul.bf16.gmra.mxu3 %v3514_v41  ;;  %v2526_v61 = vsel %vm1846_vm10, %v2524_v6, %v2525_v46  ;;  %v2821_v58 = vmul.f32 %v5872_v1, %v5965_v12  ;;  %v2822_v57 = vmul.f32 %v5872_v1, %v5967_v0  ;;  %v3063_v21 = vmul.f32 %v5877_v45, %v5965_v12 }
 0x268   : > { %v2528_v15 = vsel %vm1846_vm10, %v2525_v46, %v2527_v36  ;;  %v2618_v24 = vadd.f32 %v2526_v61, %v2376_v31  ;;  %v2823_v37 = vmul.f32 %v5872_v1, %v2707_v50  ;;  %v3064_v17 = vmul.f32 %v5877_v45, %v5967_v0 }
 0x269   : > { %v2619_v25 = vadd.f32 %v2528_v15, %v2377_v51  ;;  %v2929_v13 = vrot.slane %v2821_v58, 1  ;;  %v2930_v27 = vrot.slane %v2822_v57, 1  ;;  %v3065_v20 = vmul.f32 %v5877_v45, %v2707_v50  ;;  %v2036_v51 = vld [vmem:[#allocation3 + $0xbc] sm:$0x1] }
 0x26a   : > { %v2781_v54 = vadd.f32 %v2749_v52, %v2618_v24  ;;  %v2932_v10 = vrot.slane %v2823_v37, 1  ;;  %v3171_v2 = vrot.slane %v3063_v21, 2  ;;  %v3172_v43 = vrot.slane %v3064_v17, 2 }
 0x26b   : > { %v2782_v22 = vadd.f32 %v2750_v33, %v2619_v25  ;;  %v2931_v38 = vsel %vm1603_vm9, %v2929_v13, %v2930_v27  ;;  %v3174_v26 = vrot.slane %v3065_v20, 2  ;;  %v1435_v62 = vunpack.c.l.bf16 %v1387_v18 }
 0x26c   : > { %v2933_v7 = vsel %vm1603_vm9, %v2930_v27, %v2932_v10  ;;  %v3023_v30 = vadd.f32 %v2931_v38, %v2781_v54  ;;  %v3173_v34 = vsel %vm1846_vm10, %v3171_v2, %v3172_v43  ;;  %v1469_v39 = vmul.f32 %v5763_v63, %v5805_v3  ;;  %v4404_v38 = vld [vmem:[#allocation3 + $0xc0] sm:$0xff]  }
 0x26d   : > { %v3024_v29 = vadd.f32 %v2933_v7, %v2782_v22  ;;  %v3175_v40 = vsel %vm1846_vm10, %v3172_v43, %v3174_v26  ;;  %v1470_v48 = vmul.f32 %v5763_v63, %v5807_v28  ;;  %v1549_v23 = vmul.f32 %v5701_v55, %v5805_v3 }
 0x26e   : > { %v3265_v4 = vadd.f32 %v3173_v34, %v3023_v30  ;;  %v1550_v35 = vmul.f32 %v5701_v55, %v5807_v28  ;;  %v1551_v47 = vmul.f32 %v5701_v55, %v1435_v62  ;;  %v1792_v9 = vmul.f32 %v5776_v8, %v5805_v3 }
 0x26f   : > { %v3266_v49 = vadd.f32 %v3175_v40, %v3024_v29  ;;  %v1674_v53 = vrot.slane %v1549_v23, 1  ;;  %v1793_v56 = vmul.f32 %v5776_v8, %v5807_v28  ;;  %v1794_v59 = vmul.f32 %v5776_v8, %v1435_v62 }
 0x270   : > { %v3301_v6 = vadd.f32 %v5896_v42, %v3265_v4  ;;  %v1675_v60 = vrot.slane %v1550_v35, 1  ;;  %v1677_v44 = vrot.slane %v1551_v47, 1  ;;  %v1917_v19 = vrot.slane %v1792_v9, 2 }
 0x271   : > { %v3302_v41 = vadd.f32 %v5896_v42, %v3266_v49  ;;  %v1918_v31 = vrot.slane %v1793_v56, 2  ;;  %v1920_v55 = vrot.slane %v1794_v59, 2  ;;  %v2082_v46 = vunpack.c.l.bf16 %v2034_v32 }
 0x272   : > { %v3333_v3 = vmax.f32 %v3301_v6, 0.0  ;;  %v1676_v36 = vsel %vm1603_vm9, %v1674_v53, %v1675_v60  ;;  %v1678_v50 = vsel %vm1603_vm9, %v1675_v60, %v1677_v44  ;;  %v2083_v52 = vunpack.c.h.bf16 %v2034_v32 }
 0x273   : > { %v3334_v28 = vmax.f32 %v3302_v41, 0.0  ;;  %v1744_v33 = vadd.f32 %v1676_v36, %v1469_v39  ;;  %v1745_v61 = vadd.f32 %v1678_v50, %v1470_v48  ;;  %v1919_v58 = vsel %vm1846_vm10, %v1917_v19, %v1918_v31  ;;  %v2683_v48 = vld [vmem:[#allocation3 + $0xc8] sm:$0x1]  ;;  %v1364_v36 = vld [vmem:[#allocation3 + $0x54] sm:$0xff]  }
 0x274   : > { %v3365_v57 = vmin.f32 %v3333_v3, 6.0  ;;  %v1921_v21 = vsel %vm1846_vm10, %v1918_v31, %v1920_v55  ;;  %v2084_v15 = vunpack.c.l.bf16 %v2036_v51  ;;  %v2118_v24 = vmul.f32 %v5789_v11, %v2082_v46 }
 0x275   : > { %v3366_v37 = vmin.f32 %v3334_v28, 6.0  ;;  %v1987_v17 = vadd.f32 %v1919_v58, %v1744_v33  ;;  %v1988_v18 = vadd.f32 %v1921_v21, %v1745_v61  ;;  %v2119_v25 = vmul.f32 %v5789_v11, %v2083_v52 }
 0x276   : > { %v3397_v13 = vpack.c.bf16 %v3365_v57, %v3365_v57  ;;  %v2198_v27 = vmul.f32 %v5793_v16, %v2082_v46  ;;  %v2199_v20 = vmul.f32 %v5793_v16, %v2083_v52  ;;  %v2200_v54 = vmul.f32 %v5793_v16, %v2084_v15 }
 0x277   : > { %v3398_v10 = vpack.c.bf16 %v3366_v37, %v3366_v37  ;;  %v2150_v2 = vadd.f32 %v2118_v24, %v1987_v17  ;;  %v2151_v43 = vadd.f32 %v2119_v25, %v1988_v18  ;;  %v2440_v22 = vmul.f32 %v5798_v14, %v2082_v46 }
 0x278   : > { %v3481_v26 = vunpack.c.l.b16 %v3397_v13  ;;  %v2322_v62 = vrot.slane %v2198_v27, 1  ;;  %v2323_v7 = vrot.slane %v2199_v20, 1  ;;  %v2325_v30 = vrot.slane %v2200_v54, 1 }
 0x279   : > { %v3482_v34 = vunpack.c.l.b16 %v3398_v10  ;;  %v2441_v39 = vmul.f32 %v5798_v14, %v2083_v52  ;;  %v2442_v29 = vmul.f32 %v5798_v14, %v2084_v15  ;;  %v2564_v40 = vrot.slane %v2440_v22, 2  ;;  %v1366_v15 = vld [vmem:[#allocation3 + $0x5c] sm:$0x1] }
 0x27a   : > { %v2324_v23 = vsel %vm1603_vm9, %v2322_v62, %v2323_v7  ;;  %v2326_v4 = vsel %vm1603_vm9, %v2323_v7, %v2325_v30  ;;  %v6019_v35 = vunpack.c.l.bf16 %v4404_v38  ;;  %v6021_v47 = vunpack.c.h.bf16 %v4404_v38 }
 0x27b   : > { %v3507_v9 = vpack.c.b16 %v3482_v34, %v3481_v26  ;;  %v2392_v32 = vadd.f32 %v2324_v23, %v2150_v2  ;;  %v2393_v49 = vadd.f32 %v2326_v4, %v2151_v43  ;;  %v2565_v53 = vrot.slane %v2441_v39, 2  ;;  %v6045_v26 = vld [vmem:[#allocation8 + $0x1] ss:$0 sm:$0xff] }
 0x27c   : > { %v2567_v56 = vrot.slane %v2442_v29, 2  ;;  %v2731_v59 = vunpack.c.l.bf16 %v2683_v48  ;;  %v2765_v6 = vmul.f32 %v5867_v5, %v6019_v35  ;;  %v2766_v60 = vmul.f32 %v5867_v5, %v6021_v47 }
 0x27d   : > { %3619 = vmatmul.bf16.gmra.mxu1 %v3507_v9  ;;  %v2566_v44 = vsel %vm1846_vm10, %v2564_v40, %v2565_v53  ;;  %v2845_v19 = vmul.f32 %v5872_v1, %v6019_v35  ;;  %v2846_v41 = vmul.f32 %v5872_v1, %v6021_v47  ;;  %v3087_v31 = vmul.f32 %v5877_v45, %v6019_v35  ;;  %v2015_v40 = vld [vmem:[#allocation3 + $0x68] sm:$0x1] }
 0x27e   : > { %v2568_v55 = vsel %vm1846_vm10, %v2565_v53, %v2567_v56  ;;  %v2634_v51 = vadd.f32 %v2566_v44, %v2392_v32  ;;  %v2847_v46 = vmul.f32 %v5872_v1, %v2731_v59  ;;  %v3088_v3 = vmul.f32 %v5877_v45, %v6021_v47 }
 0x27f   : > { %v2635_v50 = vadd.f32 %v2568_v55, %v2393_v49  ;;  %v2969_v52 = vrot.slane %v2845_v19, 1  ;;  %v2970_v28 = vrot.slane %v2846_v41, 1  ;;  %v3089_v33 = vmul.f32 %v5877_v45, %v2731_v59 }
 0x280   : > { %v2797_v61 = vadd.f32 %v2765_v6, %v2634_v51  ;;  %v2972_v58 = vrot.slane %v2847_v46, 1  ;;  %v3211_v57 = vrot.slane %v3087_v31, 2  ;;  %v3212_v21 = vrot.slane %v3088_v3, 2 }
 0x281   : > { %v2798_v24 = vadd.f32 %v2766_v60, %v2635_v50  ;;  %v2971_v37 = vsel %vm1603_vm9, %v2969_v52, %v2970_v28  ;;  %v3214_v17 = vrot.slane %v3089_v33, 2  ;;  %v1412_v18 = vunpack.c.l.bf16 %v1364_v36 }
 0x282   : > { %v2973_v25 = vsel %vm1603_vm9, %v2970_v28, %v2972_v58  ;;  %v3039_v13 = vadd.f32 %v2971_v37, %v2797_v61  ;;  %v3213_v27 = vsel %vm1846_vm10, %v3211_v57, %v3212_v21  ;;  %v1413_v20 = vunpack.c.h.bf16 %v1364_v36  ;;  %v2660_v37 = vld [vmem:[#allocation3 + $0x6c] sm:$0xff]  }
 0x283   : > { %v3040_v54 = vadd.f32 %v2973_v25, %v2798_v24  ;;  %v3215_v10 = vsel %vm1846_vm10, %v3212_v21, %v3214_v17  ;;  %v1414_v2 = vunpack.c.l.bf16 %v1366_v15  ;;  %v1455_v43 = vmul.f32 %v5763_v63, %v1412_v18 }
 0x284   : > { %v3281_v22 = vadd.f32 %v3213_v27, %v3039_v13  ;;  %v1456_v38 = vmul.f32 %v5763_v63, %v1413_v20  ;;  %v1528_v62 = vmul.f32 %v6045_v26, %v1412_v18  ;;  %v1529_v7 = vmul.f32 %v6045_v26, %v1413_v20 }
 0x285   : > { %v3282_v30 = vadd.f32 %v3215_v10, %v3040_v54  ;;  %v1530_v34 = vmul.f32 %v6045_v26, %v1414_v2  ;;  %v1771_v39 = vmul.f32 %v5776_v8, %v1412_v18  ;;  %v1772_v29 = vmul.f32 %v5776_v8, %v1413_v20  ;;  %v2662_v10 = vld [vmem:[#allocation3 + $0x74] sm:$0x1] }
 0x286   : > { %v3317_v48 = vadd.f32 %v5896_v42, %v3281_v22  ;;  %v1639_v23 = vrot.slane %v1528_v62, 1  ;;  %v1640_v4 = vrot.slane %v1529_v7, 1  ;;  %v1773_v63 = vmul.f32 %v5776_v8, %v1414_v2 }
 0x287   : > { %v3318_v9 = vadd.f32 %v5896_v42, %v3282_v30  ;;  %v1642_v32 = vrot.slane %v1530_v34, 1  ;;  %v1882_v49 = vrot.slane %v1771_v39, 2  ;;  %v1883_v53 = vrot.slane %v1772_v29, 2 }
 0x288   : > { %v3349_v56 = vmax.f32 %v3317_v48, 0.0  ;;  %v1641_v59 = vsel %vm1603_vm9, %v1639_v23, %v1640_v4  ;;  %v1885_v6 = vrot.slane %v1773_v63, 2  ;;  %v2063_v60 = vunpack.c.l.bf16 %v2015_v40 }
 0x289   : > { %v3350_v44 = vmax.f32 %v3318_v9, 0.0  ;;  %v1643_v19 = vsel %vm1603_vm9, %v1640_v4, %v1642_v32  ;;  %v1730_v41 = vadd.f32 %v1641_v59, %v1455_v43  ;;  %v1884_v31 = vsel %vm1846_vm10, %v1882_v49, %v1883_v53 }
 0x28a   : > { %v3381_v55 = vmin.f32 %v3349_v56, 6.0  ;;  %v1731_v51 = vadd.f32 %v1643_v19, %v1456_v38  ;;  %v1886_v8 = vsel %vm1846_vm10, %v1883_v53, %v1885_v6  ;;  %v2104_v46 = vmul.f32 %v5789_v11, %v5965_v12  ;;  %v1388_v53 = vld [vmem:[#allocation3 + $0xb4] sm:$0xff]  }
 0x28b   : > { %v3382_v3 = vmin.f32 %v3350_v44, 6.0  ;;  %v1973_v36 = vadd.f32 %v1884_v31, %v1730_v41  ;;  %v2105_v50 = vmul.f32 %v5789_v11, %v5967_v0  ;;  %v2177_v52 = vmul.f32 %v5793_v16, %v5965_v12 }
 0x28c   : > { %v3413_v28 = vpack.c.bf16 %v3381_v55, %v3381_v55  ;;  %v1974_v33 = vadd.f32 %v1886_v8, %v1731_v51  ;;  %v2178_v61 = vmul.f32 %v5793_v16, %v5967_v0  ;;  %v2179_v58 = vmul.f32 %v5793_v16, %v2063_v60  ;;  %v1390_v55 = vld [vmem:[#allocation3 + $0xbc] sm:$0x1] }
 0x28d   : > { %v3414_v57 = vpack.c.bf16 %v3382_v3, %v3382_v3  ;;  %v2136_v21 = vadd.f32 %v2104_v46, %v1973_v36  ;;  %v2287_v15 = vrot.slane %v2177_v52, 1  ;;  %v2419_v24 = vmul.f32 %v5798_v14, %v5965_v12 }
 0x28e   : > { %v3497_v17 = vunpack.c.l.b16 %v3413_v28  ;;  %v2137_v18 = vadd.f32 %v2105_v50, %v1974_v33  ;;  %v2288_v11 = vrot.slane %v2178_v61, 1  ;;  %v2290_v25 = vrot.slane %v2179_v58, 1 }
 0x28f   : > { %v3498_v13 = vunpack.c.l.b16 %v3414_v57  ;;  %v2420_v27 = vmul.f32 %v5798_v14, %v5967_v0  ;;  %v2421_v20 = vmul.f32 %v5798_v14, %v2063_v60  ;;  %v2529_v54 = vrot.slane %v2419_v24, 2  ;;  %v6089_v57 = vld [vmem:[#allocation8] ss:$0 sm:$0xff] }
 0x290   : > { %v2289_v16 = vsel %vm1603_vm9, %v2287_v15, %v2288_v11  ;;  %v2291_v2 = vsel %vm1603_vm9, %v2288_v11, %v2290_v25  ;;  %v2708_v43 = vunpack.c.l.bf16 %v2660_v37  ;;  %v2709_v22 = vunpack.c.h.bf16 %v2660_v37  ;;  %v6096_v25 = vld [vmem:[#allocation8 + $0x2] ss:$0 sm:$0xff] }
 0x291   : > { %v3515_v38 = vpack.c.b16 %v3498_v13, %v3497_v17  ;;  %v2378_v62 = vadd.f32 %v2289_v16, %v2136_v21  ;;  %v2379_v7 = vadd.f32 %v2291_v2, %v2137_v18  ;;  %v2530_v30 = vrot.slane %v2420_v27, 2 }
 0x292   : > { %v2532_v34 = vrot.slane %v2421_v20, 2  ;;  %v2710_v39 = vunpack.c.l.bf16 %v2662_v10  ;;  %v2751_v29 = vmul.f32 %v5867_v5, %v2708_v43  ;;  %v2752_v40 = vmul.f32 %v5867_v5, %v2709_v22  ;;  %v2039_v20 = vld [vmem:[#allocation3 + $0xc8] sm:$0x1] }
 0x293   : > { %3659 = vmatmul.bf16.gmra.mxu3 %v3515_v38  ;;  %v2531_v14 = vsel %vm1846_vm10, %v2529_v54, %v2530_v30  ;;  %v2824_v48 = vmul.f32 %v5872_v1, %v2708_v43  ;;  %v2825_v23 = vmul.f32 %v5872_v1, %v2709_v22  ;;  %v3066_v4 = vmul.f32 %v5877_v45, %v2708_v43 }
 0x294   : > { %v2533_v63 = vsel %vm1846_vm10, %v2530_v30, %v2532_v34  ;;  %v2620_v9 = vadd.f32 %v2531_v14, %v2378_v62  ;;  %v2826_v32 = vmul.f32 %v5872_v1, %v2710_v39  ;;  %v3067_v49 = vmul.f32 %v5877_v45, %v2709_v22 }
 0x295   : > { %v2621_v56 = vadd.f32 %v2533_v63, %v2379_v7  ;;  %v2934_v59 = vrot.slane %v2824_v48, 1  ;;  %v2935_v6 = vrot.slane %v2825_v23, 1  ;;  %v3068_v60 = vmul.f32 %v5877_v45, %v2710_v39 }
 0x296   : > { %v2783_v44 = vadd.f32 %v2751_v29, %v2620_v9  ;;  %v2937_v19 = vrot.slane %v2826_v32, 1  ;;  %v3176_v41 = vrot.slane %v3066_v4, 2  ;;  %v3177_v31 = vrot.slane %v3067_v49, 2  ;;  %v6107_v9 = vld [vmem:[#allocation8 + $0x3] ss:$0 sm:$0xff] }
 0x297   : > { %v2784_v51 = vadd.f32 %v2752_v40, %v2621_v56  ;;  %v2936_v8 = vsel %vm1603_vm9, %v2934_v59, %v2935_v6  ;;  %v3179_v46 = vrot.slane %v3068_v60, 2  ;;  %v1436_v3 = vunpack.c.l.bf16 %v1388_v53  ;;  %v6113_v59 = vld [vmem:[#allocation8 + $0x4] ss:$0 sm:$0xff] }
 0x298   : > { %v2938_v36 = vsel %vm1603_vm9, %v2935_v6, %v2937_v19  ;;  %v3025_v50 = vadd.f32 %v2936_v8, %v2783_v44  ;;  %v3178_v52 = vsel %vm1846_vm10, %v3176_v41, %v3177_v31  ;;  %v1437_v28 = vunpack.c.h.bf16 %v1388_v53  ;;  %v6120_v8 = vld [vmem:[#allocation8 + $0x5] ss:$0 sm:$0xff] }
 0x299   : > { %v3026_v33 = vadd.f32 %v2938_v36, %v2784_v51  ;;  %v3180_v61 = vsel %vm1846_vm10, %v3177_v31, %v3179_v46  ;;  %v1438_v58 = vunpack.c.l.bf16 %v1390_v55  ;;  %v1471_v21 = vmul.f32 %v6089_v57, %v1436_v3 }
 0x29a   : > { %v3267_v15 = vadd.f32 %v3178_v52, %v3025_v50  ;;  %v1472_v24 = vmul.f32 %v6089_v57, %v1437_v28  ;;  %v1552_v37 = vmul.f32 %v6045_v26, %v1436_v3  ;;  %v1553_v17 = vmul.f32 %v6045_v26, %v1437_v28 }
 0x29b   : > { %v3268_v18 = vadd.f32 %v3180_v61, %v3026_v33  ;;  %v1554_v11 = vmul.f32 %v6045_v26, %v1438_v58  ;;  %v1795_v13 = vmul.f32 %v6096_v25, %v1436_v3  ;;  %v1796_v27 = vmul.f32 %v6096_v25, %v1437_v28  ;;  %v2684_v3 = vld [vmem:[#allocation3 + $0xcc] sm:$0xff]  }
 0x29c   : > { %v3303_v54 = vadd.f32 %v5896_v42, %v3267_v15  ;;  %v1679_v10 = vrot.slane %v1552_v37, 1  ;;  %v1680_v16 = vrot.slane %v1553_v17, 1  ;;  %v1797_v2 = vmul.f32 %v6096_v25, %v1438_v58  ;;  %v2686_v15 = vld [vmem:[#allocation3 + $0xd4] sm:$0x1] }
 0x29d   : > { %v3304_v43 = vadd.f32 %v5896_v42, %v3268_v18  ;;  %v1682_v22 = vrot.slane %v1554_v11, 1  ;;  %v1922_v38 = vrot.slane %v1795_v13, 2  ;;  %v1923_v62 = vrot.slane %v1796_v27, 2 }
 0x29e   : > { %v3335_v7 = vmax.f32 %v3303_v54, 0.0  ;;  %v1681_v30 = vsel %vm1603_vm9, %v1679_v10, %v1680_v16  ;;  %v1925_v34 = vrot.slane %v1797_v2, 2  ;;  %v2087_v39 = vunpack.c.l.bf16 %v2039_v20 }
 0x29f   : > { %v3336_v29 = vmax.f32 %v3304_v43, 0.0  ;;  %v1683_v40 = vsel %vm1603_vm9, %v1680_v16, %v1682_v22  ;;  %v1746_v14 = vadd.f32 %v1681_v30, %v1471_v21  ;;  %v1924_v48 = vsel %vm1846_vm10, %v1922_v38, %v1923_v62 }
 0x2a0   : > { %v3367_v23 = vmin.f32 %v3335_v7, 6.0  ;;  %v1747_v4 = vadd.f32 %v1683_v40, %v1472_v24  ;;  %v1926_v63 = vsel %vm1846_vm10, %v1923_v62, %v1925_v34  ;;  %v2120_v32 = vmul.f32 %v6107_v9, %v6019_v35 }
 0x2a1   : > { %v3368_v49 = vmin.f32 %v3336_v29, 6.0  ;;  %v1989_v53 = vadd.f32 %v1924_v48, %v1746_v14  ;;  %v2121_v56 = vmul.f32 %v6107_v9, %v6021_v47  ;;  %v2201_v6 = vmul.f32 %v6113_v59, %v6019_v35  ;;  %v3590_v14 = vpop.f32.mrf.mxu1 }
 0x2a2   : > { %v3399_v60 = vpack.c.bf16 %v3367_v23, %v3367_v23  ;;  %v1990_v44 = vadd.f32 %v1926_v63, %v1747_v4  ;;  %v2202_v19 = vmul.f32 %v6113_v59, %v6021_v47  ;;  %v2203_v41 = vmul.f32 %v6113_v59, %v2087_v39 }
 0x2a3   : > { %v3400_v31 = vpack.c.bf16 %v3368_v49, %v3368_v49  ;;  %v2152_v55 = vadd.f32 %v2120_v32, %v1989_v53  ;;  %v2327_v51 = vrot.slane %v2201_v6, 1  ;;  %v2443_v46 = vmul.f32 %v6120_v8, %v6019_v35  ;;  %v6144_v32 = vld [vmem:[#allocation2 + $0x8] sm:$0xff]  }
 0x2a4   : > { %v3483_v36 = vunpack.c.l.b16 %v3399_v60  ;;  %v2153_v50 = vadd.f32 %v2121_v56, %v1990_v44  ;;  %v2328_v52 = vrot.slane %v2202_v19, 1  ;;  %v2330_v28 = vrot.slane %v2203_v41, 1 }
 0x2a5   : > { %v3484_v33 = vunpack.c.l.b16 %v3400_v31  ;;  %v2444_v61 = vmul.f32 %v6120_v8, %v6021_v47  ;;  %v2445_v58 = vmul.f32 %v6120_v8, %v2087_v39  ;;  %v2569_v21 = vrot.slane %v2443_v46, 2 }
 0x2a6   : > { %v2329_v24 = vsel %vm1603_vm9, %v2327_v51, %v2328_v52  ;;  %v2331_v37 = vsel %vm1603_vm9, %v2328_v52, %v2330_v28  ;;  %v2732_v17 = vunpack.c.l.bf16 %v2684_v3  ;;  %v2733_v18 = vunpack.c.h.bf16 %v2684_v3 }
 0x2a7   : > { %v3508_v35 = vpack.c.b16 %v3484_v33, %v3483_v36  ;;  %v2394_v11 = vadd.f32 %v2329_v24, %v2152_v55  ;;  %v2395_v13 = vadd.f32 %v2331_v37, %v2153_v50  ;;  %v2570_v27 = vrot.slane %v2444_v61, 2  ;;  %v2016_v61 = vld [vmem:[#allocation3 + $0x6c] sm:$0xff]  }
 0x2a8   : > { %v2572_v20 = vrot.slane %v2445_v58, 2  ;;  %v2734_v54 = vunpack.c.l.bf16 %v2686_v15  ;;  %v2767_v10 = vmul.f32 %v5867_v5, %v2732_v17  ;;  %v2768_v47 = vmul.f32 %v5867_v5, %v2733_v18  ;;  %v6141_v5 = vld [vmem:[%s6292_s6] ss:$0 sm:$0xff] }
 0x2a9   : > { %3624 = vmatmul.bf16.gmra.mxu1 %v3508_v35  ;;  %v2571_v16 = vsel %vm1846_vm10, %v2569_v21, %v2570_v27  ;;  %v2848_v2 = vmul.f32 %v5872_v1, %v2732_v17  ;;  %v2849_v43 = vmul.f32 %v5872_v1, %v2733_v18  ;;  %v3090_v22 = vmul.f32 %v5877_v45, %v2732_v17 }
 0x2aa   : > { %v2573_v38 = vsel %vm1846_vm10, %v2570_v27, %v2572_v20  ;;  %v2636_v62 = vadd.f32 %v2571_v16, %v2394_v11  ;;  %v2850_v7 = vmul.f32 %v5872_v1, %v2734_v54  ;;  %v3091_v30 = vmul.f32 %v5877_v45, %v2733_v18  ;;  %v1369_v1 = vld [vmem:[#allocation3 + $0x68] sm:$0x1] }
 0x2ab   : > { %v2637_v34 = vadd.f32 %v2573_v38, %v2395_v13  ;;  %v2974_v39 = vrot.slane %v2848_v2, 1  ;;  %v2975_v29 = vrot.slane %v2849_v43, 1  ;;  %v3092_v40 = vmul.f32 %v5877_v45, %v2734_v54  ;;  %v2018_v13 = vld [vmem:[#allocation3 + $0x74] sm:$0x1]  ;;  %v6173_v2 = vpop.f32.mrf.mxu3 }
 0x2ac   : > { %v2799_v48 = vadd.f32 %v2767_v10, %v2636_v62  ;;  %v2977_v23 = vrot.slane %v2850_v7, 1  ;;  %v3216_v4 = vrot.slane %v3090_v22, 2  ;;  %v3217_v63 = vrot.slane %v3091_v30, 2 }
 0x2ad   : > { %v2800_v49 = vadd.f32 %v2768_v47, %v2637_v34  ;;  %v2976_v53 = vsel %vm1603_vm9, %v2974_v39, %v2975_v29  ;;  %v3219_v56 = vrot.slane %v3092_v40, 2  ;;  %v6150_v19 = vadd.f32 %v6141_v5, %v3590_v14 }
 0x2ae   : > { %v2978_v6 = vsel %vm1603_vm9, %v2975_v29, %v2977_v23  ;;  %v3041_v60 = vadd.f32 %v2976_v53, %v2799_v48  ;;  %v3218_v44 = vsel %vm1846_vm10, %v3216_v4, %v3217_v63  ;;  %v4241_v31 = vunpack.c.l.bf16 %v6144_v32  ;;  %v4401_v23 = vld [vmem:[#allocation3 + $0x78] sm:$0xff]  }
 0x2af   : > { %v3042_v45 = vadd.f32 %v2978_v6, %v2800_v49  ;;  %v3220_v41 = vsel %vm1846_vm10, %v3217_v63, %v3219_v56  ;;  %v1417_v55 = vunpack.c.l.bf16 %v1369_v1  ;;  %v1457_v46 = vmul.f32 %v6089_v57, %v5965_v12 }
 0x2b0   : > { %v3283_v51 = vadd.f32 %v3218_v44, %v3041_v60  ;;  %v1458_v3 = vmul.f32 %v6089_v57, %v5967_v0  ;;  %v1531_v36 = vmul.f32 %v6045_v26, %v5965_v12  ;;  %v1532_v52 = vmul.f32 %v6045_v26, %v5967_v0 }
 0x2b1   : > { %v3284_v50 = vadd.f32 %v3220_v41, %v3042_v45  ;;  %v1533_v28 = vmul.f32 %v6045_v26, %v1417_v55  ;;  %v1774_v33 = vmul.f32 %v6096_v25, %v5965_v12  ;;  %v1775_v15 = vmul.f32 %v6096_v25, %v5967_v0 }
 0x2b2   : > { %v3319_v58 = vadd.f32 %v5896_v42, %v3283_v51  ;;  %v1644_v21 = vrot.slane %v1531_v36, 1  ;;  %v1776_v57 = vmul.f32 %v6096_v25, %v1417_v55  ;;  %v1645_v37 = vrot.slane %v1532_v52, 1  ;;  %v2665_v55 = vld [vmem:[#allocation3 + $0x80] sm:$0x1] }
 0x2b3   : > { %v3320_v24 = vadd.f32 %v5896_v42, %v3284_v50  ;;  %v1647_v17 = vrot.slane %v1533_v28, 1  ;;  %v1887_v18 = vrot.slane %v1774_v33, 2  ;;  %v1888_v11 = vrot.slane %v1775_v15, 2  ;;  %v3592_v42 = vpop.f32.mrf.mxu1 }
 0x2b4   : > { %v3351_v35 = vmax.f32 %v3319_v58, 0.0  ;;  %v1890_v26 = vrot.slane %v1776_v57, 2  ;;  %v2064_v27 = vunpack.c.l.bf16 %v2016_v61  ;;  %v1646_v20 = vsel %vm1603_vm9, %v1644_v21, %v1645_v37  ;;  %v4584_v21 = vld [vmem:[#allocation8 + $0x6] ss:$0 sm:$0xff]  ;;  %v4585_v57 = vld [vmem:[#allocation8 + $0x7] ss:$0 sm:$0xff] }
 0x2b5   : > { %v3352_v12 = vmax.f32 %v3320_v24, 0.0  ;;  %v1648_v54 = vsel %vm1603_vm9, %v1645_v37, %v1647_v17  ;;  %v2065_v10 = vunpack.c.h.bf16 %v2016_v61  ;;  %v1732_v0 = vadd.f32 %v1646_v20, %v1457_v46  ;;  %v3637_v61 = vpop.f32.mrf.mxu3 }
 0x2b6   : > { %v3383_v47 = vmin.f32 %v3351_v35, 6.0  ;;  %v1733_v16 = vadd.f32 %v1648_v54, %v1458_v3  ;;  %v1889_v25 = vsel %vm1846_vm10, %v1887_v18, %v1888_v11  ;;  %v1891_v22 = vsel %vm1846_vm10, %v1888_v11, %v1890_v26  ;;  %v4586_v35 = vld [vmem:[#allocation8 + $0x8] ss:$0 sm:$0xff] }
 0x2b7   : > { %v3384_v43 = vmin.f32 %v3352_v12, 6.0  ;;  %v2066_v38 = vunpack.c.l.bf16 %v2018_v13  ;;  %v2106_v62 = vmul.f32 %v6107_v9, %v2064_v27  ;;  %v1975_v30 = vadd.f32 %v1889_v25, %v1732_v0  ;;  %v4405_v0 = vld [vmem:[#allocation2 + $0x10] sm:$0xff]  }
 0x2b8   : > { %v3415_v7 = vpack.c.bf16 %v3383_v47, %v3383_v47  ;;  %v1976_v34 = vadd.f32 %v1891_v22, %v1733_v16  ;;  %v2107_v39 = vmul.f32 %v6107_v9, %v2065_v10  ;;  %v2180_v40 = vmul.f32 %v6113_v59, %v2064_v27 }
 0x2b9   : > { %v3416_v29 = vpack.c.bf16 %v3384_v43, %v3384_v43  ;;  %v2181_v14 = vmul.f32 %v6113_v59, %v2065_v10  ;;  %v2182_v48 = vmul.f32 %v6113_v59, %v2066_v38  ;;  %v2138_v63 = vadd.f32 %v2106_v62, %v1975_v30 }
 0x2ba   : > { %v3499_v4 = vunpack.c.l.b16 %v3415_v7  ;;  %v2139_v1 = vadd.f32 %v2107_v39, %v1976_v34  ;;  %v2422_v49 = vmul.f32 %v6120_v8, %v2064_v27  ;;  %v2292_v56 = vrot.slane %v2180_v40, 1 }
 0x2bb   : > { %v3500_v53 = vunpack.c.l.b16 %v3416_v29  ;;  %v2293_v6 = vrot.slane %v2181_v14, 1  ;;  %v2295_v60 = vrot.slane %v2182_v48, 1  ;;  %v2423_v44 = vmul.f32 %v6120_v8, %v2065_v10  ;;  %v3595_v33 = vpop.f32.mrf.mxu1  ;;  %v4413_v14 = vld [vmem:[#allocation2 + $0x50] sm:$0xff]  }
 0x2bc   : > { %v2424_v9 = vmul.f32 %v6120_v8, %v2066_v38  ;;  %v2534_v45 = vrot.slane %v2422_v49, 2  ;;  %v4225_v41 = vunpack.c.l.bf16 %v4401_v23  ;;  %v4226_v3 = vunpack.c.h.bf16 %v4401_v23 }
 0x2bd   : > { %v3516_v51 = vpack.c.b16 %v3500_v53, %v3499_v4  ;;  %v2294_v59 = vsel %vm1603_vm9, %v2292_v56, %v2293_v6  ;;  %v2296_v46 = vsel %vm1603_vm9, %v2293_v6, %v2295_v60  ;;  %v2535_v52 = vrot.slane %v2423_v44, 2 }
 0x2be   : > { %v2380_v36 = vadd.f32 %v2294_v59, %v2138_v63  ;;  %v2381_v50 = vadd.f32 %v2296_v46, %v2139_v1  ;;  %v2537_v28 = vrot.slane %v2424_v9, 2  ;;  %v2713_v58 = vunpack.c.l.bf16 %v2665_v55  ;;  %v3640_v1 = vpop.f32.mrf.mxu3  ;;  %v4414_v46 = vld [vmem:[#allocation2 + $0x58] sm:$0xff]  }
 0x2bf   : > { %3664 = vmatmul.bf16.gmra.mxu3 %v3516_v51  ;;  %v2753_v15 = vmul.f32 %v4584_v21, %v4225_v41  ;;  %v2754_v8 = vmul.f32 %v4584_v21, %v4226_v3  ;;  %v2827_v24 = vmul.f32 %v4585_v57, %v4225_v41  ;;  %v2536_v37 = vsel %vm1846_vm10, %v2534_v45, %v2535_v52 }
 0x2c0   : > { %v2538_v17 = vsel %vm1846_vm10, %v2535_v52, %v2537_v28  ;;  %v2828_v18 = vmul.f32 %v4585_v57, %v4226_v3  ;;  %v3069_v11 = vmul.f32 %v4586_v35, %v4225_v41  ;;  %v2622_v26 = vadd.f32 %v2536_v37, %v2380_v36 }
 0x2c1   : > { %v2623_v13 = vadd.f32 %v2538_v17, %v2381_v50  ;;  %v2829_v27 = vmul.f32 %v4585_v57, %v2713_v58  ;;  %v2939_v12 = vrot.slane %v2827_v24, 1  ;;  %v3070_v54 = vmul.f32 %v4586_v35, %v4226_v3 }
 0x2c2   : > { %v2940_v20 = vrot.slane %v2828_v18, 1  ;;  %v3071_v10 = vmul.f32 %v4586_v35, %v2713_v58  ;;  %v3181_v47 = vrot.slane %v3069_v11, 2  ;;  %v2785_v16 = vadd.f32 %v2753_v15, %v2622_v26 }
 0x2c3   : > { %v2786_v25 = vadd.f32 %v2754_v8, %v2623_v13  ;;  %v2942_v43 = vrot.slane %v2829_v27, 1  ;;  %v3593_v22 = vadd.f32 %v6141_v5, %v3592_v42  ;;  %v3182_v62 = vrot.slane %v3070_v54, 2  ;;  %v3597_v63 = vpop.f32.mrf.mxu1  ;;  %v4406_v13 = vld [vmem:[#allocation2 + $0x18] sm:$0xff]  }
 0x2c4   : > { %v2941_v38 = vsel %vm1603_vm9, %v2939_v12, %v2940_v20  ;;  %v3184_v7 = vrot.slane %v3071_v10, 2  ;;  %v4242_v30 = vunpack.c.h.bf16 %v6144_v32  ;;  %v3596_v29 = vadd.f32 %v6141_v5, %v3595_v33 }
 0x2c5   : > { %v2943_v34 = vsel %vm1603_vm9, %v2940_v20, %v2942_v43  ;;  %v3027_v39 = vadd.f32 %v2941_v38, %v2785_v16  ;;  %v4245_v40 = vunpack.c.l.bf16 %v4405_v0  ;;  %v3735_v48 = vadd.f32 %v4241_v31, %v6150_v19  ;;  %v4587_v19 = vld [vmem:[%s6290_s4] ss:$0 sm:$0xff] }
 0x2c6   : > { %v3028_v23 = vadd.f32 %v2943_v34, %v2786_v25  ;;  %v3183_v42 = vsel %vm1846_vm10, %v3181_v47, %v3182_v62  ;;  %v3736_v4 = vadd.f32 %v4242_v30, %v3593_v22  ;;  %v3185_v49 = vsel %vm1846_vm10, %v3182_v62, %v3184_v7  ;;  %v4415_v22 = vld [vmem:[#allocation2 + $0x60] sm:$0xff]  }
 0x2c7   : > { %v3269_v53 = vadd.f32 %v3183_v42, %v3027_v39  ;;  %v3598_v56 = vadd.f32 %v6141_v5, %v3597_v63  ;;  %v4246_v6 = vunpack.c.h.bf16 %v4405_v0  ;;  %v3636_v9 = vadd.f32 %v6141_v5, %v6173_v2 }
 0x2c8   : > { %v3270_v60 = vadd.f32 %v3185_v49, %v3028_v23  ;;  %v4306_v44 = vpack.c.bf16 %v3736_v4, %v3735_v48  ;;  %v4277_v32 = vunpack.c.l.bf16 %v4413_v14  ;;  %v3737_v45 = vadd.f32 %v4245_v40, %v3596_v29  ;;  %v4407_v48 = vld [vmem:[#allocation2 + $0x20] sm:$0xff]  }
 0x2c9   : > { %v3305_v31 = vadd.f32 %v4587_v19, %v3269_v53  ;;  %v3738_v41 = vadd.f32 %v4246_v6, %v3598_v56  ;;  %v3638_v55 = vadd.f32 %v6141_v5, %v3637_v61  ;;  %v4278_v59 = vunpack.c.h.bf16 %v4413_v14  ;;  %v3642_v61 = vpop.f32.mrf.mxu3 }
 0x2ca   : > { %v3306_v51 = vadd.f32 %v4587_v19, %v3270_v60  ;;  %4307 = vst [vmem:[%s5038_s17] sm:$0xff] %v4306_v44   ;;  %v3753_v2 = vadd.f32 %v4277_v32, %v3636_v9  ;;  %v3641_v33 = vadd.f32 %v6141_v5, %v3640_v1  ;;  %v4281_v58 = vunpack.c.l.bf16 %v4414_v46  ;;  %v4416_v60 = vld [vmem:[#allocation2 + $0x68] sm:$0xff]  }
 0x2cb   : > { %v3337_v3 = vmax.f32 %v3305_v31, 0.0  ;;  %v4311_v36 = vpack.c.bf16 %v3738_v41, %v3737_v45  ;;  %v3754_v52 = vadd.f32 %v4278_v59, %v3638_v55  ;;  %v4282_v21 = vunpack.c.h.bf16 %v4414_v46  ;;  %v3600_v8 = vpop.f32.mrf.mxu1  ;;  %v4408_v59 = vld [vmem:[#allocation2 + $0x28] sm:$0xff]  }
 0x2cc   : > { %v3338_v50 = vmax.f32 %v3306_v51, 0.0  ;;  %v3643_v37 = vadd.f32 %v6141_v5, %v3642_v61  ;;  %v3755_v35 = vadd.f32 %v4281_v58, %v3641_v33  ;;  %v3601_v20 = vadd.f32 %v6141_v5, %v3600_v8 }
 0x2cd   : > { %v3369_v28 = vmin.f32 %v3337_v3, 6.0  ;;  %4420 = vst [vmem:[%s5038_s17 + $0x8] sm:$0xff] %v4311_v36   ;;  %v4351_v57 = vpack.c.bf16 %v3754_v52, %v3753_v2  ;;  %v4249_v54 = vunpack.c.l.bf16 %v4406_v13  ;;  %v4250_v10 = vunpack.c.h.bf16 %v4406_v13 }
 0x2ce   : > { %v3370_v15 = vmin.f32 %v3338_v50, 6.0  ;;  %v3756_v11 = vadd.f32 %v4282_v21, %v3643_v37  ;;  %v4285_v7 = vunpack.c.l.bf16 %v4415_v22  ;;  %v4286_v30 = vunpack.c.h.bf16 %v4415_v22  ;;  %v4417_v21 = vld [vmem:[#allocation2 + $0x70] sm:$0xff]  }
 0x2cf   : > { %v3401_v24 = vpack.c.bf16 %v3369_v28, %v3369_v28  ;;  %4428 = vst [vmem:[%s5038_s17 + $0x48] sm:$0xff] %v4351_v57   ;;  %v3739_v25 = vadd.f32 %v4249_v54, %v3601_v20  ;;  %v4253_v4 = vunpack.c.l.bf16 %v4407_v48  ;;  %v4254_v63 = vunpack.c.h.bf16 %v4407_v48 }
 0x2d0   : > { %v3402_v17 = vpack.c.bf16 %v3370_v15, %v3370_v15  ;;  %v4356_v27 = vpack.c.bf16 %v3756_v11, %v3755_v35  ;;  %v4289_v32 = vunpack.c.l.bf16 %v4416_v60  ;;  %v4290_v19 = vunpack.c.h.bf16 %v4416_v60  ;;  %v4409_v11 = vld [vmem:[#allocation2 + $0x30] sm:$0xff]  }
 0x2d1   : > { %v3485_v18 = vunpack.c.l.b16 %v3401_v24  ;;  %v3645_v0 = vpop.f32.mrf.mxu3  ;;  %v4257_v36 = vunpack.c.l.bf16 %v4408_v59  ;;  %v4258_v50 = vunpack.c.h.bf16 %v4408_v59  ;;  %v4293_v57 = vunpack.c.l.bf16 %v4417_v21 }
 0x2d2   : > { %v3486_v26 = vunpack.c.l.b16 %v3402_v17  ;;  %4429 = vst [vmem:[%s5038_s17 + $0x50] sm:$0xff] %v4356_v27   ;;  %v3646_v62 = vadd.f32 %v6141_v5, %v3645_v0  ;;  %v4294_v61 = vunpack.c.h.bf16 %v4417_v21  ;;  %v4261_v27 = vunpack.c.l.bf16 %v4409_v11 }
 0x2d3   : > { %v3602_v47 = vpop.f32.mrf.mxu1 }
 0x2d4   : > { %v3509_v12 = vpack.c.b16 %v3486_v26, %v3485_v18  ;;  %v3603_v16 = vadd.f32 %v6141_v5, %v3602_v47  ;;  %v3757_v40 = vadd.f32 %v4285_v7, %v3646_v62 }
 0x2d6   : > { %3629 = vmatmul.bf16.gmra.mxu1 %v3509_v12  ;;  %v3740_v43 = vadd.f32 %v4250_v10, %v3603_v16  ;;  %v4262_v12 = vunpack.c.h.bf16 %v4409_v11 }
 0x2d8   : > { %v4316_v38 = vpack.c.bf16 %v3740_v43, %v3739_v25  ;;  %v4410_v25 = vld [vmem:[#allocation2 + $0x38] sm:$0xff]  }
 0x2d9   : > { %v3647_v39 = vpop.f32.mrf.mxu3  ;;  %v4265_v22 = vunpack.c.l.bf16 %v4410_v25 }
 0x2da   : > { %4421 = vst [vmem:[%s5038_s17 + $0x10] sm:$0xff] %v4316_v38   ;;  %v3648_v29 = vadd.f32 %v6141_v5, %v3647_v39  ;;  %v4266_v38 = vunpack.c.h.bf16 %v4410_v25 }
 0x2db   : > { %v3605_v34 = vpop.f32.mrf.mxu1 }
 0x2dc   : > { %v3758_v14 = vadd.f32 %v4286_v30, %v3648_v29  ;;  %v3606_v42 = vadd.f32 %v6141_v5, %v3605_v34  ;;  %v4418_v29 = vld [vmem:[#allocation2 + $0x78] sm:$0xff]  }
 0x2dd   : > { %v4297_v48 = vunpack.c.l.bf16 %v4418_v29 }
 0x2de   : > { %v4361_v23 = vpack.c.bf16 %v3758_v14, %v3757_v40  ;;  %v3741_v56 = vadd.f32 %v4253_v4, %v3606_v42 }
 0x2e0   : > { %4430 = vst [vmem:[%s5038_s17 + $0x58] sm:$0xff] %v4361_v23   ;;  %v4298_v23 = vunpack.c.h.bf16 %v4418_v29 }
 0x2e1   : > { %v3650_v49 = vpop.f32.mrf.mxu3 }
 0x2e2   : > { %v3651_v9 = vadd.f32 %v6141_v5, %v3650_v49 }
 0x2e3   : > { %v3607_v1 = vpop.f32.mrf.mxu1 }
 0x2e4   : > { %v3608_v53 = vadd.f32 %v6141_v5, %v3607_v1  ;;  %v3759_v55 = vadd.f32 %v4289_v32, %v3651_v9 }
 0x2e6   : > { %v3742_v6 = vadd.f32 %v4254_v63, %v3608_v53 }
 0x2e8   : > { %v4321_v44 = vpack.c.bf16 %v3742_v6, %v3741_v56  ;;  %v4411_v56 = vld [vmem:[#allocation2 + $0x40] sm:$0xff]  }
 0x2e9   : > { %v3652_v45 = vpop.f32.mrf.mxu3  ;;  %v4269_v60 = vunpack.c.l.bf16 %v4411_v56 }
 0x2ea   : > { %4422 = vst [vmem:[%s5038_s17 + $0x18] sm:$0xff] %v4321_v44   ;;  %v3653_v41 = vadd.f32 %v6141_v5, %v3652_v45  ;;  %v4270_v44 = vunpack.c.h.bf16 %v4411_v56 }
 0x2eb   : > { %v3610_v31 = vpop.f32.mrf.mxu1 }
 0x2ec   : > { %v3760_v51 = vadd.f32 %v4290_v19, %v3653_v41  ;;  %v3611_v3 = vadd.f32 %v6141_v5, %v3610_v31 }
 0x2ee   : > { %v4366_v46 = vpack.c.bf16 %v3760_v51, %v3759_v55  ;;  %v3743_v33 = vadd.f32 %v4257_v36, %v3611_v3  ;;  %v4419_v55 = vld [vmem:[#allocation2 + $0x80] sm:$0xff]  }
 0x2ef   : > { %v4301_v59 = vunpack.c.l.bf16 %v4419_v55 }
 0x2f0   : > { %4431 = vst [vmem:[%s5038_s17 + $0x60] sm:$0xff] %v4366_v46   ;;  %v4302_v46 = vunpack.c.h.bf16 %v4419_v55 }
 0x2f1   : > { %v3655_v52 = vpop.f32.mrf.mxu3 }
 0x2f2   : > { %v3656_v8 = vadd.f32 %v6141_v5, %v3655_v52 }
 0x2f3   : > { %v3612_v2 = vpop.f32.mrf.mxu1 }
 0x2f4   : > { %v3613_v28 = vadd.f32 %v6141_v5, %v3612_v2  ;;  %v3761_v18 = vadd.f32 %v4293_v57, %v3656_v8 }
 0x2f6   : > { %v3744_v58 = vadd.f32 %v4258_v50, %v3613_v28 }
 0x2f8   : > { %v4326_v15 = vpack.c.bf16 %v3744_v58, %v3743_v33  ;;  %v4412_v33 = vld [vmem:[#allocation2 + $0x48] sm:$0xff]  }
 0x2f9   : > { %v3657_v37 = vpop.f32.mrf.mxu3  ;;  %v4273_v21 = vunpack.c.l.bf16 %v4412_v33 }
 0x2fa   : > { %4423 = vst [vmem:[%s5038_s17 + $0x20] sm:$0xff] %v4326_v15   ;;  %v3658_v17 = vadd.f32 %v6141_v5, %v3657_v37  ;;  %v4274_v15 = vunpack.c.h.bf16 %v4412_v33 }
 0x2fb   : > { %v3615_v24 = vpop.f32.mrf.mxu1 }
 0x2fc   : > { %v3762_v35 = vadd.f32 %v4294_v61, %v3658_v17  ;;  %v3616_v13 = vadd.f32 %v6141_v5, %v3615_v24 }
 0x2fe   : > { %v4371_v26 = vpack.c.bf16 %v3762_v35, %v3761_v18  ;;  %v3745_v10 = vadd.f32 %v4261_v27, %v3616_v13 }
 0x300   : > { %4432 = vst [vmem:[%s5038_s17 + $0x68] sm:$0xff] %v4371_v26  }
 0x303   : > { %v3617_v20 = vpop.f32.mrf.mxu1 }
 0x304   : > { %v3618_v54 = vadd.f32 %v6141_v5, %v3617_v20 }
 0x306   : > { %v3746_v47 = vadd.f32 %v4262_v12, %v3618_v54 }
 0x308   : > { %v4331_v0 = vpack.c.bf16 %v3746_v47, %v3745_v10 }
 0x30a   : > { %4424 = vst [vmem:[%s5038_s17 + $0x28] sm:$0xff] %v4331_v0  }
 0x30b   : > { %v3620_v16 = vpop.f32.mrf.mxu1 }
 0x30c   : > { %v3621_v43 = vadd.f32 %v6141_v5, %v3620_v16 }
 0x30e   : > { %v3747_v34 = vadd.f32 %v4265_v22, %v3621_v43 }
 0x313   : > { %v3622_v62 = vpop.f32.mrf.mxu1 }
 0x314   : > { %v3623_v30 = vadd.f32 %v6141_v5, %v3622_v62 }
 0x316   : > { %v3660_v7 = vpop.f32.mrf.mxu3  ;;  %v3748_v39 = vadd.f32 %v4266_v38, %v3623_v30 }
 0x317   : > { %v3661_v14 = vadd.f32 %v6141_v5, %v3660_v7 }
 0x318   : > { %v4336_v40 = vpack.c.bf16 %v3748_v39, %v3747_v34 }
 0x319   : > { %v3763_v63 = vadd.f32 %v4297_v48, %v3661_v14 }
 0x31a   : > { %4425 = vst [vmem:[%s5038_s17 + $0x30] sm:$0xff] %v4336_v40  }
 0x31e   : > { %v3662_v42 = vpop.f32.mrf.mxu3 }
 0x31f   : > { %v3663_v4 = vadd.f32 %v6141_v5, %v3662_v42 }
 0x321   : > { %v3764_v1 = vadd.f32 %v4298_v23, %v3663_v4 }
 0x323   : > { %v4376_v49 = vpack.c.bf16 %v3764_v1, %v3763_v63 }
 0x325   : > { %4433 = vst [vmem:[%s5038_s17 + $0x70] sm:$0xff] %v4376_v49  }
 0x326   : > { %v3625_v53 = vpop.f32.mrf.mxu1 }
 0x327   : > { %v3626_v6 = vadd.f32 %v6141_v5, %v3625_v53 }
 0x329   : > { %v3749_v19 = vadd.f32 %v4269_v60, %v3626_v6 }
 0x32e   : > { %v3627_v9 = vpop.f32.mrf.mxu1 }
 0x32f   : > { %v3628_v32 = vadd.f32 %v6141_v5, %v3627_v9 }
 0x331   : > { %v3750_v31 = vadd.f32 %v4270_v44, %v3628_v32 }
 0x333   : > { %v4341_v45 = vpack.c.bf16 %v3750_v31, %v3749_v19 }
 0x335   : > { %4426 = vst [vmem:[%s5038_s17 + $0x38] sm:$0xff] %v4341_v45  }
 0x342   : > { %v3665_v41 = vpop.f32.mrf.mxu3 }
 0x343   : > { %v3666_v51 = vadd.f32 %v6141_v5, %v3665_v41 }
 0x345   : > { %v3765_v50 = vadd.f32 %v4301_v59, %v3666_v51 }
 0x34a   : > { %v3667_v3 = vpop.f32.mrf.mxu3 }
 0x34b   : > { %v3668_v36 = vadd.f32 %v6141_v5, %v3667_v3 }
 0x34d   : > { %v3766_v2 = vadd.f32 %v4302_v46, %v3668_v36 }
 0x34f   : > { %v4381_v52 = vpack.c.bf16 %v3766_v2, %v3765_v50 }
 0x351   : > { %4434 = vst [vmem:[%s5038_s17 + $0x78] sm:$0xff] %v4381_v52  }
 0x353   : > { %v3630_v28 = vpop.f32.mrf.mxu1 }
 0x354   : > { %v3631_v58 = vadd.f32 %v6141_v5, %v3630_v28 }
 0x356   : > { %v3751_v61 = vadd.f32 %v4273_v21, %v3631_v58 }
 0x35b   : > { %v3632_v8 = vpop.f32.mrf.mxu1 }
 0x35c   : > { %v3633_v57 = vadd.f32 %v6141_v5, %v3632_v8 }
 0x35e   : > { %v3752_v24 = vadd.f32 %v4274_v15, %v3633_v57 }
 0x360   : > { %v4346_v37 = vpack.c.bf16 %v3752_v24, %v3751_v61 }
 0x362   : > { %4427 = vst [vmem:[%s5038_s17 + $0x40] sm:$0xff] %v4346_v37  }
 0x363   : > { %4729 = shalt.err (!%p4726_p13)
}
 0x364   : > { %s4800_s3 = smov 64   ;;  %s4801_s17 = smov 4  }
 0x365   : > { %4463 = dma.vmem_to_hbm [thread:$0]  (%p4882_p4), %s3848_s28, 2048, %s3850_s9, %s3832_s27, %s4800_s3, %s4800_s3, %s4801_s17  }
 0x366 PF: > { %p4485_p0 = scmp.ge.s32.totalorder %s4790_s29, 2  ;;  %s3864_s30 = sand.u32 1, %s4770_s24  }
 0x367   : > { %s3865_s8 = scalar_lea.sflag [#allocation7], %s3864_s30 }
 0x368   : > { %p4476_p1 = pnand %p4485_p0, %p4889_p8 }
 0x36a   : > { %p4477_p2 = pneg %p4476_p1 }
 0x36c   : > { %4765 = dma.done.wait (%p4477_p2), %s3865_s8, 2048  }
 0x36d   : > { %4767 = vsyncadd (%p4477_p2), %s3865_s8, 4294965248  ;;  %s22_s29 = sadd.s32 1, %s4790_s29   ;;  %s6319_s10 = sld [smem:[#allocation20_spill]] }
 0x36e   : > { %p19_p3 = scmp.ge.s32.totalorder %s22_s29, 4   ;;  %s6320_s26 = sld [smem:[#allocation24_spill]] }
 0x36f   : > { %s6321_s27 = sld [smem:[#allocation21_spill]]  ;;  %s6323_s24 = smov %s4774_s25 }
 0x370   : > { %s6322_s28 = sld [smem:[#allocation22_spill]]  ;;  %21 = sbr.rel (!%p19_p3) target bundleno = 8 (0x8), region = 97 }
 0x373   : > { %s6324_s25 = smov %s6319_s10 }
 0x375   :  { %3871 = vsyncpa [#allocation6], 1 }
 0x376   :  { %3873 = vsyncpa [#allocation6 + $0x1], 1 }
 0x377   :  { %3874 = vsyncpa [#allocation9], 1 }
 0x378   :  { %3875 = vsyncpa [#allocation7], 1 }
 0x379   :  { %3877 = vsyncpa [#allocation7 + $0x1], 1 }
 0x37a   :  { %3878 = vsyncmov [#allocation4] }
 0x37d   :  { %s3879_s11 = vpop.sfrf %3878 }
 0x37e   :  { %p4106_p4 = scmp.ne.s32.totalorder %s3879_s11, 0 }
 0x380   :  { %3883 = shalt.err (%p4106_p4)  }

</bundles_post_ra>
